<compile_context>
chip_gen: v7x
topology: tpu7x:2x2x1
jax: 0.10.0
libtpu: 0.0.40
codegen_flags: <defaults>
</compile_context>

<pallas_src>
import functools

import jax
import jax.numpy as jnp
import numpy as np
from jax import lax
from jax.experimental import pallas as pl
from jax.experimental.pallas import tpu as pltpu

# Kept at HIGHEST so the kernel matches the f32 reference to 1e-3. Dropping the
# recurrent dot to DEFAULT (single-pass bf16 MXU) would shorten the serial per-step
# latency ~3x but risks the tolerance for larger H/T; validate before switching.
MM_PRECISION = jax.lax.Precision.HIGHEST

_SUBLANES = 8          # f32 sublane width
_UNROLL_LIMIT = 32     # fully unroll the time loop (static indices) up to this T


def _make_lstm_fc_kernel(num_layers, T, B, H, C):
  """Build the kernel body, closed over static shapes."""
  G = 4 * H

  def kernel(*refs):
    # refs = [x, (w_ih_t, w_hh_t, bias) * L, w_fc_t, b_fc, out, gates_buf, seq_buf?]
    x_ref = refs[0]
    layer_refs = refs[1:1 + 3 * num_layers]
    w_fc_ref = refs[1 + 3 * num_layers]
    b_fc_ref = refs[2 + 3 * num_layers]
    out_ref = refs[3 + 3 * num_layers]
    scratch = refs[4 + 3 * num_layers:]
    gates_buf = scratch[0]                                  # [T, B, 4H]
    seq_buf = scratch[1] if num_layers > 1 else None        # [T, B, H]

    h_last = None
    for l in range(num_layers):
      w_ih_ref = layer_refs[3 * l + 0]                      # [Din, 4H]
      w_hh_ref = layer_refs[3 * l + 1]                      # [H,   4H]
      b_ref = layer_refs[3 * l + 2]                         # [1,   4H]

      # --- hoisted input projection: one big matmul per layer (off the h-chain) ---
      seq_in = x_ref[...] if l == 0 else seq_buf[...]       # [T, B, Din]
      din = seq_in.shape[-1]
      gx = (jnp.dot(seq_in.reshape(T * B, din), w_ih_ref[...],
                    preferred_element_type=jnp.float32, precision=MM_PRECISION)
            + b_ref[...])                                   # [T*B, 4H]  (bias folded)
      gates_buf[...] = gx.reshape(T, B, G)

      w_hh = w_hh_ref[...]            # hoist the recurrent weight load out of the loop
      write_seq = l < num_layers - 1

      def step(t, carry, _w_hh=w_hh, _write_seq=write_seq):
        h, c = carry
        gates = gates_buf[t] + jnp.dot(
            h, _w_hh, preferred_element_type=jnp.float32,
            precision=MM_PRECISION)                         # [B, 4H]
        # Gate order (reordered in the wrapper): [ i | f | o | g ]
        sig = jax.nn.sigmoid(gates[:, :3 * H])              # one EUP slab [B, 3H]
        g_g = jnp.tanh(gates[:, 3 * H:])                    # [B, H]
        i_g = sig[:, 0:H]
        f_g = sig[:, H:2 * H]
        o_g = sig[:, 2 * H:3 * H]
        c_new = f_g * c + i_g * g_g
        h_new = o_g * jnp.tanh(c_new)
        if _write_seq:
          # read of gates_buf[t] above precedes this write -> single buffer is safe
          seq_buf[t] = h_new
        return (h_new, c_new)

      carry = (jnp.zeros((B, H), jnp.float32), jnp.zeros((B, H), jnp.float32))
      if T <= _UNROLL_LIMIT:
        for t in range(T):                                  # static indices, full unroll
          carry = step(t, carry)
      else:
        carry = lax.fori_loop(0, T, step, carry, unroll=8)
      h_last = carry[0]

    logits = (jnp.dot(h_last, w_fc_ref[...],
                      preferred_element_type=jnp.float32, precision=MM_PRECISION)
              + b_fc_ref[...])                              # [B, C]
    out_ref[...] = logits.astype(out_ref.dtype)

  return kernel


def rnn_forward_pallas(x_btd, params, *, hidden_size, num_layers, num_classes):
  """x_btd: [B, T, D] float32 (PyTorch batch_first layout). Returns [B, num_classes]."""
  B, T, D = x_btd.shape
  H = hidden_size
  C = num_classes

  # --- glue: batch padding, time-major layout, weight prep (transpose/reorder/fuse) ---
  Bp = max(_SUBLANES, -(-B // _SUBLANES) * _SUBLANES)       # pad batch to sublane width
  x = x_btd.astype(jnp.float32)
  if Bp != B:
    x = jnp.pad(x, ((0, Bp - B), (0, 0), (0, 0)))
  x_tbd = jnp.transpose(x, (1, 0, 2))                       # [T, Bp, D] time-major

  def reorder(w):                       # PyTorch gate rows [i|f|g|o] -> [i|f|o|g]
    return jnp.concatenate(
        [w[0:H], w[H:2 * H], w[3 * H:4 * H], w[2 * H:3 * H]], axis=0)

  kernel_inputs = [x_tbd]
  for l in range(num_layers):
    w_ih, w_hh, b_ih, b_hh = params["lstm"][l]              # [4H,Din],[4H,H],[4H],[4H]
    kernel_inputs.append(jnp.asarray(reorder(w_ih).T, jnp.float32))        # [Din, 4H]
    kernel_inputs.append(jnp.asarray(reorder(w_hh).T, jnp.float32))        # [H,   4H]
    kernel_inputs.append(
        jnp.asarray(reorder(b_ih + b_hh)[None, :], jnp.float32))           # [1,   4H]
  w_fc, b_fc = params["fc"]                                 # [C, H], [C]
  kernel_inputs.append(jnp.asarray(w_fc.T, jnp.float32))    # [H, C]
  kernel_inputs.append(jnp.asarray(b_fc[None, :], jnp.float32))            # [1, C]

  scratch_shapes = [pltpu.VMEM((T, Bp, 4 * H), jnp.float32)]               # gates_x
  if num_layers > 1:
    scratch_shapes.append(pltpu.VMEM((T, Bp, H), jnp.float32))             # inter-layer seq

  # --- VMEM residency plan: derive the limit from actual sizes, not a fixed 32 MiB ---
  def _nbytes(shape):
    return int(np.prod(shape)) * 4
  resident = (sum(_nbytes(a.shape) for a in kernel_inputs)
              + _nbytes((Bp, C))
              + _nbytes((T, Bp, 4 * H))
              + (_nbytes((T, Bp, H)) if num_layers > 1 else 0))
  # 2x headroom for compiler temporaries, clamped so the plan also fits v7x's 64 MiB.
  vmem_limit = int(min(max(2 * resident + (4 << 20), 32 << 20), 56 << 20))
  # TODO(synk): for T large enough that this plan exceeds ~56 MiB, keep x / the
  # inter-layer buffer in pl.ANY (HBM) and manually double-buffer timestep chunks.

  kernel = _make_lstm_fc_kernel(num_layers, T, Bp, H, C)
  out_pad = pl.pallas_call(
      kernel,
      out_shape=jax.ShapeDtypeStruct((Bp, C), jnp.float32),
      in_specs=[pl.BlockSpec(memory_space=pltpu.MemorySpace.VMEM)
                for _ in kernel_inputs],
      out_specs=pl.BlockSpec(memory_space=pltpu.MemorySpace.VMEM),
      scratch_shapes=scratch_shapes,
      compiler_params=pltpu.CompilerParams(vmem_limit_bytes=vmem_limit),
  )(*kernel_inputs)
  return out_pad[:B]


# --------------------------- pure-JAX reference ------------------------------
def rnn_forward_ref(x_btd, params, *, hidden_size, num_layers, num_classes):
  B, T, D = x_btd.shape
  H = hidden_size
  seq = x_btd.astype(jnp.float32)
  for l in range(num_layers):
    w_ih, w_hh, b_ih, b_hh = params["lstm"][l]
    h = jnp.zeros((B, H), jnp.float32)
    c = jnp.zeros((B, H), jnp.float32)
    outs = []
    for t in range(T):
      gates = seq[:, t] @ w_ih.T + b_ih + h @ w_hh.T + b_hh
      i_g = jax.nn.sigmoid(gates[:, 0 * H:1 * H])
      f_g = jax.nn.sigmoid(gates[:, 1 * H:2 * H])
      g_g = jnp.tanh(gates[:, 2 * H:3 * H])
      o_g = jax.nn.sigmoid(gates[:, 3 * H:4 * H])
      c = f_g * c + i_g * g_g
      h = o_g * jnp.tanh(c)
      outs.append(h)
    seq = jnp.stack(outs, axis=1)
  w_fc, b_fc = params["fc"]
  return seq[:, -1] @ w_fc.T + b_fc


# --------------------------- parameter init ----------------------------------
def init_params(key, input_size, hidden_size, num_layers, num_classes):
  """Deterministic init matching PyTorch shapes (uniform(-1/sqrt(H), 1/sqrt(H)))."""
  H = hidden_size
  bound = 1.0 / np.sqrt(H)
  params = {"lstm": [], "fc": None}
  for l in range(num_layers):
    d_in = input_size if l == 0 else H
    key, k1, k2, k3, k4 = jax.random.split(key, 5)
    w_ih = jax.random.uniform(k1, (4 * H, d_in), jnp.float32, -bound, bound)
    w_hh = jax.random.uniform(k2, (4 * H, H), jnp.float32, -bound, bound)
    b_ih = jax.random.uniform(k3, (4 * H,), jnp.float32, -bound, bound)
    b_hh = jax.random.uniform(k4, (4 * H,), jnp.float32, -bound, bound)
    params["lstm"].append((w_ih, w_hh, b_ih, b_hh))
  key, k1, k2 = jax.random.split(key, 3)
  fc_bound = 1.0 / np.sqrt(H)
  w_fc = jax.random.uniform(k1, (num_classes, H), jnp.float32, -fc_bound, fc_bound)
  b_fc = jax.random.uniform(k2, (num_classes,), jnp.float32, -fc_bound, fc_bound)
  params["fc"] = (w_fc, b_fc)
  return params


if __name__ == "__main__":
  # Small shapes consistent with the module's forward:
  B, T = 2, 8                 # batch, sequence length
  INPUT_SIZE = 16             # per-step feature dim
  HIDDEN = 32
  NUM_LAYERS = 2
  NUM_CLASSES = 10

  key = jax.random.PRNGKey(0)
  key, kx = jax.random.split(key)
  x = jax.random.normal(kx, (B, T, INPUT_SIZE), jnp.float32)    # [B, T, D]
  params = init_params(key, INPUT_SIZE, HIDDEN, NUM_LAYERS, NUM_CLASSES)

  fwd = functools.partial(rnn_forward_pallas,
                          hidden_size=HIDDEN,
                          num_layers=NUM_LAYERS,
                          num_classes=NUM_CLASSES)
  out = jax.block_until_ready(jax.jit(fwd)(x, params))

  ref = rnn_forward_ref(x, params,
                        hidden_size=HIDDEN,
                        num_layers=NUM_LAYERS,
                        num_classes=NUM_CLASSES)

  assert out.shape == (B, NUM_CLASSES), out.shape
  np.testing.assert_allclose(np.asarray(out), np.asarray(ref),
                             rtol=1e-3, atol=1e-3)
  print("KERNEL_OK")
</pallas_src>

<mosaic_0001>
module attributes {stable_mosaic.version = 11 : i64} {
  func.func @kernel(%arg0: memref<8x8x16xf32, #tpu.memory_space<vmem>>, %arg1: memref<16x128xf32, #tpu.memory_space<vmem>>, %arg2: memref<32x128xf32, #tpu.memory_space<vmem>>, %arg3: memref<1x128xf32, #tpu.memory_space<vmem>>, %arg4: memref<32x128xf32, #tpu.memory_space<vmem>>, %arg5: memref<32x128xf32, #tpu.memory_space<vmem>>, %arg6: memref<1x128xf32, #tpu.memory_space<vmem>>, %arg7: memref<32x10xf32, #tpu.memory_space<vmem>>, %arg8: memref<1x10xf32, #tpu.memory_space<vmem>>, %arg9: memref<8x10xf32, #tpu.memory_space<vmem>>, %arg10: memref<8x8x128xf32, #tpu.memory_space<vmem>>, %arg11: memref<8x8x32xf32, #tpu.memory_space<vmem>>) attributes {dimension_semantics = [], scalar_prefetch = 0 : i64, scratch_operands = 2 : i64, tpu.core_type = #tpu.core_type<tc>} {
    %c0 = arith.constant 0 : index
    %c0_0 = arith.constant 0 : index
    %c0_1 = arith.constant 0 : index
    %0 = vector.load %arg0[%c0, %c0_0, %c0_1] : memref<8x8x16xf32, #tpu.memory_space<vmem>>, vector<8x8x16xf32>
    %1 = vector.shape_cast %0 : vector<8x8x16xf32> to vector<64x16xf32>
    %c0_2 = arith.constant 0 : index
    %c0_3 = arith.constant 0 : index
    %2 = vector.load %arg1[%c0_2, %c0_3] : memref<16x128xf32, #tpu.memory_space<vmem>>, vector<16x128xf32>
    %cst = arith.constant dense<0.000000e+00> : vector<64x128xf32>
    %3 = tpu.matmul %1, %2, %cst {dimension_numbers = #tpu.dot_dimension_numbers<[1], [0], [0], [1], [0, 0, 1, 1], [], []>, precision = #tpu.contract_precision<fp32>} : vector<64x16xf32>, vector<16x128xf32>, vector<64x128xf32> -> vector<64x128xf32>
    %c0_4 = arith.constant 0 : index
    %c0_5 = arith.constant 0 : index
    %4 = vector.load %arg3[%c0_4, %c0_5] : memref<1x128xf32, #tpu.memory_space<vmem>>, vector<1x128xf32>
    %5 = vector.broadcast %4 : vector<1x128xf32> to vector<64x128xf32>
    %6 = arith.addf %3, %5 : vector<64x128xf32>
    %7 = vector.shape_cast %6 : vector<64x128xf32> to vector<8x8x128xf32>
    %c0_6 = arith.constant 0 : index
    %c0_7 = arith.constant 0 : index
    %c0_8 = arith.constant 0 : index
    %8 = vector.load %arg10[%c0_6, %c0_7, %c0_8] : memref<8x8x128xf32, #tpu.memory_space<vmem>>, vector<8x8x128xf32>
    tpu.vector_store %arg10[%c0_6, %c0_7, %c0_8], %7 {strides = array<i32>} : memref<8x8x128xf32, #tpu.memory_space<vmem>>, vector<8x8x128xf32>,
    %c0_9 = arith.constant 0 : index
    %c0_10 = arith.constant 0 : index
    %9 = vector.load %arg2[%c0_9, %c0_10] : memref<32x128xf32, #tpu.memory_space<vmem>>, vector<32x128xf32>
    %cst_11 = arith.constant 0.000000e+00 : f32
    %10 = vector.broadcast %cst_11 : f32 to vector<8x32xf32>
    %cst_12 = arith.constant 0.000000e+00 : f32
    %11 = vector.broadcast %cst_12 : f32 to vector<8x32xf32>
    %c0_13 = arith.constant 0 : index
    %c0_14 = arith.constant 0 : index
    %c0_15 = arith.constant 0 : index
    %12 = vector.load %arg10[%c0_13, %c0_14, %c0_15] : memref<8x8x128xf32, #tpu.memory_space<vmem>>, vector<1x8x128xf32>
    %13 = vector.shape_cast %12 : vector<1x8x128xf32> to vector<8x128xf32>
    %cst_16 = arith.constant dense<0.000000e+00> : vector<8x128xf32>
    %14 = tpu.matmul %10, %9, %cst_16 {dimension_numbers = #tpu.dot_dimension_numbers<[1], [0], [0], [1], [0, 0, 1, 1], [], []>, precision = #tpu.contract_precision<fp32>} : vector<8x32xf32>, vector<32x128xf32>, vector<8x128xf32> -> vector<8x128xf32>
    %15 = arith.addf %13, %14 : vector<8x128xf32>
    %16 = vector.extract_strided_slice %15 {offsets = [0, 0], sizes = [8, 96], strides = [1, 1]} : vector<8x128xf32> to vector<8x96xf32>
    %17 = arith.negf %16 : vector<8x96xf32>
    %18 = math.exp %17 : vector<8x96xf32>
    %cst_17 = arith.constant 1.000000e+00 : f32
    %19 = vector.broadcast %cst_17 : f32 to vector<8x96xf32>
    %20 = arith.addf %19, %18 : vector<8x96xf32>
    %21 = arith.divf %19, %20 : vector<8x96xf32>
    %22 = vector.extract_strided_slice %15 {offsets = [0, 96], sizes = [8, 32], strides = [1, 1]} : vector<8x128xf32> to vector<8x32xf32>
    %23 = math.tanh %22 : vector<8x32xf32>
    %24 = vector.extract_strided_slice %21 {offsets = [0, 0], sizes = [8, 32], strides = [1, 1]} : vector<8x96xf32> to vector<8x32xf32>
    %25 = vector.extract_strided_slice %21 {offsets = [0, 32], sizes = [8, 32], strides = [1, 1]} : vector<8x96xf32> to vector<8x32xf32>
    %26 = vector.extract_strided_slice %21 {offsets = [0, 64], sizes = [8, 32], strides = [1, 1]} : vector<8x96xf32> to vector<8x32xf32>
    %27 = arith.mulf %25, %11 : vector<8x32xf32>
    %28 = arith.mulf %24, %23 : vector<8x32xf32>
    %29 = arith.addf %27, %28 : vector<8x32xf32>
    %30 = math.tanh %29 : vector<8x32xf32>
    %31 = arith.mulf %26, %30 : vector<8x32xf32>
    %c0_18 = arith.constant 0 : index
    %c0_19 = arith.constant 0 : index
    %c0_20 = arith.constant 0 : index
    %32 = vector.load %arg11[%c0_18, %c0_19, %c0_20] : memref<8x8x32xf32, #tpu.memory_space<vmem>>, vector<1x8x32xf32>
    %33 = vector.shape_cast %32 : vector<1x8x32xf32> to vector<8x32xf32>
    %34 = vector.shape_cast %31 : vector<8x32xf32> to vector<1x8x32xf32>
    tpu.vector_store %arg11[%c0_18, %c0_19, %c0_20], %34 {strides = array<i32>} : memref<8x8x32xf32, #tpu.memory_space<vmem>>, vector<1x8x32xf32>,
    %c1 = arith.constant 1 : index
    %c0_21 = arith.constant 0 : index
    %c0_22 = arith.constant 0 : index
    %35 = vector.load %arg10[%c1, %c0_21, %c0_22] : memref<8x8x128xf32, #tpu.memory_space<vmem>>, vector<1x8x128xf32>
    %36 = vector.shape_cast %35 : vector<1x8x128xf32> to vector<8x128xf32>
    %cst_23 = arith.constant dense<0.000000e+00> : vector<8x128xf32>
    %37 = tpu.matmul %31, %9, %cst_23 {dimension_numbers = #tpu.dot_dimension_numbers<[1], [0], [0], [1], [0, 0, 1, 1], [], []>, precision = #tpu.contract_precision<fp32>} : vector<8x32xf32>, vector<32x128xf32>, vector<8x128xf32> -> vector<8x128xf32>
    %38 = arith.addf %36, %37 : vector<8x128xf32>
    %39 = vector.extract_strided_slice %38 {offsets = [0, 0], sizes = [8, 96], strides = [1, 1]} : vector<8x128xf32> to vector<8x96xf32>
    %40 = arith.negf %39 : vector<8x96xf32>
    %41 = math.exp %40 : vector<8x96xf32>
    %cst_24 = arith.constant 1.000000e+00 : f32
    %42 = vector.broadcast %cst_24 : f32 to vector<8x96xf32>
    %43 = arith.addf %42, %41 : vector<8x96xf32>
    %44 = arith.divf %42, %43 : vector<8x96xf32>
    %45 = vector.extract_strided_slice %38 {offsets = [0, 96], sizes = [8, 32], strides = [1, 1]} : vector<8x128xf32> to vector<8x32xf32>
    %46 = math.tanh %45 : vector<8x32xf32>
    %47 = vector.extract_strided_slice %44 {offsets = [0, 0], sizes = [8, 32], strides = [1, 1]} : vector<8x96xf32> to vector<8x32xf32>
    %48 = vector.extract_strided_slice %44 {offsets = [0, 32], sizes = [8, 32], strides = [1, 1]} : vector<8x96xf32> to vector<8x32xf32>
    %49 = vector.extract_strided_slice %44 {offsets = [0, 64], sizes = [8, 32], strides = [1, 1]} : vector<8x96xf32> to vector<8x32xf32>
    %50 = arith.mulf %48, %29 : vector<8x32xf32>
    %51 = arith.mulf %47, %46 : vector<8x32xf32>
    %52 = arith.addf %50, %51 : vector<8x32xf32>
    %53 = math.tanh %52 : vector<8x32xf32>
    %54 = arith.mulf %49, %53 : vector<8x32xf32>
    %c1_25 = arith.constant 1 : index
    %c0_26 = arith.constant 0 : index
    %c0_27 = arith.constant 0 : index
    %55 = vector.load %arg11[%c1_25, %c0_26, %c0_27] : memref<8x8x32xf32, #tpu.memory_space<vmem>>, vector<1x8x32xf32>
    %56 = vector.shape_cast %55 : vector<1x8x32xf32> to vector<8x32xf32>
    %57 = vector.shape_cast %54 : vector<8x32xf32> to vector<1x8x32xf32>
    tpu.vector_store %arg11[%c1_25, %c0_26, %c0_27], %57 {strides = array<i32>} : memref<8x8x32xf32, #tpu.memory_space<vmem>>, vector<1x8x32xf32>,
    %c2 = arith.constant 2 : index
    %c0_28 = arith.constant 0 : index
    %c0_29 = arith.constant 0 : index
    %58 = vector.load %arg10[%c2, %c0_28, %c0_29] : memref<8x8x128xf32, #tpu.memory_space<vmem>>, vector<1x8x128xf32>
    %59 = vector.shape_cast %58 : vector<1x8x128xf32> to vector<8x128xf32>
    %cst_30 = arith.constant dense<0.000000e+00> : vector<8x128xf32>
    %60 = tpu.matmul %54, %9, %cst_30 {dimension_numbers = #tpu.dot_dimension_numbers<[1], [0], [0], [1], [0, 0, 1, 1], [], []>, precision = #tpu.contract_precision<fp32>} : vector<8x32xf32>, vector<32x128xf32>, vector<8x128xf32> -> vector<8x128xf32>
    %61 = arith.addf %59, %60 : vector<8x128xf32>
    %62 = vector.extract_strided_slice %61 {offsets = [0, 0], sizes = [8, 96], strides = [1, 1]} : vector<8x128xf32> to vector<8x96xf32>
    %63 = arith.negf %62 : vector<8x96xf32>
    %64 = math.exp %63 : vector<8x96xf32>
    %cst_31 = arith.constant 1.000000e+00 : f32
    %65 = vector.broadcast %cst_31 : f32 to vector<8x96xf32>
    %66 = arith.addf %65, %64 : vector<8x96xf32>
    %67 = arith.divf %65, %66 : vector<8x96xf32>
    %68 = vector.extract_strided_slice %61 {offsets = [0, 96], sizes = [8, 32], strides = [1, 1]} : vector<8x128xf32> to vector<8x32xf32>
    %69 = math.tanh %68 : vector<8x32xf32>
    %70 = vector.extract_strided_slice %67 {offsets = [0, 0], sizes = [8, 32], strides = [1, 1]} : vector<8x96xf32> to vector<8x32xf32>
    %71 = vector.extract_strided_slice %67 {offsets = [0, 32], sizes = [8, 32], strides = [1, 1]} : vector<8x96xf32> to vector<8x32xf32>
    %72 = vector.extract_strided_slice %67 {offsets = [0, 64], sizes = [8, 32], strides = [1, 1]} : vector<8x96xf32> to vector<8x32xf32>
    %73 = arith.mulf %71, %52 : vector<8x32xf32>
    %74 = arith.mulf %70, %69 : vector<8x32xf32>
    %75 = arith.addf %73, %74 : vector<8x32xf32>
    %76 = math.tanh %75 : vector<8x32xf32>
    %77 = arith.mulf %72, %76 : vector<8x32xf32>
    %c2_32 = arith.constant 2 : index
    %c0_33 = arith.constant 0 : index
    %c0_34 = arith.constant 0 : index
    %78 = vector.load %arg11[%c2_32, %c0_33, %c0_34] : memref<8x8x32xf32, #tpu.memory_space<vmem>>, vector<1x8x32xf32>
    %79 = vector.shape_cast %78 : vector<1x8x32xf32> to vector<8x32xf32>
    %80 = vector.shape_cast %77 : vector<8x32xf32> to vector<1x8x32xf32>
    tpu.vector_store %arg11[%c2_32, %c0_33, %c0_34], %80 {strides = array<i32>} : memref<8x8x32xf32, #tpu.memory_space<vmem>>, vector<1x8x32xf32>,
    %c3 = arith.constant 3 : index
    %c0_35 = arith.constant 0 : index
    %c0_36 = arith.constant 0 : index
    %81 = vector.load %arg10[%c3, %c0_35, %c0_36] : memref<8x8x128xf32, #tpu.memory_space<vmem>>, vector<1x8x128xf32>
    %82 = vector.shape_cast %81 : vector<1x8x128xf32> to vector<8x128xf32>
    %cst_37 = arith.constant dense<0.000000e+00> : vector<8x128xf32>
    %83 = tpu.matmul %77, %9, %cst_37 {dimension_numbers = #tpu.dot_dimension_numbers<[1], [0], [0], [1], [0, 0, 1, 1], [], []>, precision = #tpu.contract_precision<fp32>} : vector<8x32xf32>, vector<32x128xf32>, vector<8x128xf32> -> vector<8x128xf32>
    %84 = arith.addf %82, %83 : vector<8x128xf32>
    %85 = vector.extract_strided_slice %84 {offsets = [0, 0], sizes = [8, 96], strides = [1, 1]} : vector<8x128xf32> to vector<8x96xf32>
    %86 = arith.negf %85 : vector<8x96xf32>
    %87 = math.exp %86 : vector<8x96xf32>
    %cst_38 = arith.constant 1.000000e+00 : f32
    %88 = vector.broadcast %cst_38 : f32 to vector<8x96xf32>
    %89 = arith.addf %88, %87 : vector<8x96xf32>
    %90 = arith.divf %88, %89 : vector<8x96xf32>
    %91 = vector.extract_strided_slice %84 {offsets = [0, 96], sizes = [8, 32], strides = [1, 1]} : vector<8x128xf32> to vector<8x32xf32>
    %92 = math.tanh %91 : vector<8x32xf32>
    %93 = vector.extract_strided_slice %90 {offsets = [0, 0], sizes = [8, 32], strides = [1, 1]} : vector<8x96xf32> to vector<8x32xf32>
    %94 = vector.extract_strided_slice %90 {offsets = [0, 32], sizes = [8, 32], strides = [1, 1]} : vector<8x96xf32> to vector<8x32xf32>
    %95 = vector.extract_strided_slice %90 {offsets = [0, 64], sizes = [8, 32], strides = [1, 1]} : vector<8x96xf32> to vector<8x32xf32>
    %96 = arith.mulf %94, %75 : vector<8x32xf32>
    %97 = arith.mulf %93, %92 : vector<8x32xf32>
    %98 = arith.addf %96, %97 : vector<8x32xf32>
    %99 = math.tanh %98 : vector<8x32xf32>
    %100 = arith.mulf %95, %99 : vector<8x32xf32>
    %c3_39 = arith.constant 3 : index
    %c0_40 = arith.constant 0 : index
    %c0_41 = arith.constant 0 : index
    %101 = vector.load %arg11[%c3_39, %c0_40, %c0_41] : memref<8x8x32xf32, #tpu.memory_space<vmem>>, vector<1x8x32xf32>
    %102 = vector.shape_cast %101 : vector<1x8x32xf32> to vector<8x32xf32>
    %103 = vector.shape_cast %100 : vector<8x32xf32> to vector<1x8x32xf32>
    tpu.vector_store %arg11[%c3_39, %c0_40, %c0_41], %103 {strides = array<i32>} : memref<8x8x32xf32, #tpu.memory_space<vmem>>, vector<1x8x32xf32>,
    %c4 = arith.constant 4 : index
    %c0_42 = arith.constant 0 : index
    %c0_43 = arith.constant 0 : index
    %104 = vector.load %arg10[%c4, %c0_42, %c0_43] : memref<8x8x128xf32, #tpu.memory_space<vmem>>, vector<1x8x128xf32>
    %105 = vector.shape_cast %104 : vector<1x8x128xf32> to vector<8x128xf32>
    %cst_44 = arith.constant dense<0.000000e+00> : vector<8x128xf32>
    %106 = tpu.matmul %100, %9, %cst_44 {dimension_numbers = #tpu.dot_dimension_numbers<[1], [0], [0], [1], [0, 0, 1, 1], [], []>, precision = #tpu.contract_precision<fp32>} : vector<8x32xf32>, vector<32x128xf32>, vector<8x128xf32> -> vector<8x128xf32>
    %107 = arith.addf %105, %106 : vector<8x128xf32>
    %108 = vector.extract_strided_slice %107 {offsets = [0, 0], sizes = [8, 96], strides = [1, 1]} : vector<8x128xf32> to vector<8x96xf32>
    %109 = arith.negf %108 : vector<8x96xf32>
    %110 = math.exp %109 : vector<8x96xf32>
    %cst_45 = arith.constant 1.000000e+00 : f32
    %111 = vector.broadcast %cst_45 : f32 to vector<8x96xf32>
    %112 = arith.addf %111, %110 : vector<8x96xf32>
    %113 = arith.divf %111, %112 : vector<8x96xf32>
    %114 = vector.extract_strided_slice %107 {offsets = [0, 96], sizes = [8, 32], strides = [1, 1]} : vector<8x128xf32> to vector<8x32xf32>
    %115 = math.tanh %114 : vector<8x32xf32>
    %116 = vector.extract_strided_slice %113 {offsets = [0, 0], sizes = [8, 32], strides = [1, 1]} : vector<8x96xf32> to vector<8x32xf32>
    %117 = vector.extract_strided_slice %113 {offsets = [0, 32], sizes = [8, 32], strides = [1, 1]} : vector<8x96xf32> to vector<8x32xf32>
    %118 = vector.extract_strided_slice %113 {offsets = [0, 64], sizes = [8, 32], strides = [1, 1]} : vector<8x96xf32> to vector<8x32xf32>
    %119 = arith.mulf %117, %98 : vector<8x32xf32>
    %120 = arith.mulf %116, %115 : vector<8x32xf32>
    %121 = arith.addf %119, %120 : vector<8x32xf32>
    %122 = math.tanh %121 : vector<8x32xf32>
    %123 = arith.mulf %118, %122 : vector<8x32xf32>
    %c4_46 = arith.constant 4 : index
    %c0_47 = arith.constant 0 : index
    %c0_48 = arith.constant 0 : index
    %124 = vector.load %arg11[%c4_46, %c0_47, %c0_48] : memref<8x8x32xf32, #tpu.memory_space<vmem>>, vector<1x8x32xf32>
    %125 = vector.shape_cast %124 : vector<1x8x32xf32> to vector<8x32xf32>
    %126 = vector.shape_cast %123 : vector<8x32xf32> to vector<1x8x32xf32>
    tpu.vector_store %arg11[%c4_46, %c0_47, %c0_48], %126 {strides = array<i32>} : memref<8x8x32xf32, #tpu.memory_space<vmem>>, vector<1x8x32xf32>,
    %c5 = arith.constant 5 : index
    %c0_49 = arith.constant 0 : index
    %c0_50 = arith.constant 0 : index
    %127 = vector.load %arg10[%c5, %c0_49, %c0_50] : memref<8x8x128xf32, #tpu.memory_space<vmem>>, vector<1x8x128xf32>
    %128 = vector.shape_cast %127 : vector<1x8x128xf32> to vector<8x128xf32>
    %cst_51 = arith.constant dense<0.000000e+00> : vector<8x128xf32>
    %129 = tpu.matmul %123, %9, %cst_51 {dimension_numbers = #tpu.dot_dimension_numbers<[1], [0], [0], [1], [0, 0, 1, 1], [], []>, precision = #tpu.contract_precision<fp32>} : vector<8x32xf32>, vector<32x128xf32>, vector<8x128xf32> -> vector<8x128xf32>
    %130 = arith.addf %128, %129 : vector<8x128xf32>
    %131 = vector.extract_strided_slice %130 {offsets = [0, 0], sizes = [8, 96], strides = [1, 1]} : vector<8x128xf32> to vector<8x96xf32>
    %132 = arith.negf %131 : vector<8x96xf32>
    %133 = math.exp %132 : vector<8x96xf32>
    %cst_52 = arith.constant 1.000000e+00 : f32
    %134 = vector.broadcast %cst_52 : f32 to vector<8x96xf32>
    %135 = arith.addf %134, %133 : vector<8x96xf32>
    %136 = arith.divf %134, %135 : vector<8x96xf32>
    %137 = vector.extract_strided_slice %130 {offsets = [0, 96], sizes = [8, 32], strides = [1, 1]} : vector<8x128xf32> to vector<8x32xf32>
    %138 = math.tanh %137 : vector<8x32xf32>
    %139 = vector.extract_strided_slice %136 {offsets = [0, 0], sizes = [8, 32], strides = [1, 1]} : vector<8x96xf32> to vector<8x32xf32>
    %140 = vector.extract_strided_slice %136 {offsets = [0, 32], sizes = [8, 32], strides = [1, 1]} : vector<8x96xf32> to vector<8x32xf32>
    %141 = vector.extract_strided_slice %136 {offsets = [0, 64], sizes = [8, 32], strides = [1, 1]} : vector<8x96xf32> to vector<8x32xf32>
    %142 = arith.mulf %140, %121 : vector<8x32xf32>
    %143 = arith.mulf %139, %138 : vector<8x32xf32>
    %144 = arith.addf %142, %143 : vector<8x32xf32>
    %145 = math.tanh %144 : vector<8x32xf32>
    %146 = arith.mulf %141, %145 : vector<8x32xf32>
    %c5_53 = arith.constant 5 : index
    %c0_54 = arith.constant 0 : index
    %c0_55 = arith.constant 0 : index
    %147 = vector.load %arg11[%c5_53, %c0_54, %c0_55] : memref<8x8x32xf32, #tpu.memory_space<vmem>>, vector<1x8x32xf32>
    %148 = vector.shape_cast %147 : vector<1x8x32xf32> to vector<8x32xf32>
    %149 = vector.shape_cast %146 : vector<8x32xf32> to vector<1x8x32xf32>
    tpu.vector_store %arg11[%c5_53, %c0_54, %c0_55], %149 {strides = array<i32>} : memref<8x8x32xf32, #tpu.memory_space<vmem>>, vector<1x8x32xf32>,
    %c6 = arith.constant 6 : index
    %c0_56 = arith.constant 0 : index
    %c0_57 = arith.constant 0 : index
    %150 = vector.load %arg10[%c6, %c0_56, %c0_57] : memref<8x8x128xf32, #tpu.memory_space<vmem>>, vector<1x8x128xf32>
    %151 = vector.shape_cast %150 : vector<1x8x128xf32> to vector<8x128xf32>
    %cst_58 = arith.constant dense<0.000000e+00> : vector<8x128xf32>
    %152 = tpu.matmul %146, %9, %cst_58 {dimension_numbers = #tpu.dot_dimension_numbers<[1], [0], [0], [1], [0, 0, 1, 1], [], []>, precision = #tpu.contract_precision<fp32>} : vector<8x32xf32>, vector<32x128xf32>, vector<8x128xf32> -> vector<8x128xf32>
    %153 = arith.addf %151, %152 : vector<8x128xf32>
    %154 = vector.extract_strided_slice %153 {offsets = [0, 0], sizes = [8, 96], strides = [1, 1]} : vector<8x128xf32> to vector<8x96xf32>
    %155 = arith.negf %154 : vector<8x96xf32>
    %156 = math.exp %155 : vector<8x96xf32>
    %cst_59 = arith.constant 1.000000e+00 : f32
    %157 = vector.broadcast %cst_59 : f32 to vector<8x96xf32>
    %158 = arith.addf %157, %156 : vector<8x96xf32>
    %159 = arith.divf %157, %158 : vector<8x96xf32>
    %160 = vector.extract_strided_slice %153 {offsets = [0, 96], sizes = [8, 32], strides = [1, 1]} : vector<8x128xf32> to vector<8x32xf32>
    %161 = math.tanh %160 : vector<8x32xf32>
    %162 = vector.extract_strided_slice %159 {offsets = [0, 0], sizes = [8, 32], strides = [1, 1]} : vector<8x96xf32> to vector<8x32xf32>
    %163 = vector.extract_strided_slice %159 {offsets = [0, 32], sizes = [8, 32], strides = [1, 1]} : vector<8x96xf32> to vector<8x32xf32>
    %164 = vector.extract_strided_slice %159 {offsets = [0, 64], sizes = [8, 32], strides = [1, 1]} : vector<8x96xf32> to vector<8x32xf32>
    %165 = arith.mulf %163, %144 : vector<8x32xf32>
    %166 = arith.mulf %162, %161 : vector<8x32xf32>
    %167 = arith.addf %165, %166 : vector<8x32xf32>
    %168 = math.tanh %167 : vector<8x32xf32>
    %169 = arith.mulf %164, %168 : vector<8x32xf32>
    %c6_60 = arith.constant 6 : index
    %c0_61 = arith.constant 0 : index
    %c0_62 = arith.constant 0 : index
    %170 = vector.load %arg11[%c6_60, %c0_61, %c0_62] : memref<8x8x32xf32, #tpu.memory_space<vmem>>, vector<1x8x32xf32>
    %171 = vector.shape_cast %170 : vector<1x8x32xf32> to vector<8x32xf32>
    %172 = vector.shape_cast %169 : vector<8x32xf32> to vector<1x8x32xf32>
    tpu.vector_store %arg11[%c6_60, %c0_61, %c0_62], %172 {strides = array<i32>} : memref<8x8x32xf32, #tpu.memory_space<vmem>>, vector<1x8x32xf32>,
    %c7 = arith.constant 7 : index
    %c0_63 = arith.constant 0 : index
    %c0_64 = arith.constant 0 : index
    %173 = vector.load %arg10[%c7, %c0_63, %c0_64] : memref<8x8x128xf32, #tpu.memory_space<vmem>>, vector<1x8x128xf32>
    %174 = vector.shape_cast %173 : vector<1x8x128xf32> to vector<8x128xf32>
    %cst_65 = arith.constant dense<0.000000e+00> : vector<8x128xf32>
    %175 = tpu.matmul %169, %9, %cst_65 {dimension_numbers = #tpu.dot_dimension_numbers<[1], [0], [0], [1], [0, 0, 1, 1], [], []>, precision = #tpu.contract_precision<fp32>} : vector<8x32xf32>, vector<32x128xf32>, vector<8x128xf32> -> vector<8x128xf32>
    %176 = arith.addf %174, %175 : vector<8x128xf32>
    %177 = vector.extract_strided_slice %176 {offsets = [0, 0], sizes = [8, 96], strides = [1, 1]} : vector<8x128xf32> to vector<8x96xf32>
    %178 = arith.negf %177 : vector<8x96xf32>
    %179 = math.exp %178 : vector<8x96xf32>
    %cst_66 = arith.constant 1.000000e+00 : f32
    %180 = vector.broadcast %cst_66 : f32 to vector<8x96xf32>
    %181 = arith.addf %180, %179 : vector<8x96xf32>
    %182 = arith.divf %180, %181 : vector<8x96xf32>
    %183 = vector.extract_strided_slice %176 {offsets = [0, 96], sizes = [8, 32], strides = [1, 1]} : vector<8x128xf32> to vector<8x32xf32>
    %184 = math.tanh %183 : vector<8x32xf32>
    %185 = vector.extract_strided_slice %182 {offsets = [0, 0], sizes = [8, 32], strides = [1, 1]} : vector<8x96xf32> to vector<8x32xf32>
    %186 = vector.extract_strided_slice %182 {offsets = [0, 32], sizes = [8, 32], strides = [1, 1]} : vector<8x96xf32> to vector<8x32xf32>
    %187 = vector.extract_strided_slice %182 {offsets = [0, 64], sizes = [8, 32], strides = [1, 1]} : vector<8x96xf32> to vector<8x32xf32>
    %188 = arith.mulf %186, %167 : vector<8x32xf32>
    %189 = arith.mulf %185, %184 : vector<8x32xf32>
    %190 = arith.addf %188, %189 : vector<8x32xf32>
    %191 = math.tanh %190 : vector<8x32xf32>
    %192 = arith.mulf %187, %191 : vector<8x32xf32>
    %c7_67 = arith.constant 7 : index
    %c0_68 = arith.constant 0 : index
    %c0_69 = arith.constant 0 : index
    %193 = vector.load %arg11[%c7_67, %c0_68, %c0_69] : memref<8x8x32xf32, #tpu.memory_space<vmem>>, vector<1x8x32xf32>
    %194 = vector.shape_cast %193 : vector<1x8x32xf32> to vector<8x32xf32>
    %195 = vector.shape_cast %192 : vector<8x32xf32> to vector<1x8x32xf32>
    tpu.vector_store %arg11[%c7_67, %c0_68, %c0_69], %195 {strides = array<i32>} : memref<8x8x32xf32, #tpu.memory_space<vmem>>, vector<1x8x32xf32>,
    %c0_70 = arith.constant 0 : index
    %c0_71 = arith.constant 0 : index
    %c0_72 = arith.constant 0 : index
    %196 = vector.load %arg11[%c0_70, %c0_71, %c0_72] : memref<8x8x32xf32, #tpu.memory_space<vmem>>, vector<8x8x32xf32>
    %197 = vector.shape_cast %196 : vector<8x8x32xf32> to vector<64x32xf32>
    %c0_73 = arith.constant 0 : index
    %c0_74 = arith.constant 0 : index
    %198 = vector.load %arg4[%c0_73, %c0_74] : memref<32x128xf32, #tpu.memory_space<vmem>>, vector<32x128xf32>
    %cst_75 = arith.constant dense<0.000000e+00> : vector<64x128xf32>
    %199 = tpu.matmul %197, %198, %cst_75 {dimension_numbers = #tpu.dot_dimension_numbers<[1], [0], [0], [1], [0, 0, 1, 1], [], []>, precision = #tpu.contract_precision<fp32>} : vector<64x32xf32>, vector<32x128xf32>, vector<64x128xf32> -> vector<64x128xf32>
    %c0_76 = arith.constant 0 : index
    %c0_77 = arith.constant 0 : index
    %200 = vector.load %arg6[%c0_76, %c0_77] : memref<1x128xf32, #tpu.memory_space<vmem>>, vector<1x128xf32>
    %201 = vector.broadcast %200 : vector<1x128xf32> to vector<64x128xf32>
    %202 = arith.addf %199, %201 : vector<64x128xf32>
    %203 = vector.shape_cast %202 : vector<64x128xf32> to vector<8x8x128xf32>
    %c0_78 = arith.constant 0 : index
    %c0_79 = arith.constant 0 : index
    %c0_80 = arith.constant 0 : index
    %204 = vector.load %arg10[%c0_78, %c0_79, %c0_80] : memref<8x8x128xf32, #tpu.memory_space<vmem>>, vector<8x8x128xf32>
    tpu.vector_store %arg10[%c0_78, %c0_79, %c0_80], %203 {strides = array<i32>} : memref<8x8x128xf32, #tpu.memory_space<vmem>>, vector<8x8x128xf32>,
    %c0_81 = arith.constant 0 : index
    %c0_82 = arith.constant 0 : index
    %205 = vector.load %arg5[%c0_81, %c0_82] : memref<32x128xf32, #tpu.memory_space<vmem>>, vector<32x128xf32>
    %cst_83 = arith.constant 0.000000e+00 : f32
    %206 = vector.broadcast %cst_83 : f32 to vector<8x32xf32>
    %cst_84 = arith.constant 0.000000e+00 : f32
    %207 = vector.broadcast %cst_84 : f32 to vector<8x32xf32>
    %c0_85 = arith.constant 0 : index
    %c0_86 = arith.constant 0 : index
    %c0_87 = arith.constant 0 : index
    %208 = vector.load %arg10[%c0_85, %c0_86, %c0_87] : memref<8x8x128xf32, #tpu.memory_space<vmem>>, vector<1x8x128xf32>
    %209 = vector.shape_cast %208 : vector<1x8x128xf32> to vector<8x128xf32>
    %cst_88 = arith.constant dense<0.000000e+00> : vector<8x128xf32>
    %210 = tpu.matmul %206, %205, %cst_88 {dimension_numbers = #tpu.dot_dimension_numbers<[1], [0], [0], [1], [0, 0, 1, 1], [], []>, precision = #tpu.contract_precision<fp32>} : vector<8x32xf32>, vector<32x128xf32>, vector<8x128xf32> -> vector<8x128xf32>
    %211 = arith.addf %209, %210 : vector<8x128xf32>
    %212 = vector.extract_strided_slice %211 {offsets = [0, 0], sizes = [8, 96], strides = [1, 1]} : vector<8x128xf32> to vector<8x96xf32>
    %213 = arith.negf %212 : vector<8x96xf32>
    %214 = math.exp %213 : vector<8x96xf32>
    %cst_89 = arith.constant 1.000000e+00 : f32
    %215 = vector.broadcast %cst_89 : f32 to vector<8x96xf32>
    %216 = arith.addf %215, %214 : vector<8x96xf32>
    %217 = arith.divf %215, %216 : vector<8x96xf32>
    %218 = vector.extract_strided_slice %211 {offsets = [0, 96], sizes = [8, 32], strides = [1, 1]} : vector<8x128xf32> to vector<8x32xf32>
    %219 = math.tanh %218 : vector<8x32xf32>
    %220 = vector.extract_strided_slice %217 {offsets = [0, 0], sizes = [8, 32], strides = [1, 1]} : vector<8x96xf32> to vector<8x32xf32>
    %221 = vector.extract_strided_slice %217 {offsets = [0, 32], sizes = [8, 32], strides = [1, 1]} : vector<8x96xf32> to vector<8x32xf32>
    %222 = vector.extract_strided_slice %217 {offsets = [0, 64], sizes = [8, 32], strides = [1, 1]} : vector<8x96xf32> to vector<8x32xf32>
    %223 = arith.mulf %221, %207 : vector<8x32xf32>
    %224 = arith.mulf %220, %219 : vector<8x32xf32>
    %225 = arith.addf %223, %224 : vector<8x32xf32>
    %226 = math.tanh %225 : vector<8x32xf32>
    %227 = arith.mulf %222, %226 : vector<8x32xf32>
    %c1_90 = arith.constant 1 : index
    %c0_91 = arith.constant 0 : index
    %c0_92 = arith.constant 0 : index
    %228 = vector.load %arg10[%c1_90, %c0_91, %c0_92] : memref<8x8x128xf32, #tpu.memory_space<vmem>>, vector<1x8x128xf32>
    %229 = vector.shape_cast %228 : vector<1x8x128xf32> to vector<8x128xf32>
    %cst_93 = arith.constant dense<0.000000e+00> : vector<8x128xf32>
    %230 = tpu.matmul %227, %205, %cst_93 {dimension_numbers = #tpu.dot_dimension_numbers<[1], [0], [0], [1], [0, 0, 1, 1], [], []>, precision = #tpu.contract_precision<fp32>} : vector<8x32xf32>, vector<32x128xf32>, vector<8x128xf32> -> vector<8x128xf32>
    %231 = arith.addf %229, %230 : vector<8x128xf32>
    %232 = vector.extract_strided_slice %231 {offsets = [0, 0], sizes = [8, 96], strides = [1, 1]} : vector<8x128xf32> to vector<8x96xf32>
    %233 = arith.negf %232 : vector<8x96xf32>
    %234 = math.exp %233 : vector<8x96xf32>
    %cst_94 = arith.constant 1.000000e+00 : f32
    %235 = vector.broadcast %cst_94 : f32 to vector<8x96xf32>
    %236 = arith.addf %235, %234 : vector<8x96xf32>
    %237 = arith.divf %235, %236 : vector<8x96xf32>
    %238 = vector.extract_strided_slice %231 {offsets = [0, 96], sizes = [8, 32], strides = [1, 1]} : vector<8x128xf32> to vector<8x32xf32>
    %239 = math.tanh %238 : vector<8x32xf32>
    %240 = vector.extract_strided_slice %237 {offsets = [0, 0], sizes = [8, 32], strides = [1, 1]} : vector<8x96xf32> to vector<8x32xf32>
    %241 = vector.extract_strided_slice %237 {offsets = [0, 32], sizes = [8, 32], strides = [1, 1]} : vector<8x96xf32> to vector<8x32xf32>
    %242 = vector.extract_strided_slice %237 {offsets = [0, 64], sizes = [8, 32], strides = [1, 1]} : vector<8x96xf32> to vector<8x32xf32>
    %243 = arith.mulf %241, %225 : vector<8x32xf32>
    %244 = arith.mulf %240, %239 : vector<8x32xf32>
    %245 = arith.addf %243, %244 : vector<8x32xf32>
    %246 = math.tanh %245 : vector<8x32xf32>
    %247 = arith.mulf %242, %246 : vector<8x32xf32>
    %c2_95 = arith.constant 2 : index
    %c0_96 = arith.constant 0 : index
    %c0_97 = arith.constant 0 : index
    %248 = vector.load %arg10[%c2_95, %c0_96, %c0_97] : memref<8x8x128xf32, #tpu.memory_space<vmem>>, vector<1x8x128xf32>
    %249 = vector.shape_cast %248 : vector<1x8x128xf32> to vector<8x128xf32>
    %cst_98 = arith.constant dense<0.000000e+00> : vector<8x128xf32>
    %250 = tpu.matmul %247, %205, %cst_98 {dimension_numbers = #tpu.dot_dimension_numbers<[1], [0], [0], [1], [0, 0, 1, 1], [], []>, precision = #tpu.contract_precision<fp32>} : vector<8x32xf32>, vector<32x128xf32>, vector<8x128xf32> -> vector<8x128xf32>
    %251 = arith.addf %249, %250 : vector<8x128xf32>
    %252 = vector.extract_strided_slice %251 {offsets = [0, 0], sizes = [8, 96], strides = [1, 1]} : vector<8x128xf32> to vector<8x96xf32>
    %253 = arith.negf %252 : vector<8x96xf32>
    %254 = math.exp %253 : vector<8x96xf32>
    %cst_99 = arith.constant 1.000000e+00 : f32
    %255 = vector.broadcast %cst_99 : f32 to vector<8x96xf32>
    %256 = arith.addf %255, %254 : vector<8x96xf32>
    %257 = arith.divf %255, %256 : vector<8x96xf32>
    %258 = vector.extract_strided_slice %251 {offsets = [0, 96], sizes = [8, 32], strides = [1, 1]} : vector<8x128xf32> to vector<8x32xf32>
    %259 = math.tanh %258 : vector<8x32xf32>
    %260 = vector.extract_strided_slice %257 {offsets = [0, 0], sizes = [8, 32], strides = [1, 1]} : vector<8x96xf32> to vector<8x32xf32>
    %261 = vector.extract_strided_slice %257 {offsets = [0, 32], sizes = [8, 32], strides = [1, 1]} : vector<8x96xf32> to vector<8x32xf32>
    %262 = vector.extract_strided_slice %257 {offsets = [0, 64], sizes = [8, 32], strides = [1, 1]} : vector<8x96xf32> to vector<8x32xf32>
    %263 = arith.mulf %261, %245 : vector<8x32xf32>
    %264 = arith.mulf %260, %259 : vector<8x32xf32>
    %265 = arith.addf %263, %264 : vector<8x32xf32>
    %266 = math.tanh %265 : vector<8x32xf32>
    %267 = arith.mulf %262, %266 : vector<8x32xf32>
    %c3_100 = arith.constant 3 : index
    %c0_101 = arith.constant 0 : index
    %c0_102 = arith.constant 0 : index
    %268 = vector.load %arg10[%c3_100, %c0_101, %c0_102] : memref<8x8x128xf32, #tpu.memory_space<vmem>>, vector<1x8x128xf32>
    %269 = vector.shape_cast %268 : vector<1x8x128xf32> to vector<8x128xf32>
    %cst_103 = arith.constant dense<0.000000e+00> : vector<8x128xf32>
    %270 = tpu.matmul %267, %205, %cst_103 {dimension_numbers = #tpu.dot_dimension_numbers<[1], [0], [0], [1], [0, 0, 1, 1], [], []>, precision = #tpu.contract_precision<fp32>} : vector<8x32xf32>, vector<32x128xf32>, vector<8x128xf32> -> vector<8x128xf32>
    %271 = arith.addf %269, %270 : vector<8x128xf32>
    %272 = vector.extract_strided_slice %271 {offsets = [0, 0], sizes = [8, 96], strides = [1, 1]} : vector<8x128xf32> to vector<8x96xf32>
    %273 = arith.negf %272 : vector<8x96xf32>
    %274 = math.exp %273 : vector<8x96xf32>
    %cst_104 = arith.constant 1.000000e+00 : f32
    %275 = vector.broadcast %cst_104 : f32 to vector<8x96xf32>
    %276 = arith.addf %275, %274 : vector<8x96xf32>
    %277 = arith.divf %275, %276 : vector<8x96xf32>
    %278 = vector.extract_strided_slice %271 {offsets = [0, 96], sizes = [8, 32], strides = [1, 1]} : vector<8x128xf32> to vector<8x32xf32>
    %279 = math.tanh %278 : vector<8x32xf32>
    %280 = vector.extract_strided_slice %277 {offsets = [0, 0], sizes = [8, 32], strides = [1, 1]} : vector<8x96xf32> to vector<8x32xf32>
    %281 = vector.extract_strided_slice %277 {offsets = [0, 32], sizes = [8, 32], strides = [1, 1]} : vector<8x96xf32> to vector<8x32xf32>
    %282 = vector.extract_strided_slice %277 {offsets = [0, 64], sizes = [8, 32], strides = [1, 1]} : vector<8x96xf32> to vector<8x32xf32>
    %283 = arith.mulf %281, %265 : vector<8x32xf32>
    %284 = arith.mulf %280, %279 : vector<8x32xf32>
    %285 = arith.addf %283, %284 : vector<8x32xf32>
    %286 = math.tanh %285 : vector<8x32xf32>
    %287 = arith.mulf %282, %286 : vector<8x32xf32>
    %c4_105 = arith.constant 4 : index
    %c0_106 = arith.constant 0 : index
    %c0_107 = arith.constant 0 : index
    %288 = vector.load %arg10[%c4_105, %c0_106, %c0_107] : memref<8x8x128xf32, #tpu.memory_space<vmem>>, vector<1x8x128xf32>
    %289 = vector.shape_cast %288 : vector<1x8x128xf32> to vector<8x128xf32>
    %cst_108 = arith.constant dense<0.000000e+00> : vector<8x128xf32>
    %290 = tpu.matmul %287, %205, %cst_108 {dimension_numbers = #tpu.dot_dimension_numbers<[1], [0], [0], [1], [0, 0, 1, 1], [], []>, precision = #tpu.contract_precision<fp32>} : vector<8x32xf32>, vector<32x128xf32>, vector<8x128xf32> -> vector<8x128xf32>
    %291 = arith.addf %289, %290 : vector<8x128xf32>
    %292 = vector.extract_strided_slice %291 {offsets = [0, 0], sizes = [8, 96], strides = [1, 1]} : vector<8x128xf32> to vector<8x96xf32>
    %293 = arith.negf %292 : vector<8x96xf32>
    %294 = math.exp %293 : vector<8x96xf32>
    %cst_109 = arith.constant 1.000000e+00 : f32
    %295 = vector.broadcast %cst_109 : f32 to vector<8x96xf32>
    %296 = arith.addf %295, %294 : vector<8x96xf32>
    %297 = arith.divf %295, %296 : vector<8x96xf32>
    %298 = vector.extract_strided_slice %291 {offsets = [0, 96], sizes = [8, 32], strides = [1, 1]} : vector<8x128xf32> to vector<8x32xf32>
    %299 = math.tanh %298 : vector<8x32xf32>
    %300 = vector.extract_strided_slice %297 {offsets = [0, 0], sizes = [8, 32], strides = [1, 1]} : vector<8x96xf32> to vector<8x32xf32>
    %301 = vector.extract_strided_slice %297 {offsets = [0, 32], sizes = [8, 32], strides = [1, 1]} : vector<8x96xf32> to vector<8x32xf32>
    %302 = vector.extract_strided_slice %297 {offsets = [0, 64], sizes = [8, 32], strides = [1, 1]} : vector<8x96xf32> to vector<8x32xf32>
    %303 = arith.mulf %301, %285 : vector<8x32xf32>
    %304 = arith.mulf %300, %299 : vector<8x32xf32>
    %305 = arith.addf %303, %304 : vector<8x32xf32>
    %306 = math.tanh %305 : vector<8x32xf32>
    %307 = arith.mulf %302, %306 : vector<8x32xf32>
    %c5_110 = arith.constant 5 : index
    %c0_111 = arith.constant 0 : index
    %c0_112 = arith.constant 0 : index
    %308 = vector.load %arg10[%c5_110, %c0_111, %c0_112] : memref<8x8x128xf32, #tpu.memory_space<vmem>>, vector<1x8x128xf32>
    %309 = vector.shape_cast %308 : vector<1x8x128xf32> to vector<8x128xf32>
    %cst_113 = arith.constant dense<0.000000e+00> : vector<8x128xf32>
    %310 = tpu.matmul %307, %205, %cst_113 {dimension_numbers = #tpu.dot_dimension_numbers<[1], [0], [0], [1], [0, 0, 1, 1], [], []>, precision = #tpu.contract_precision<fp32>} : vector<8x32xf32>, vector<32x128xf32>, vector<8x128xf32> -> vector<8x128xf32>
    %311 = arith.addf %309, %310 : vector<8x128xf32>
    %312 = vector.extract_strided_slice %311 {offsets = [0, 0], sizes = [8, 96], strides = [1, 1]} : vector<8x128xf32> to vector<8x96xf32>
    %313 = arith.negf %312 : vector<8x96xf32>
    %314 = math.exp %313 : vector<8x96xf32>
    %cst_114 = arith.constant 1.000000e+00 : f32
    %315 = vector.broadcast %cst_114 : f32 to vector<8x96xf32>
    %316 = arith.addf %315, %314 : vector<8x96xf32>
    %317 = arith.divf %315, %316 : vector<8x96xf32>
    %318 = vector.extract_strided_slice %311 {offsets = [0, 96], sizes = [8, 32], strides = [1, 1]} : vector<8x128xf32> to vector<8x32xf32>
    %319 = math.tanh %318 : vector<8x32xf32>
    %320 = vector.extract_strided_slice %317 {offsets = [0, 0], sizes = [8, 32], strides = [1, 1]} : vector<8x96xf32> to vector<8x32xf32>
    %321 = vector.extract_strided_slice %317 {offsets = [0, 32], sizes = [8, 32], strides = [1, 1]} : vector<8x96xf32> to vector<8x32xf32>
    %322 = vector.extract_strided_slice %317 {offsets = [0, 64], sizes = [8, 32], strides = [1, 1]} : vector<8x96xf32> to vector<8x32xf32>
    %323 = arith.mulf %321, %305 : vector<8x32xf32>
    %324 = arith.mulf %320, %319 : vector<8x32xf32>
    %325 = arith.addf %323, %324 : vector<8x32xf32>
    %326 = math.tanh %325 : vector<8x32xf32>
    %327 = arith.mulf %322, %326 : vector<8x32xf32>
    %c6_115 = arith.constant 6 : index
    %c0_116 = arith.constant 0 : index
    %c0_117 = arith.constant 0 : index
    %328 = vector.load %arg10[%c6_115, %c0_116, %c0_117] : memref<8x8x128xf32, #tpu.memory_space<vmem>>, vector<1x8x128xf32>
    %329 = vector.shape_cast %328 : vector<1x8x128xf32> to vector<8x128xf32>
    %cst_118 = arith.constant dense<0.000000e+00> : vector<8x128xf32>
    %330 = tpu.matmul %327, %205, %cst_118 {dimension_numbers = #tpu.dot_dimension_numbers<[1], [0], [0], [1], [0, 0, 1, 1], [], []>, precision = #tpu.contract_precision<fp32>} : vector<8x32xf32>, vector<32x128xf32>, vector<8x128xf32> -> vector<8x128xf32>
    %331 = arith.addf %329, %330 : vector<8x128xf32>
    %332 = vector.extract_strided_slice %331 {offsets = [0, 0], sizes = [8, 96], strides = [1, 1]} : vector<8x128xf32> to vector<8x96xf32>
    %333 = arith.negf %332 : vector<8x96xf32>
    %334 = math.exp %333 : vector<8x96xf32>
    %cst_119 = arith.constant 1.000000e+00 : f32
    %335 = vector.broadcast %cst_119 : f32 to vector<8x96xf32>
    %336 = arith.addf %335, %334 : vector<8x96xf32>
    %337 = arith.divf %335, %336 : vector<8x96xf32>
    %338 = vector.extract_strided_slice %331 {offsets = [0, 96], sizes = [8, 32], strides = [1, 1]} : vector<8x128xf32> to vector<8x32xf32>
    %339 = math.tanh %338 : vector<8x32xf32>
    %340 = vector.extract_strided_slice %337 {offsets = [0, 0], sizes = [8, 32], strides = [1, 1]} : vector<8x96xf32> to vector<8x32xf32>
    %341 = vector.extract_strided_slice %337 {offsets = [0, 32], sizes = [8, 32], strides = [1, 1]} : vector<8x96xf32> to vector<8x32xf32>
    %342 = vector.extract_strided_slice %337 {offsets = [0, 64], sizes = [8, 32], strides = [1, 1]} : vector<8x96xf32> to vector<8x32xf32>
    %343 = arith.mulf %341, %325 : vector<8x32xf32>
    %344 = arith.mulf %340, %339 : vector<8x32xf32>
    %345 = arith.addf %343, %344 : vector<8x32xf32>
    %346 = math.tanh %345 : vector<8x32xf32>
    %347 = arith.mulf %342, %346 : vector<8x32xf32>
    %c7_120 = arith.constant 7 : index
    %c0_121 = arith.constant 0 : index
    %c0_122 = arith.constant 0 : index
    %348 = vector.load %arg10[%c7_120, %c0_121, %c0_122] : memref<8x8x128xf32, #tpu.memory_space<vmem>>, vector<1x8x128xf32>
    %349 = vector.shape_cast %348 : vector<1x8x128xf32> to vector<8x128xf32>
    %cst_123 = arith.constant dense<0.000000e+00> : vector<8x128xf32>
    %350 = tpu.matmul %347, %205, %cst_123 {dimension_numbers = #tpu.dot_dimension_numbers<[1], [0], [0], [1], [0, 0, 1, 1], [], []>, precision = #tpu.contract_precision<fp32>} : vector<8x32xf32>, vector<32x128xf32>, vector<8x128xf32> -> vector<8x128xf32>
    %351 = arith.addf %349, %350 : vector<8x128xf32>
    %352 = vector.extract_strided_slice %351 {offsets = [0, 0], sizes = [8, 96], strides = [1, 1]} : vector<8x128xf32> to vector<8x96xf32>
    %353 = arith.negf %352 : vector<8x96xf32>
    %354 = math.exp %353 : vector<8x96xf32>
    %cst_124 = arith.constant 1.000000e+00 : f32
    %355 = vector.broadcast %cst_124 : f32 to vector<8x96xf32>
    %356 = arith.addf %355, %354 : vector<8x96xf32>
    %357 = arith.divf %355, %356 : vector<8x96xf32>
    %358 = vector.extract_strided_slice %351 {offsets = [0, 96], sizes = [8, 32], strides = [1, 1]} : vector<8x128xf32> to vector<8x32xf32>
    %359 = math.tanh %358 : vector<8x32xf32>
    %360 = vector.extract_strided_slice %357 {offsets = [0, 0], sizes = [8, 32], strides = [1, 1]} : vector<8x96xf32> to vector<8x32xf32>
    %361 = vector.extract_strided_slice %357 {offsets = [0, 32], sizes = [8, 32], strides = [1, 1]} : vector<8x96xf32> to vector<8x32xf32>
    %362 = vector.extract_strided_slice %357 {offsets = [0, 64], sizes = [8, 32], strides = [1, 1]} : vector<8x96xf32> to vector<8x32xf32>
    %363 = arith.mulf %361, %345 : vector<8x32xf32>
    %364 = arith.mulf %360, %359 : vector<8x32xf32>
    %365 = arith.addf %363, %364 : vector<8x32xf32>
    %366 = math.tanh %365 : vector<8x32xf32>
    %367 = arith.mulf %362, %366 : vector<8x32xf32>
    %c0_125 = arith.constant 0 : index
    %c0_126 = arith.constant 0 : index
    %368 = vector.load %arg7[%c0_125, %c0_126] : memref<32x10xf32, #tpu.memory_space<vmem>>, vector<32x10xf32>
    %cst_127 = arith.constant dense<0.000000e+00> : vector<8x10xf32>
    %369 = tpu.matmul %367, %368, %cst_127 {dimension_numbers = #tpu.dot_dimension_numbers<[1], [0], [0], [1], [0, 0, 1, 1], [], []>, precision = #tpu.contract_precision<fp32>} : vector<8x32xf32>, vector<32x10xf32>, vector<8x10xf32> -> vector<8x10xf32>
    %c0_128 = arith.constant 0 : index
    %c0_129 = arith.constant 0 : index
    %370 = vector.load %arg8[%c0_128, %c0_129] : memref<1x10xf32, #tpu.memory_space<vmem>>, vector<1x10xf32>
    %371 = vector.broadcast %370 : vector<1x10xf32> to vector<8x10xf32>
    %372 = arith.addf %369, %371 : vector<8x10xf32>
    %c0_130 = arith.constant 0 : index
    %c0_131 = arith.constant 0 : index
    %373 = vector.load %arg9[%c0_130, %c0_131] : memref<8x10xf32, #tpu.memory_space<vmem>>, vector<8x10xf32>
    tpu.vector_store %arg9[%c0_130, %c0_131], %372 {strides = array<i32>} : memref<8x10xf32, #tpu.memory_space<vmem>>, vector<8x10xf32>,
    return
  }
}

</mosaic_0001>

<bundles_post_ra>
// kernel: rnn_forward_pallas.1
= control target key start
LH: loop header
LB: loop body
LE: loop exit
PB: predicated region body
PF: predicated region fallthrough
CT: control target
= control target key end

     0   :  { %vm49_vm0 = vcmask 130048   ;;  %vm13563_vm1 = vmmov 0   ;;  %s13566_s15 = smov 64   ;;  %vm847_vm2 = vcmask 261120   ;;  %vm10471_vm3 = vcmask 80896   ;;  %s14947_s1 = inlined_call_operand.vmem [shape: f32[16,128], index: 1, kind: input, shape index: {}]   ;;  %s14948_s0 = inlined_call_operand.vmem [shape: f32[8,8,16], index: 0, kind: input, shape index: {}]   ;;  %s14949_s2 = inlined_call_operand.vmem [shape: f32[32,128], index: 2, kind: input, shape index: {}]   ;;  %s14950_s3 = inlined_call_operand.vmem [shape: f32[1,128], index: 3, kind: input, shape index: {}]   ;;  %s14951_s4 = inlined_call_operand.vmem [shape: f32[32,128], index: 4, kind: input, shape index: {}]   ;;  %s14952_s5 = inlined_call_operand.vmem [shape: f32[32,128], index: 5, kind: input, shape index: {}]   ;;  %s14953_s6 = inlined_call_operand.vmem [shape: f32[1,128], index: 6, kind: input, shape index: {}]   ;;  %s14954_s7 = inlined_call_operand.vmem [shape: f32[32,10], index: 7, kind: input, shape index: {}]   ;;  %s14955_s8 = inlined_call_operand.vmem [shape: f32[1,10], index: 8, kind: input, shape index: {}]   ;;  %s14956_s9 = inlined_call_operand.vmem [shape: f32[8,10], index: 9, kind: output, shape index: {}]  }
   0x1   :  { %v40_v0 = vld [vmem:[%s14947_s1] sm:$0xff]  ;;  %v41_v1 = vld [vmem:[%s14947_s1 + $0x8] sm:$0xff]  ;;  %v34_v7 = vld [vmem:[%s14948_s0 + $0x10] sm:$0xff] }
   0x2   :  { %v32_v2 = vld [vmem:[%s14948_s0] sm:$0xff]  ;;  %v75_v3 = vand.u32 4294901760, %v40_v0  ;;  %v78_v4 = vand.u32 4294901760, %v41_v1  ;;  %v33_v6 = vld [vmem:[%s14948_s0 + $0x8] sm:$0xff]  ;;  %v35_v8 = vld [vmem:[%s14948_s0 + $0x18] sm:$0xff]  ;;  %v57_v11 = vsel %vm49_vm0, %v34_v7, 0 }
   0x3   :  { %v51_v5 = vsel %vm49_vm0, %v32_v2, 0  ;;  %v54_v10 = vsel %vm49_vm0, %v33_v6, 0  ;;  %v60_v12 = vsel %vm49_vm0, %v35_v8, 0  ;;  %v36_v13 = vld [vmem:[%s14948_s0 + $0x20] sm:$0xff]  ;;  %v13655_v19 = vand.u32 4294901760, %v57_v11  ;;  %v37_v22 = vld [vmem:[%s14948_s0 + $0x28] sm:$0xff] }
   0x4   :  { %v13636_v9 = vand.u32 4294901760, %v51_v5  ;;  %v13644_v14 = vpack.c.bf16 %v78_v4, %v75_v3  ;;  %v13646_v15 = vand.u32 4294901760, %v54_v10  ;;  %v13648_v16 = vsub.f32 %v40_v0, %v75_v3  ;;  %v38_v38 = vld [vmem:[%s14948_s0 + $0x30] sm:$0xff]  ;;  %v39_v47 = vld [vmem:[%s14948_s0 + $0x38] sm:$0xff]  ;;  %v842_v48 = vld [vmem:[%s14949_s2] sm:$0xff] }
   0x5   :  { %v13650_v17 = vsub.f32 %v41_v1, %v78_v4  ;;  %v13658_v20 = vand.u32 4294901760, %v60_v12  ;;  %v63_v21 = vsel %vm49_vm0, %v36_v13, 0  ;;  %v13673_v27 = vsub.f32 %v57_v11, %v13655_v19  ;;  %v843_v53 = vld [vmem:[%s14949_s2 + $0x8] sm:$0xff]  ;;  %v844_v2 = vld [vmem:[%s14949_s2 + $0x10] sm:$0xff]  ;;  %v845_v4 = vld [vmem:[%s14949_s2 + $0x18] sm:$0xff] }
   0x6   :  { %v13653_v18 = vsub.f32 %v51_v5, %v13636_v9  ;;  %11158 = vmatprep.mubr.f32.mxu0 %v13636_v9  ;;  %12477 = vmatprep.subr.bf16.mxu1 %v13644_v14  ;;  %v13666_v23 = vsub.f32 %v54_v10, %v13646_v15  ;;  %v224_v24 = vand.u32 4294901760, %v13648_v16  ;;  %v13678_v29 = vand.u32 4294901760, %v63_v21 }
   0x7   :  { %v231_v25 = vand.u32 4294901760, %v13650_v17  ;;  %12479 = vmatpush3.bf16.msra.mxu1 %v13644_v14  ;;  %v13676_v28 = vsub.f32 %v60_v12, %v13658_v20  ;;  %v66_v33 = vsel %vm49_vm0, %v37_v22, 0  ;;  %v163_v35 = vand.u32 4294901760, %v13673_v27 }
   0x8   :  { %v143_v26 = vand.u32 4294901760, %v13653_v18  ;;  %v153_v30 = vand.u32 4294901760, %v13666_v23  ;;  %v225_v31 = vsub.f32 %v13648_v16, %v224_v24  ;;  %v13694_v37 = vsub.f32 %v63_v21, %v13678_v29 }
   0x9   :  { %v232_v32 = vsub.f32 %v13650_v17, %v231_v25  ;;  %v173_v36 = vand.u32 4294901760, %v13676_v28  ;;  %v13702_v42 = vand.u32 4294901760, %v66_v33  ;;  %v164_v44 = vsub.f32 %v13673_v27, %v163_v35 }
   0xa   :  { %v144_v34 = vsub.f32 %v13653_v18, %v143_v26  ;;  %v154_v39 = vsub.f32 %v13666_v23, %v153_v30  ;;  %v226_v40 = vand.u32 4294901760, %v225_v31  ;;  %v183_v46 = vand.u32 4294901760, %v13694_v37 }
   0xb   :  { %v233_v41 = vand.u32 4294901760, %v232_v32  ;;  %v174_v45 = vsub.f32 %v13676_v28, %v173_v36  ;;  %v13718_v51 = vsub.f32 %v66_v33, %v13702_v42  ;;  %v69_v52 = vsel %vm49_vm0, %v38_v38, 0 }
   0xc   :  { %v145_v43 = vand.u32 4294901760, %v144_v34  ;;  %v155_v49 = vand.u32 4294901760, %v154_v39  ;;  %v165_v54 = vand.u32 4294901760, %v164_v44  ;;  %v12484_v55 = vpack.c.bf16 %v13650_v17, %v13648_v16 }
   0xd   :  { %v12480_v50 = vpack.c.bf16 %v233_v41, %v226_v40  ;;  %v184_v56 = vsub.f32 %v13694_v37, %v183_v46  ;;  %v13729_v57 = vand.u32 4294901760, %v69_v52  ;;  %v175_v58 = vand.u32 4294901760, %v174_v45 }
   0xe   :  { %11142 = vmatprep.mubr.f32.mxu1 %v145_v43  ;;  %v193_v59 = vand.u32 4294901760, %v13718_v51  ;;  %v72_v60 = vsel %vm49_vm0, %v39_v47, 0  ;;  %v852_v61 = vand.u32 4294901760, %v842_v48  ;;  %v855_v1 = vand.u32 4294901760, %v843_v53 }
   0xf   :  { %11143 = vmatmul.mubr.f32.vlgmr.msra.gmra.mrb[0].mxu1 %v155_v49  ;;  %12481 = vmatprep.subr.bf16.mxu0 %v12480_v50  ;;  %v185_v62 = vand.u32 4294901760, %v184_v56  ;;  %v13734_v63 = vsub.f32 %v69_v52, %v13729_v57  ;;  %v13736_v0 = vand.u32 4294901760, %v72_v60  ;;  %v13562_v7 = vmov 0.0|0.0  }
  0x10   :  { %13160 = vmatprep.subr.bf16.mxu1 %v12480_v50  ;;  %12483 = vmatpush3.bf16.msra.mxu0 %v12480_v50  ;;  %v194_v3 = vsub.f32 %v13718_v51, %v193_v59  ;;  %v858_v10 = vand.u32 4294901760, %v844_v2  ;;  %v13753_v11 = vsub.f32 %v842_v48, %v852_v61  ;;  %v861_v21 = vand.u32 4294901760, %v845_v4 }
  0x11   :  { %13161 = vmatpush3.bf16.msra.mxu1 %v12480_v50  ;;  %11145 = vmatprep.mubr.f32.mxu1 %v165_v54  ;;  %v203_v5 = vand.u32 4294901760, %v13734_v63  ;;  %v13749_v6 = vsub.f32 %v72_v60, %v13736_v0  ;;  %v13759_v22 = vsub.f32 %v843_v53, %v855_v1  ;;  %v12492_v41 = vpack.c.bf16 %v231_v25, %v224_v24 }
  0x12   :  { %12485 = vmatprep.subr.bf16.mxu0 %v12484_v55  ;;  %12500 = vmatprep.subr.bf16.mxu1 %v13562_v7  ;;  %v195_v8 = vand.u32 4294901760, %v194_v3  ;;  %v933_v33 = vand.u32 4294901760, %v13753_v11  ;;  %v13770_v39 = vsub.f32 %v844_v2, %v858_v10  ;;  %v13772_v40 = vsub.f32 %v845_v4, %v861_v21 }
  0x13   :  { %11146 = vmatmul.mubr.f32.gmra.mrb[2].mxu1 %v175_v58  ;;  %11159 = vmatmul.mubr.f32.vlgmr.msra.gmra.mrb[0].mxu0 %v13646_v15  ;;  %v204_v12 = vsub.f32 %v13734_v63, %v203_v5  ;;  %v213_v13 = vand.u32 4294901760, %v13749_v6  ;;  %v940_v38 = vand.u32 4294901760, %v13759_v22  ;;  %v13779_v43 = vpack.c.bf16 %v855_v1, %v852_v61 }
  0x14   :  { %12487 = vmatpush3.bf16.msra.mxu0 %v12484_v55  ;;  %11148 = vmatprep.mubr.f32.mxu1 %v185_v62  ;;  %v934_v44 = vsub.f32 %v13753_v11, %v933_v33  ;;  %v947_v17 = vand.u32 4294901760, %v13770_v39  ;;  %v954_v24 = vand.u32 4294901760, %v13772_v40  ;;  %v13794_v25 = vpack.c.bf16 %v861_v21, %v858_v10 }
  0x15   :  { %11161 = vmatprep.mubr.f32.mxu0 %v13655_v19  ;;  %12489 = vmatprep.subr.bf16.mxu0 %v13644_v14  ;;  %v205_v31 = vand.u32 4294901760, %v204_v12  ;;  %v214_v32 = vsub.f32 %v13749_v6, %v213_v13  ;;  %v941_v16 = vsub.f32 %v13759_v22, %v940_v38  ;;  %v13564_v54 = vmov 0.0  }
  0x16   :  { %v935_v45 = vand.u32 4294901760, %v934_v44  ;;  %v948_v48 = vsub.f32 %v13770_v39, %v947_v17  ;;  %v955_v49 = vsub.f32 %v13772_v40, %v954_v24  ;;  %v13830_v56 = vpack.c.bf16 %v13759_v22, %v13753_v11 }
  0x17   :  { %11149 = vmatmul.mubr.f32.gmra.mrb[4].mxu1 %v195_v8  ;;  %11162 = vmatmul.mubr.f32.gmra.mrb[2].mxu0 %v13658_v20  ;;  %v215_v34 = vand.u32 4294901760, %v214_v32  ;;  %v942_v47 = vand.u32 4294901760, %v941_v16 }
  0x18   :  { %11151 = vmatprep.mubr.f32.mxu1 %v205_v31  ;;  %11174 = vmatprep.mubr.f32.mxu0 %v13653_v18  ;;  %v949_v52 = vand.u32 4294901760, %v948_v48  ;;  %v956_v53 = vand.u32 4294901760, %v955_v49  ;;  %v13844_v18 = vpack.c.bf16 %v13772_v40, %v13770_v39 }
  0x19   :  { %v13810_v50 = vpack.c.bf16 %v942_v47, %v935_v45 }
  0x1a   :  { %v13820_v55 = vpack.c.bf16 %v956_v53, %v949_v52 }
  0x1b   :  { %11152 = vmatmul.mubr.f32.gmra.mrb[6].mxu1 %v215_v34  ;;  %11175 = vmatmul.mubr.f32.vlgmr.msra.gmra.mrb[0].mxu0 %v13666_v23  ;;  %v13870_v23 = vpack.c.bf16 %v940_v38, %v933_v33 }
  0x1c   :  { %12491 = vmatpush3.bf16.msra.mxu0 %v13644_v14  ;;  %11164 = vmatprep.mubr.f32.mxu1 %v13678_v29 }
  0x1d   :  { %11177 = vmatprep.mubr.f32.mxu0 %v13673_v27  ;;  %12493 = vmatprep.subr.bf16.mxu0 %v12492_v41 }
  0x1f   :  { %11165 = vmatmul.mubr.f32.vlgmr.msra.gmra.mrb[4].mxu1 %v13702_v42  ;;  %11178 = vmatmul.mubr.f32.gmra.mrb[2].mxu0 %v13676_v28 }
  0x20   :  { %12502 = vmatpush3.bf16.msra.mxu1 %v13779_v43  ;;  %11167 = vmatprep.mubr.f32.mxu1 %v13729_v57 }
  0x21   :  { %11180 = vmatprep.mubr.f32.mxu0 %v13694_v37  ;;  %12503 = vmatprep.subr.bf16.mxu1 %v13562_v7 }
  0x23   :  { %11168 = vmatmul.mubr.f32.gmra.mrb[6].mxu1 %v13736_v0  ;;  %11181 = vmatmul.mubr.f32.gmra.mrb[4].mxu0 %v13718_v51 }
  0x24   :  { %12505 = vmatpush3.bf16.msra.mxu1 %v13794_v25  ;;  %11183 = vmatprep.mubr.f32.mxu0 %v13734_v63 }
  0x25   :  { %11242 = vmatprep.mubr.msk.f32.mxu1 %vm13563_vm1, %v13564_v54  ;;  %12506 = vmatprep.subr.bf16.mxu1 %v13562_v7 }
  0x27   :  { %11184 = vmatmul.mubr.f32.gmra.mrb[6].mxu0 %v13749_v6  ;;  %11243 = vmatmul.mubr.f32.vlgmr.msra.gmra.mrb[8].mxu1 %v13564_v54 }
  0x28   :  { %12508 = vmatpush3.bf16.msra.mxu1 %v13810_v50  ;;  %11190 = vmatprep.mubr.f32.mxu0 %v143_v26 }
  0x29   :  { %12509 = vmatprep.subr.bf16.mxu1 %v13562_v7  ;;  %11253 = vmatprep.mubr.msk.f32.mxu1 %vm13563_vm1, %v13564_v54 }
  0x2b   :  { %11191 = vmatmul.mubr.f32.vlgmr.msra.gmra.mrb[0].mxu0 %v153_v30 }
  0x2c   :  { %12511 = vmatpush3.bf16.msra.mxu1 %v13820_v55  ;;  %12495 = vmatpush3.bf16.msra.mxu0 %v12492_v41 }
  0x2d   :  { %11193 = vmatprep.mubr.f32.mxu0 %v163_v35  ;;  %12512 = vmatprep.subr.bf16.mxu1 %v13562_v7 }
  0x2e   :  { %12497 = vmatprep.subr.bf16.mxu0 %v13644_v14 }
  0x2f   :  { %11194 = vmatmul.mubr.f32.gmra.mrb[2].mxu0 %v173_v36  ;;  %11254 = vmatmul.mubr.f32.vlgmr.msra.gmra.mrb[8].mxu1 %v13564_v54 }
  0x30   :  { %12514 = vmatpush3.bf16.msra.mxu1 %v13830_v56  ;;  %11196 = vmatprep.mubr.f32.mxu0 %v183_v46 }
  0x31   :  { %12515 = vmatprep.subr.bf16.mxu1 %v13562_v7  ;;  %11264 = vmatprep.mubr.msk.f32.mxu1 %vm13563_vm1, %v13564_v54 }
  0x33   :  { %11197 = vmatmul.mubr.f32.gmra.mrb[4].mxu0 %v193_v59 }
  0x34   :  { %12517 = vmatpush3.bf16.msra.mxu1 %v13844_v18  ;;  %11199 = vmatprep.mubr.f32.mxu0 %v203_v5 }
  0x35   :  { %12518 = vmatprep.subr.bf16.mxu1 %v13562_v7 }
  0x37   :  { %11200 = vmatmul.mubr.f32.gmra.mrb[6].mxu0 %v213_v13  ;;  %11265 = vmatmul.mubr.f32.vlgmr.msra.gmra.mrb[8].mxu1 %v13564_v54 }
  0x38   :  { %12520 = vmatpush3.bf16.msra.mxu1 %v13779_v43  ;;  %11206 = vmatprep.mubr.f32.mxu0 %v13636_v9 }
  0x39   :  { %12521 = vmatprep.subr.bf16.mxu1 %v13562_v7  ;;  %11275 = vmatprep.mubr.msk.f32.mxu1 %vm13563_vm1, %v13564_v54 }
  0x3b   :  { %11207 = vmatmul.mubr.f32.vlgmr.msra.gmra.mrb[0].mxu0 %v13646_v15 }
  0x3c   :  { %12523 = vmatpush3.bf16.msra.mxu1 %v13794_v25  ;;  %12499 = vmatpush3.bf16.msra.mxu0 %v13644_v14  ;;  %v13883_v14 = vpack.c.bf16 %v954_v24, %v947_v17 }
  0x3d   :  { %11209 = vmatprep.mubr.f32.mxu0 %v13655_v19  ;;  %12524 = vmatprep.subr.bf16.mxu1 %v13562_v7 }
  0x3e   :  { %12572 = vmatprep.subr.bf16.mxu0 %v13562_v7 }
  0x3f   :  { %11210 = vmatmul.mubr.f32.gmra.mrb[2].mxu0 %v13658_v20  ;;  %11276 = vmatmul.mubr.f32.vlgmr.msra.gmra.mrb[8].mxu1 %v13564_v54 }
  0x40   :  { %12526 = vmatpush3.bf16.msra.mxu1 %v13870_v23  ;;  %11212 = vmatprep.mubr.f32.mxu0 %v13678_v29 }
  0x41   :  { %12527 = vmatprep.subr.bf16.mxu1 %v13562_v7  ;;  %11286 = vmatprep.mubr.msk.f32.mxu1 %vm13563_vm1, %v13564_v54 }
  0x43   :  { %11213 = vmatmul.mubr.f32.gmra.mrb[4].mxu0 %v13702_v42 }
  0x44   :  { %12529 = vmatpush3.bf16.msra.mxu1 %v13883_v14  ;;  %11215 = vmatprep.mubr.f32.mxu0 %v13729_v57 }
  0x45   :  { %12530 = vmatprep.subr.bf16.mxu1 %v13562_v7 }
  0x47   :  { %11216 = vmatmul.mubr.f32.gmra.mrb[6].mxu0 %v13736_v0  ;;  %11287 = vmatmul.mubr.f32.vlgmr.msra.gmra.mrb[8].mxu1 %v13564_v54 }
  0x48   :  { %12532 = vmatpush3.bf16.msra.mxu1 %v13779_v43  ;;  %11222 = vmatprep.mubr.f32.mxu0 %v13636_v9  ;;  %v10477_v9 = vld [vmem:[%s14950_s3] ss:$0 sm:$0xff]  ;;  %s13565_s3 = smov 32  }
  0x49   :  { %12533 = vmatprep.subr.bf16.mxu1 %v13562_v7  ;;  %11297 = vmatprep.mubr.msk.f32.mxu1 %vm13563_vm1, %v13564_v54 }
  0x4b   :  { %11223 = vmatmul.mubr.f32.vlgmr.msra.gmra.mrb[0].mxu0 %v13646_v15 }
  0x4c   :  { %12535 = vmatpush3.bf16.msra.mxu1 %v13794_v25  ;;  %11225 = vmatprep.mubr.f32.mxu0 %v13655_v19 }
  0x4d   :  { %12536 = vmatprep.subr.bf16.mxu1 %v13562_v7  ;;  %12574 = vmatpush3.bf16.msra.mxu0 %v13779_v43 }
  0x4e   :  { %12575 = vmatprep.subr.bf16.mxu0 %v13562_v7 }
  0x4f   :  { %11226 = vmatmul.mubr.f32.gmra.mrb[2].mxu0 %v13658_v20  ;;  %11298 = vmatmul.mubr.f32.vlgmr.msra.gmra.mrb[8].mxu1 %v13564_v54 }
  0x50   :  { %11228 = vmatprep.mubr.f32.mxu0 %v13678_v29  ;;  %12538 = vmatpush3.bf16.msra.mxu1 %v13779_v43 }
  0x51   :  { %12539 = vmatprep.subr.bf16.mxu1 %v13562_v7  ;;  %11308 = vmatprep.mubr.msk.f32.mxu1 %vm13563_vm1, %v13564_v54 }
  0x52   :  { %12577 = vmatpush3.bf16.msra.mxu0 %v13794_v25 }
  0x53   :  { %11229 = vmatmul.mubr.f32.gmra.mrb[4].mxu0 %v13702_v42  ;;  %12578 = vmatprep.subr.bf16.mxu0 %v13562_v7 }
  0x54   :  { %11231 = vmatprep.mubr.f32.mxu0 %v13729_v57  ;;  %12541 = vmatpush3.bf16.msra.mxu1 %v13794_v25 }
  0x55   :  { %12542 = vmatprep.subr.bf16.mxu1 %v13562_v7 }
  0x57   :  { %11232 = vmatmul.mubr.f32.gmra.mrb[6].mxu0 %v13736_v0 }
  0x58   :  { %11374 = vmatprep.mubr.msk.f32.mxu0 %vm13563_vm1, %v13564_v54 }
  0xe2   :  { %v11144_v15 = vpop.f32.mrb[0].mxu1 }
  0xe3   :  { %v158_v19 = vadd.f32 %v11144_v15, %v10477_v9  ;;  %v147_v20 = vpop.f32.mrb[1].mxu1 }
  0xe4   :  { %v148_v58 = vadd.f32 %v10477_v9, %v147_v20 }
  0xe6   :  { %v11147_v26 = vpop.f32.mrb[2].mxu1 }
  0xe7   :  { %v178_v27 = vadd.f32 %v11147_v26, %v10477_v9  ;;  %v167_v28 = vpop.f32.mrb[3].mxu1 }
  0xe8   :  { %v168_v29 = vadd.f32 %v10477_v9, %v167_v28 }
  0xf2   :  { %v11166_v30 = vpop.f32.mrb[4].mxu1 }
  0xf3   :  { %v13170_v35 = vadd.f32 %v11166_v30, %v10477_v9  ;;  %v322_v36 = vpop.f32.mrb[5].mxu1 }
  0xf4   :  { %v13172_v37 = vadd.f32 %v10477_v9, %v322_v36 }
  0xf6   :  { %v11169_v42 = vpop.f32.mrb[6].mxu1 }
  0xf7   :  { %v13174_v46 = vadd.f32 %v11169_v42, %v10477_v9  ;;  %v334_v51 = vpop.f32.mrb[7].mxu1 }
  0xf8   :  { %v13176_v57 = vadd.f32 %v10477_v9, %v334_v51 }
 0x11e   :  { %v11224_v59 = vpop.f32.mrb[0].mxu0 }
 0x11f   :  { %v13924_v60 = vadd.f32 %v11224_v59, %v158_v19  ;;  %v788_v61 = vpop.f32.mrb[1].mxu0 }
 0x120   :  { %v13165_v62 = vadd.f32 %v788_v61, %v148_v58 }
 0x122   :  { %v11227_v63 = vpop.f32.mrb[2].mxu0  ;;  %v1332_v0 = vpop.f32.mrb[8].mxu1 }
 0x123   :  { %v13926_v1 = vadd.f32 %v11227_v63, %v178_v27  ;;  %v1336_v2 = vadd.f32 %v13165_v62, %v1332_v0  ;;  %v800_v3 = vpop.f32.mrb[3].mxu0  ;;  %v11299_v4 = vpop.f32.mrb[9].mxu1 }
 0x124   :  { %v13928_v5 = vadd.f32 %v800_v3, %v168_v29 }
 0x125   :  { %13434 = vtanh.f32 %v1336_v2  ;;  %v10478_v32 = vmul.f32 -1.442695, %v1336_v2 }
 0x126   :  { %v11230_v6 = vpop.f32.mrb[4].mxu0 }
 0x127   :  { %v13930_v8 = vadd.f32 %v13170_v35, %v11230_v6  ;;  %v812_v10 = vpop.f32.mrb[5].mxu0  ;;  %13436 = vpow2.f32 %v10478_v32 }
 0x128   :  { %v13932_v11 = vadd.f32 %v13172_v37, %v812_v10 }
 0x12a   :  { %v11233_v12 = vpop.f32.mrb[6].mxu0 }
 0x12b   :  { %v13934_v13 = vadd.f32 %v13174_v46, %v11233_v12  ;;  %v824_v21 = vpop.f32.mrb[7].mxu0 }
 0x12c   :  { %v13936_v22 = vadd.f32 %v13176_v57, %v824_v21 }
 0x12f   :  { %v13435_v31 = vpop.eup %13434 }
 0x130   :  { %1346 = vrot.lane.b32.xlu0 %v13435_v31, %s13565_s3 }
 0x131   :  { %v13437_v33 = vpop.eup %13436 }
 0x132   :  { %v1340_v34 = vadd.f32 1.0, %v13437_v33 }
 0x134   :  { %13438 = vrcp.f32 %v1340_v34 }
 0x13e   :  { %v13439_v38 = vpop.eup %13438 }
 0x13f   :  { %v1344_v41 = vmul.f32 0.0, %v13439_v38 }
 0x1a2   :  { %v1347_v39 = vpop.permute.xlu0 %1346 }
 0x1a3   :  { %v1349_v40 = vmul.f32 %v13439_v38, %v1347_v39 }
 0x1a5   :  { %1351 = vrot.lane.b32.xlu0 %v1349_v40, %s13565_s3 }
 0x217   :  { %v1352_v44 = vpop.permute.xlu0 %1351 }
 0x218   :  { %v13940_v16 = vadd.f32 %v1352_v44, %v1344_v41 }
 0x21a   :  { %13440 = vtanh.f32 %v13940_v16 }
 0x224   :  { %v13441_v17 = vpop.eup %13440 }
 0x225   :  { %1357 = vrot.lane.b32.xlu1 %v13441_v17, %s13565_s3 }
 0x297   :  { %v1358_v24 = vpop.permute.xlu1 %1357 }
 0x298   :  { %v1360_v45 = vmul.f32 %v13439_v38, %v1358_v24 }
 0x29a   :  { %1362 = vrot.lane.b32.xlu1 %v1360_v45, %s13566_s15 }
 0x30c   :  { %v1363_v47 = vpop.permute.xlu1 %1362 }
 0x30d   :  { %1365 = vst.msk [vmem:[#allocation3] sm:$0xff] %vm847_vm2, %v1363_v47  ;;  %v1368_v48 = vsel %vm847_vm2, %v1363_v47, 0 }
 0x30e   :  { %v1439_v49 = vand.u32 4294901760, %v1368_v48 }
 0x310   :  { %v1440_v52 = vsub.f32 %v1368_v48, %v1439_v49 }
 0x312   :  { %v1441_v53 = vand.u32 4294901760, %v1440_v52 }
 0x314   :  { %v1442_v9 = vsub.f32 %v1440_v52, %v1441_v53 }
 0x316   :  { %v1443_v15 = vand.u32 4294901760, %v1442_v9 }
 0x318   :  { %11309 = vmatmul.mubr.f32.vlgmr.msra.gmra.mrb[10].mxu1 %v1443_v15 }
 0x319   :  { %12544 = vmatpush3.bf16.msra.mxu1 %v13810_v50  ;;  %11319 = vmatprep.mubr.msk.f32.mxu1 %vm13563_vm1, %v13564_v54 }
 0x31a   :  { %12545 = vmatprep.subr.bf16.mxu1 %v13562_v7 }
 0x31d   :  { %12547 = vmatpush3.bf16.msra.mxu1 %v13820_v55 }
 0x31e   :  { %12548 = vmatprep.subr.bf16.mxu1 %v13562_v7 }
 0x320   :  { %11320 = vmatmul.mubr.f32.vlgmr.msra.gmra.mrb[10].mxu1 %v1439_v49 }
 0x321   :  { %12550 = vmatpush3.bf16.msra.mxu1 %v13830_v56  ;;  %11330 = vmatprep.mubr.msk.f32.mxu1 %vm13563_vm1, %v13564_v54 }
 0x322   :  { %12551 = vmatprep.subr.bf16.mxu1 %v13562_v7 }
 0x325   :  { %12553 = vmatpush3.bf16.msra.mxu1 %v13844_v18 }
 0x326   :  { %12554 = vmatprep.subr.bf16.mxu1 %v13562_v7 }
 0x328   :  { %11331 = vmatmul.mubr.f32.vlgmr.msra.gmra.mrb[10].mxu1 %v1440_v52 }
 0x329   :  { %12556 = vmatpush3.bf16.msra.mxu1 %v13779_v43  ;;  %11341 = vmatprep.mubr.msk.f32.mxu1 %vm13563_vm1, %v13564_v54 }
 0x32a   :  { %12557 = vmatprep.subr.bf16.mxu1 %v13562_v7 }
 0x32d   :  { %12559 = vmatpush3.bf16.msra.mxu1 %v13794_v25 }
 0x32e   :  { %12560 = vmatprep.subr.bf16.mxu1 %v13562_v7 }
 0x330   :  { %11342 = vmatmul.mubr.f32.vlgmr.msra.gmra.mrb[10].mxu1 %v1441_v53 }
 0x331   :  { %12562 = vmatpush3.bf16.msra.mxu1 %v13870_v23  ;;  %11352 = vmatprep.mubr.msk.f32.mxu1 %vm13563_vm1, %v13564_v54 }
 0x332   :  { %12563 = vmatprep.subr.bf16.mxu1 %v13562_v7 }
 0x335   :  { %12565 = vmatpush3.bf16.msra.mxu1 %v13883_v14 }
 0x336   :  { %12566 = vmatprep.subr.bf16.mxu1 %v13562_v7 }
 0x338   :  { %11353 = vmatmul.mubr.f32.vlgmr.msra.gmra.mrb[10].mxu1 %v1439_v49 }
 0x339   :  { %12568 = vmatpush3.bf16.msra.mxu1 %v13779_v43  ;;  %11363 = vmatprep.mubr.msk.f32.mxu1 %vm13563_vm1, %v13564_v54 }
 0x33a   :  { %12569 = vmatprep.subr.bf16.mxu1 %v13562_v7 }
 0x33d   :  { %12571 = vmatpush3.bf16.msra.mxu1 %v13794_v25 }
 0x33e   :  { %12608 = vmatprep.subr.bf16.mxu1 %v13562_v7 }
 0x340   :  { %11364 = vmatmul.mubr.f32.vlgmr.msra.gmra.mrb[10].mxu1 %v1439_v49 }
 0x341   :  { %12610 = vmatpush3.bf16.msra.mxu1 %v13779_v43  ;;  %11440 = vmatprep.mubr.msk.f32.mxu1 %vm13563_vm1, %v13564_v54 }
 0x342   :  { %12611 = vmatprep.subr.bf16.mxu1 %v13562_v7 }
 0x345   :  { %12613 = vmatpush3.bf16.msra.mxu1 %v13794_v25 }
 0x346   :  { %12614 = vmatprep.subr.bf16.mxu1 %v13562_v7 }
 0x413   :  { %v1851_v19 = vpop.f32.mrb[10].mxu1 }
 0x414   :  { %v1855_v20 = vadd.f32 %v13924_v60, %v1851_v19  ;;  %v11365_v26 = vpop.f32.mrb[11].mxu1 }
 0x416   :  { %13442 = vtanh.f32 %v1855_v20  ;;  %v10479_v28 = vmul.f32 -1.442695, %v1855_v20 }
 0x418   :  { %13444 = vpow2.f32 %v10479_v28 }
 0x420   :  { %v13443_v27 = vpop.eup %13442 }
 0x421   :  { %1865 = vrot.lane.b32.xlu0 %v13443_v27, %s13565_s3 }
 0x422   :  { %v13445_v29 = vpop.eup %13444 }
 0x423   :  { %v1859_v30 = vadd.f32 1.0, %v13445_v29 }
 0x425   :  { %13446 = vrcp.f32 %v1859_v30 }
 0x42f   :  { %v13447_v35 = vpop.eup %13446 }
 0x430   :  { %v1863_v42 = vmul.f32 %v13447_v35, %v13940_v16 }
 0x493   :  { %v1866_v36 = vpop.permute.xlu0 %1865 }
 0x494   :  { %v1868_v37 = vmul.f32 %v13447_v35, %v1866_v36 }
 0x496   :  { %1870 = vrot.lane.b32.xlu1 %v1868_v37, %s13565_s3 }
 0x508   :  { %v1871_v46 = vpop.permute.xlu1 %1870 }
 0x509   :  { %v13987_v51 = vadd.f32 %v1871_v46, %v1863_v42 }
 0x50b   :  { %13448 = vtanh.f32 %v13987_v51 }
 0x515   :  { %v13449_v57 = vpop.eup %13448 }
 0x516   :  { %1876 = vrot.lane.b32.xlu0 %v13449_v57, %s13565_s3 }
 0x588   :  { %v1877_v58 = vpop.permute.xlu0 %1876 }
 0x589   :  { %v1879_v59 = vmul.f32 %v13447_v35, %v1877_v58 }
 0x58b   :  { %1881 = vrot.lane.b32.xlu1 %v1879_v59, %s13566_s15 }
 0x5fd   :  { %v1882_v60 = vpop.permute.xlu1 %1881 }
 0x5fe   :  { %1885 = vst.msk [vmem:[#allocation3 + $0x8] sm:$0xff] %vm847_vm2, %v1882_v60  ;;  %v1888_v61 = vsel %vm847_vm2, %v1882_v60, 0 }
 0x5ff   :  { %v1959_v62 = vand.u32 4294901760, %v1888_v61 }
 0x601   :  { %v1960_v63 = vsub.f32 %v1888_v61, %v1959_v62 }
 0x603   :  { %v1961_v0 = vand.u32 4294901760, %v1960_v63 }
 0x605   :  { %v1962_v2 = vsub.f32 %v1960_v63, %v1961_v0 }
 0x607   :  { %v1963_v3 = vand.u32 4294901760, %v1962_v2 }
 0x609   :  { %11375 = vmatmul.mubr.f32.vlgmr.msra.gmra.mrb[8].mxu0 %v1963_v3 }
 0x60a   :  { %12580 = vmatpush3.bf16.msra.mxu0 %v13810_v50  ;;  %11385 = vmatprep.mubr.msk.f32.mxu0 %vm13563_vm1, %v13564_v54 }
 0x60b   :  { %12581 = vmatprep.subr.bf16.mxu0 %v13562_v7 }
 0x60e   :  { %12583 = vmatpush3.bf16.msra.mxu0 %v13820_v55 }
 0x60f   :  { %12584 = vmatprep.subr.bf16.mxu0 %v13562_v7 }
 0x611   :  { %11386 = vmatmul.mubr.f32.vlgmr.msra.gmra.mrb[8].mxu0 %v1959_v62 }
 0x612   :  { %12586 = vmatpush3.bf16.msra.mxu0 %v13830_v56  ;;  %11396 = vmatprep.mubr.msk.f32.mxu0 %vm13563_vm1, %v13564_v54 }
 0x613   :  { %12587 = vmatprep.subr.bf16.mxu0 %v13562_v7 }
 0x616   :  { %12589 = vmatpush3.bf16.msra.mxu0 %v13844_v18 }
 0x617   :  { %12590 = vmatprep.subr.bf16.mxu0 %v13562_v7 }
 0x619   :  { %11397 = vmatmul.mubr.f32.vlgmr.msra.gmra.mrb[8].mxu0 %v1960_v63 }
 0x61a   :  { %12592 = vmatpush3.bf16.msra.mxu0 %v13779_v43  ;;  %11407 = vmatprep.mubr.msk.f32.mxu0 %vm13563_vm1, %v13564_v54 }
 0x61b   :  { %12593 = vmatprep.subr.bf16.mxu0 %v13562_v7 }
 0x61e   :  { %12595 = vmatpush3.bf16.msra.mxu0 %v13794_v25 }
 0x61f   :  { %12596 = vmatprep.subr.bf16.mxu0 %v13562_v7 }
 0x621   :  { %11408 = vmatmul.mubr.f32.vlgmr.msra.gmra.mrb[8].mxu0 %v1961_v0 }
 0x622   :  { %12598 = vmatpush3.bf16.msra.mxu0 %v13870_v23  ;;  %11418 = vmatprep.mubr.msk.f32.mxu0 %vm13563_vm1, %v13564_v54 }
 0x623   :  { %12599 = vmatprep.subr.bf16.mxu0 %v13562_v7 }
 0x626   :  { %12601 = vmatpush3.bf16.msra.mxu0 %v13883_v14 }
 0x627   :  { %12602 = vmatprep.subr.bf16.mxu0 %v13562_v7 }
 0x629   :  { %11419 = vmatmul.mubr.f32.vlgmr.msra.gmra.mrb[8].mxu0 %v1959_v62 }
 0x62a   :  { %12604 = vmatpush3.bf16.msra.mxu0 %v13779_v43  ;;  %11429 = vmatprep.mubr.msk.f32.mxu0 %vm13563_vm1, %v13564_v54 }
 0x62b   :  { %12605 = vmatprep.subr.bf16.mxu0 %v13562_v7 }
 0x62e   :  { %12607 = vmatpush3.bf16.msra.mxu0 %v13794_v25 }
 0x62f   :  { %12644 = vmatprep.subr.bf16.mxu0 %v13562_v7 }
 0x631   :  { %11430 = vmatmul.mubr.f32.vlgmr.msra.gmra.mrb[8].mxu0 %v1959_v62 }
 0x632   :  { %12646 = vmatpush3.bf16.msra.mxu0 %v13779_v43  ;;  %11506 = vmatprep.mubr.msk.f32.mxu0 %vm13563_vm1, %v13564_v54 }
 0x633   :  { %12647 = vmatprep.subr.bf16.mxu0 %v13562_v7 }
 0x636   :  { %12649 = vmatpush3.bf16.msra.mxu0 %v13794_v25 }
 0x637   :  { %12650 = vmatprep.subr.bf16.mxu0 %v13562_v7 }
 0x704   :  { %v2371_v4 = vpop.f32.mrb[8].mxu0 }
 0x705   :  { %v2375_v6 = vadd.f32 %v13928_v5, %v2371_v4  ;;  %v11431_v10 = vpop.f32.mrb[9].mxu0 }
 0x707   :  { %13450 = vtanh.f32 %v2375_v6  ;;  %v10480_v21 = vmul.f32 -1.442695, %v2375_v6 }
 0x709   :  { %13452 = vpow2.f32 %v10480_v21 }
 0x711   :  { %v13451_v12 = vpop.eup %13450 }
 0x712   :  { %2385 = vrot.lane.b32.xlu0 %v13451_v12, %s13565_s3 }
 0x713   :  { %v13453_v31 = vpop.eup %13452 }
 0x714   :  { %v2379_v32 = vadd.f32 1.0, %v13453_v31 }
 0x716   :  { %13454 = vrcp.f32 %v2379_v32 }
 0x720   :  { %v13455_v33 = vpop.eup %13454 }
 0x721   :  { %v2383_v39 = vmul.f32 %v13455_v33, %v13987_v51 }
 0x784   :  { %v2386_v34 = vpop.permute.xlu0 %2385 }
 0x785   :  { %v2388_v38 = vmul.f32 %v13455_v33, %v2386_v34 }
 0x787   :  { %2390 = vrot.lane.b32.xlu1 %v2388_v38, %s13565_s3 }
 0x7f9   :  { %v2391_v40 = vpop.permute.xlu1 %2390 }
 0x7fa   :  { %v14034_v41 = vadd.f32 %v2391_v40, %v2383_v39 }
 0x7fc   :  { %13456 = vtanh.f32 %v14034_v41 }
 0x806   :  { %v13457_v5 = vpop.eup %13456 }
 0x807   :  { %2396 = vrot.lane.b32.xlu0 %v13457_v5, %s13565_s3 }
 0x879   :  { %v2397_v44 = vpop.permute.xlu0 %2396 }
 0x87a   :  { %v2399_v16 = vmul.f32 %v13455_v33, %v2397_v44 }
 0x87c   :  { %2401 = vrot.lane.b32.xlu1 %v2399_v16, %s13566_s15 }
 0x8ee   :  { %v2402_v17 = vpop.permute.xlu1 %2401 }
 0x8ef   :  { %2405 = vst.msk [vmem:[#allocation3 + $0x10] sm:$0xff] %vm847_vm2, %v2402_v17  ;;  %v2408_v24 = vsel %vm847_vm2, %v2402_v17, 0 }
 0x8f0   :  { %v2479_v45 = vand.u32 4294901760, %v2408_v24 }
 0x8f2   :  { %v2480_v47 = vsub.f32 %v2408_v24, %v2479_v45 }
 0x8f4   :  { %v2481_v48 = vand.u32 4294901760, %v2480_v47 }
 0x8f6   :  { %v2482_v49 = vsub.f32 %v2480_v47, %v2481_v48 }
 0x8f8   :  { %v2483_v52 = vand.u32 4294901760, %v2482_v49 }
 0x8fa   :  { %11441 = vmatmul.mubr.f32.vlgmr.msra.gmra.mrb[12].mxu1 %v2483_v52 }
 0x8fb   :  { %12616 = vmatpush3.bf16.msra.mxu1 %v13810_v50  ;;  %11451 = vmatprep.mubr.msk.f32.mxu1 %vm13563_vm1, %v13564_v54 }
 0x8fc   :  { %12617 = vmatprep.subr.bf16.mxu1 %v13562_v7 }
 0x8ff   :  { %12619 = vmatpush3.bf16.msra.mxu1 %v13820_v55 }
 0x900   :  { %12620 = vmatprep.subr.bf16.mxu1 %v13562_v7 }
 0x902   :  { %11452 = vmatmul.mubr.f32.vlgmr.msra.gmra.mrb[12].mxu1 %v2479_v45 }
 0x903   :  { %12622 = vmatpush3.bf16.msra.mxu1 %v13830_v56  ;;  %11462 = vmatprep.mubr.msk.f32.mxu1 %vm13563_vm1, %v13564_v54 }
 0x904   :  { %12623 = vmatprep.subr.bf16.mxu1 %v13562_v7 }
 0x907   :  { %12625 = vmatpush3.bf16.msra.mxu1 %v13844_v18 }
 0x908   :  { %12626 = vmatprep.subr.bf16.mxu1 %v13562_v7 }
 0x90a   :  { %11463 = vmatmul.mubr.f32.vlgmr.msra.gmra.mrb[12].mxu1 %v2480_v47 }
 0x90b   :  { %12628 = vmatpush3.bf16.msra.mxu1 %v13779_v43  ;;  %11473 = vmatprep.mubr.msk.f32.mxu1 %vm13563_vm1, %v13564_v54 }
 0x90c   :  { %12629 = vmatprep.subr.bf16.mxu1 %v13562_v7 }
 0x90f   :  { %12631 = vmatpush3.bf16.msra.mxu1 %v13794_v25 }
 0x910   :  { %12632 = vmatprep.subr.bf16.mxu1 %v13562_v7 }
 0x912   :  { %11474 = vmatmul.mubr.f32.vlgmr.msra.gmra.mrb[12].mxu1 %v2481_v48 }
 0x913   :  { %12634 = vmatpush3.bf16.msra.mxu1 %v13870_v23  ;;  %11484 = vmatprep.mubr.msk.f32.mxu1 %vm13563_vm1, %v13564_v54 }
 0x914   :  { %12635 = vmatprep.subr.bf16.mxu1 %v13562_v7 }
 0x917   :  { %12637 = vmatpush3.bf16.msra.mxu1 %v13883_v14 }
 0x918   :  { %12638 = vmatprep.subr.bf16.mxu1 %v13562_v7 }
 0x91a   :  { %11485 = vmatmul.mubr.f32.vlgmr.msra.gmra.mrb[12].mxu1 %v2479_v45 }
 0x91b   :  { %12640 = vmatpush3.bf16.msra.mxu1 %v13779_v43  ;;  %11495 = vmatprep.mubr.msk.f32.mxu1 %vm13563_vm1, %v13564_v54 }
 0x91c   :  { %12641 = vmatprep.subr.bf16.mxu1 %v13562_v7 }
 0x91f   :  { %12643 = vmatpush3.bf16.msra.mxu1 %v13794_v25 }
 0x920   :  { %12680 = vmatprep.subr.bf16.mxu1 %v13562_v7 }
 0x922   :  { %11496 = vmatmul.mubr.f32.vlgmr.msra.gmra.mrb[12].mxu1 %v2479_v45 }
 0x923   :  { %12682 = vmatpush3.bf16.msra.mxu1 %v13779_v43  ;;  %11572 = vmatprep.mubr.msk.f32.mxu1 %vm13563_vm1, %v13564_v54 }
 0x924   :  { %12683 = vmatprep.subr.bf16.mxu1 %v13562_v7 }
 0x927   :  { %12685 = vmatpush3.bf16.msra.mxu1 %v13794_v25 }
 0x928   :  { %12686 = vmatprep.subr.bf16.mxu1 %v13562_v7 }
 0x9f5   :  { %v2891_v53 = vpop.f32.mrb[12].mxu1 }
 0x9f6   :  { %v2895_v9 = vadd.f32 %v13926_v1, %v2891_v53  ;;  %v11497_v15 = vpop.f32.mrb[13].mxu1 }
 0x9f8   :  { %13458 = vtanh.f32 %v2895_v9  ;;  %v10481_v20 = vmul.f32 -1.442695, %v2895_v9 }
 0x9fa   :  { %13460 = vpow2.f32 %v10481_v20 }
 0xa02   :  { %v13459_v19 = vpop.eup %13458 }
 0xa03   :  { %2905 = vrot.lane.b32.xlu0 %v13459_v19, %s13565_s3 }
 0xa04   :  { %v13461_v26 = vpop.eup %13460 }
 0xa05   :  { %v2899_v27 = vadd.f32 1.0, %v13461_v26 }
 0xa07   :  { %13462 = vrcp.f32 %v2899_v27 }
 0xa11   :  { %v13463_v28 = vpop.eup %13462 }
 0xa12   :  { %v2903_v35 = vmul.f32 %v13463_v28, %v14034_v41 }
 0xa75   :  { %v2906_v29 = vpop.permute.xlu0 %2905 }
 0xa76   :  { %v2908_v30 = vmul.f32 %v13463_v28, %v2906_v29 }
 0xa78   :  { %2910 = vrot.lane.b32.xlu1 %v2908_v30, %s13565_s3 }
 0xaea   :  { %v2911_v36 = vpop.permute.xlu1 %2910 }
 0xaeb   :  { %v14081_v37 = vadd.f32 %v2911_v36, %v2903_v35 }
 0xaed   :  { %13464 = vtanh.f32 %v14081_v37 }
 0xaf7   :  { %v13465_v1 = vpop.eup %13464 }
 0xaf8   :  { %2916 = vrot.lane.b32.xlu0 %v13465_v1, %s13565_s3 }
 0xb6a   :  { %v2917_v42 = vpop.permute.xlu0 %2916 }
 0xb6b   :  { %v2919_v46 = vmul.f32 %v13463_v28, %v2917_v42 }
 0xb6d   :  { %2921 = vrot.lane.b32.xlu1 %v2919_v46, %s13566_s15 }
 0xbdf   :  { %v2922_v51 = vpop.permute.xlu1 %2921 }
 0xbe0   :  { %2925 = vst.msk [vmem:[#allocation3 + $0x18] sm:$0xff] %vm847_vm2, %v2922_v51  ;;  %v2928_v57 = vsel %vm847_vm2, %v2922_v51, 0 }
 0xbe1   :  { %v2999_v58 = vand.u32 4294901760, %v2928_v57 }
 0xbe3   :  { %v3000_v59 = vsub.f32 %v2928_v57, %v2999_v58  ;;  %v5006_v57 = vld [vmem:[#allocation3] sm:$0xff] }
 0xbe5   :  { %v3001_v60 = vand.u32 4294901760, %v3000_v59 }
 0xbe7   :  { %v3002_v61 = vsub.f32 %v3000_v59, %v3001_v60 }
 0xbe9   :  { %v3003_v62 = vand.u32 4294901760, %v3002_v61  ;;  %v5008_v61 = vld [vmem:[#allocation3 + $0x10] sm:$0xff] }
 0xbeb   :  { %11507 = vmatmul.mubr.f32.vlgmr.msra.gmra.mrb[10].mxu0 %v3003_v62 }
 0xbec   :  { %12652 = vmatpush3.bf16.msra.mxu0 %v13810_v50  ;;  %11517 = vmatprep.mubr.msk.f32.mxu0 %vm13563_vm1, %v13564_v54 }
 0xbed   :  { %12653 = vmatprep.subr.bf16.mxu0 %v13562_v7 }
 0xbf0   :  { %12655 = vmatpush3.bf16.msra.mxu0 %v13820_v55 }
 0xbf1   :  { %12656 = vmatprep.subr.bf16.mxu0 %v13562_v7 }
 0xbf3   :  { %11518 = vmatmul.mubr.f32.vlgmr.msra.gmra.mrb[10].mxu0 %v2999_v58 }
 0xbf4   :  { %12658 = vmatpush3.bf16.msra.mxu0 %v13830_v56  ;;  %11528 = vmatprep.mubr.msk.f32.mxu0 %vm13563_vm1, %v13564_v54 }
 0xbf5   :  { %12659 = vmatprep.subr.bf16.mxu0 %v13562_v7 }
 0xbf8   :  { %12661 = vmatpush3.bf16.msra.mxu0 %v13844_v18 }
 0xbf9   :  { %12662 = vmatprep.subr.bf16.mxu0 %v13562_v7 }
 0xbfb   :  { %11529 = vmatmul.mubr.f32.vlgmr.msra.gmra.mrb[10].mxu0 %v3000_v59 }
 0xbfc   :  { %12664 = vmatpush3.bf16.msra.mxu0 %v13779_v43  ;;  %11539 = vmatprep.mubr.msk.f32.mxu0 %vm13563_vm1, %v13564_v54 }
 0xbfd   :  { %12665 = vmatprep.subr.bf16.mxu0 %v13562_v7 }
 0xc00   :  { %12667 = vmatpush3.bf16.msra.mxu0 %v13794_v25 }
 0xc01   :  { %12668 = vmatprep.subr.bf16.mxu0 %v13562_v7 }
 0xc03   :  { %11540 = vmatmul.mubr.f32.vlgmr.msra.gmra.mrb[10].mxu0 %v3001_v60  ;;  %v5007_v60 = vld [vmem:[#allocation3 + $0x8] sm:$0xff] }
 0xc04   :  { %12670 = vmatpush3.bf16.msra.mxu0 %v13870_v23  ;;  %11550 = vmatprep.mubr.msk.f32.mxu0 %vm13563_vm1, %v13564_v54  ;;  %v5029_v62 = vsel %vm847_vm2, %v5007_v60, 0 }
 0xc05   :  { %12671 = vmatprep.subr.bf16.mxu0 %v13562_v7 }
 0xc08   :  { %12673 = vmatpush3.bf16.msra.mxu0 %v13883_v14 }
 0xc09   :  { %12674 = vmatprep.subr.bf16.mxu0 %v13562_v7 }
 0xc0b   :  { %11551 = vmatmul.mubr.f32.vlgmr.msra.gmra.mrb[10].mxu0 %v2999_v58 }
 0xc0c   :  { %12676 = vmatpush3.bf16.msra.mxu0 %v13779_v43  ;;  %11561 = vmatprep.mubr.msk.f32.mxu0 %vm13563_vm1, %v13564_v54 }
 0xc0d   :  { %12677 = vmatprep.subr.bf16.mxu0 %v13562_v7 }
 0xc10   :  { %12679 = vmatpush3.bf16.msra.mxu0 %v13794_v25 }
 0xc11   :  { %12716 = vmatprep.subr.bf16.mxu0 %v13562_v7 }
 0xc13   :  { %11562 = vmatmul.mubr.f32.vlgmr.msra.gmra.mrb[10].mxu0 %v2999_v58  ;;  %v5026_v58 = vsel %vm847_vm2, %v5006_v57, 0 }
 0xc14   :  { %12718 = vmatpush3.bf16.msra.mxu0 %v13779_v43  ;;  %11638 = vmatprep.mubr.msk.f32.mxu0 %vm13563_vm1, %v13564_v54  ;;  %v14205_v59 = vand.u32 4294901760, %v5026_v58 }
 0xc15   :  { %12719 = vmatprep.subr.bf16.mxu0 %v13562_v7 }
 0xc18   :  { %12721 = vmatpush3.bf16.msra.mxu0 %v13794_v25 }
 0xc19   :  { %12722 = vmatprep.subr.bf16.mxu0 %v13562_v7 }
 0xce6   :  { %v3411_v63 = vpop.f32.mrb[10].mxu0 }
 0xce7   :  { %v3415_v0 = vadd.f32 %v13932_v11, %v3411_v63  ;;  %v11563_v2 = vpop.f32.mrb[11].mxu0  ;;  %v14215_v63 = vld [vmem:[%s14951_s4] sm:$0xff] }
 0xce8   :  { %v14223_v2 = vsub.f32 %v5026_v58, %v14205_v59 }
 0xce9   :  { %13466 = vtanh.f32 %v3415_v0  ;;  %v10482_v4 = vmul.f32 -1.442695, %v3415_v0  ;;  %v14220_v0 = vld [vmem:[%s14951_s4 + $0x8] sm:$0xff] }
 0xceb   :  { %13468 = vpow2.f32 %v10482_v4  ;;  %v5009_v4 = vld [vmem:[#allocation3 + $0x18] sm:$0xff] }
 0xcf3   :  { %v13467_v3 = vpop.eup %13466 }
 0xcf4   :  { %3425 = vrot.lane.b32.xlu0 %v13467_v3, %s13565_s3  ;;  %v5032_v3 = vsel %vm847_vm2, %v5008_v61, 0 }
 0xcf5   :  { %v13469_v6 = vpop.eup %13468 }
 0xcf6   :  { %v3419_v10 = vadd.f32 1.0, %v13469_v6  ;;  %v14227_v6 = vand.u32 4294901760, %v5029_v62 }
 0xcf8   :  { %13470 = vrcp.f32 %v3419_v10 }
 0xd02   :  { %v13471_v12 = vpop.eup %13470 }
 0xd03   :  { %v3423_v32 = vmul.f32 %v13471_v12, %v14081_v37 }
 0xd66   :  { %v3426_v21 = vpop.permute.xlu0 %3425 }
 0xd67   :  { %v3428_v31 = vmul.f32 %v13471_v12, %v3426_v21  ;;  %v5053_v21 = vand.u32 4294901760, %v14220_v0 }
 0xd69   :  { %3430 = vrot.lane.b32.xlu1 %v3428_v31, %s13565_s3  ;;  %v5120_v31 = vand.u32 4294901760, %v14223_v2 }
 0xddb   :  { %v3431_v33 = vpop.permute.xlu1 %3430 }
 0xddc   :  { %v14128_v34 = vadd.f32 %v3431_v33, %v3423_v32  ;;  %v14236_v32 = vld [vmem:[%s14951_s4 + $0x10] sm:$0xff]  ;;  %v14241_v33 = vld [vmem:[%s14951_s4 + $0x18] sm:$0xff] }
 0xdde   :  { %13472 = vtanh.f32 %v14128_v34 }
 0xde8   :  { %v13473_v11 = vpop.eup %13472 }
 0xde9   :  { %3436 = vrot.lane.b32.xlu0 %v13473_v11, %s13565_s3  ;;  %v5035_v11 = vsel %vm847_vm2, %v5009_v4, 0 }
 0xe5b   :  { %v3437_v38 = vpop.permute.xlu0 %3436 }
 0xe5c   :  { %v3439_v39 = vmul.f32 %v13471_v12, %v3437_v38  ;;  %v5050_v12 = vand.u32 4294901760, %v14215_v63 }
 0xe5e   :  { %3441 = vrot.lane.b32.xlu1 %v3439_v39, %s13566_s15 }
 0xed0   :  { %v3442_v40 = vpop.permute.xlu1 %3441 }
 0xed1   :  { %3445 = vst.msk [vmem:[#allocation3 + $0x20] sm:$0xff] %vm847_vm2, %v3442_v40  ;;  %v3448_v41 = vsel %vm847_vm2, %v3442_v40, 0  ;;  %v14252_v40 = vsub.f32 %v5029_v62, %v14227_v6 }
 0xed2   :  { %v3519_v5 = vand.u32 4294901760, %v3448_v41 }
 0xed4   :  { %v3520_v44 = vsub.f32 %v3448_v41, %v3519_v5  ;;  %v14259_v41 = vpack.c.bf16 %v5053_v21, %v5050_v12 }
 0xed6   :  { %v3521_v16 = vand.u32 4294901760, %v3520_v44 }
 0xed8   :  { %v3522_v17 = vsub.f32 %v3520_v44, %v3521_v16  ;;  %v5010_v10 = vld [vmem:[#allocation3 + $0x20] sm:$0xff] }
 0xed9   :  { %v5038_v38 = vsel %vm847_vm2, %v5010_v10, 0 }
 0xeda   :  { %v3523_v24 = vand.u32 4294901760, %v3522_v17  ;;  %v5121_v17 = vsub.f32 %v14223_v2, %v5120_v31 }
 0xedc   :  { %11573 = vmatmul.mubr.f32.vlgmr.msra.gmra.mrb[14].mxu1 %v3523_v24 }
 0xedd   :  { %12688 = vmatpush3.bf16.msra.mxu1 %v13810_v50  ;;  %11583 = vmatprep.mubr.msk.f32.mxu1 %vm13563_vm1, %v13564_v54 }
 0xede   :  { %12689 = vmatprep.subr.bf16.mxu1 %v13562_v7 }
 0xee1   :  { %12691 = vmatpush3.bf16.msra.mxu1 %v13820_v55 }
 0xee2   :  { %12692 = vmatprep.subr.bf16.mxu1 %v13562_v7 }
 0xee4   :  { %11584 = vmatmul.mubr.f32.vlgmr.msra.gmra.mrb[14].mxu1 %v3519_v5 }
 0xee5   :  { %12694 = vmatpush3.bf16.msra.mxu1 %v13830_v56  ;;  %11594 = vmatprep.mubr.msk.f32.mxu1 %vm13563_vm1, %v13564_v54 }
 0xee6   :  { %12695 = vmatprep.subr.bf16.mxu1 %v13562_v7 }
 0xee9   :  { %12697 = vmatpush3.bf16.msra.mxu1 %v13844_v18 }
 0xeea   :  { %12698 = vmatprep.subr.bf16.mxu1 %v13562_v7 }
 0xeec   :  { %11595 = vmatmul.mubr.f32.vlgmr.msra.gmra.mrb[14].mxu1 %v3520_v44  ;;  %v5059_v44 = vand.u32 4294901760, %v14241_v33 }
 0xeed   :  { %12700 = vmatpush3.bf16.msra.mxu1 %v13779_v43  ;;  %11605 = vmatprep.mubr.msk.f32.mxu1 %vm13563_vm1, %v13564_v54 }
 0xeee   :  { %12701 = vmatprep.subr.bf16.mxu1 %v13562_v7 }
 0xef1   :  { %12703 = vmatpush3.bf16.msra.mxu1 %v13794_v25 }
 0xef2   :  { %12704 = vmatprep.subr.bf16.mxu1 %v13562_v7 }
 0xef4   :  { %11606 = vmatmul.mubr.f32.vlgmr.msra.gmra.mrb[14].mxu1 %v3521_v16  ;;  %v14263_v16 = vand.u32 4294901760, %v5035_v11 }
 0xef5   :  { %12706 = vmatpush3.bf16.msra.mxu1 %v13870_v23  ;;  %11616 = vmatprep.mubr.msk.f32.mxu1 %vm13563_vm1, %v13564_v54 }
 0xef6   :  { %12707 = vmatprep.subr.bf16.mxu1 %v13562_v7 }
 0xef9   :  { %12709 = vmatpush3.bf16.msra.mxu1 %v13883_v14 }
 0xefa   :  { %12710 = vmatprep.subr.bf16.mxu1 %v13562_v7 }
 0xefc   :  { %11617 = vmatmul.mubr.f32.vlgmr.msra.gmra.mrb[14].mxu1 %v3519_v5 }
 0xefd   :  { %12712 = vmatpush3.bf16.msra.mxu1 %v13779_v43  ;;  %11627 = vmatprep.mubr.msk.f32.mxu1 %vm13563_vm1, %v13564_v54 }
 0xefe   :  { %12713 = vmatprep.subr.bf16.mxu1 %v13562_v7 }
 0xf01   :  { %12715 = vmatpush3.bf16.msra.mxu1 %v13794_v25 }
 0xf02   :  { %12752 = vmatprep.subr.bf16.mxu1 %v13562_v7 }
 0xf04   :  { %11628 = vmatmul.mubr.f32.vlgmr.msra.gmra.mrb[14].mxu1 %v3519_v5  ;;  %v5056_v5 = vand.u32 4294901760, %v14236_v32 }
 0xf05   :  { %12754 = vmatpush3.bf16.msra.mxu1 %v13779_v43  ;;  %11704 = vmatprep.mubr.msk.f32.mxu1 %vm13563_vm1, %v13564_v54 }
 0xf06   :  { %12755 = vmatprep.subr.bf16.mxu1 %v13562_v7 }
 0xf09   :  { %12757 = vmatpush3.bf16.msra.mxu1 %v13794_v25 }
 0xf0a   :  { %12758 = vmatprep.subr.bf16.mxu1 %v13562_v7 }
 0xfd7   :  { %v3931_v45 = vpop.f32.mrb[14].mxu1 }
 0xfd8   :  { %v3935_v47 = vadd.f32 %v13930_v8, %v3931_v45  ;;  %v11629_v48 = vpop.f32.mrb[15].mxu1  ;;  %v14271_v45 = vand.u32 4294901760, %v5038_v38 }
 0xfd9   :  { %v14280_v48 = vpack.c.bf16 %v5059_v44, %v5056_v5 }
 0xfda   :  { %13474 = vtanh.f32 %v3935_v47  ;;  %v10483_v52 = vmul.f32 -1.442695, %v3935_v47 }
 0xfdc   :  { %13476 = vpow2.f32 %v10483_v52  ;;  %v14284_v52 = vsub.f32 %v5035_v11, %v14263_v16 }
 0xfe4   :  { %v13475_v49 = vpop.eup %13474 }
 0xfe5   :  { %3945 = vrot.lane.b32.xlu0 %v13475_v49, %s13565_s3  ;;  %v5130_v49 = vand.u32 4294901760, %v14252_v40 }
 0xfe6   :  { %v13477_v53 = vpop.eup %13476 }
 0xfe7   :  { %v3939_v9 = vadd.f32 1.0, %v13477_v53 }
 0xfe9   :  { %13478 = vrcp.f32 %v3939_v9  ;;  %v5122_v9 = vand.u32 4294901760, %v5121_v17 }
 0xff3   :  { %v13479_v15 = vpop.eup %13478 }
 0xff4   :  { %v3943_v26 = vmul.f32 %v13479_v15, %v14128_v34  ;;  %v14243_v34 = vand.u32 4294901760, %v5032_v3 }
 0xff6   :  { %v14269_v24 = vsub.f32 %v5032_v3, %v14243_v34 }
0x1057   :  { %v3946_v19 = vpop.permute.xlu0 %3945 }
0x1058   :  { %v3948_v20 = vmul.f32 %v13479_v15, %v3946_v19  ;;  %v14290_v19 = vsub.f32 %v5038_v38, %v14271_v45 }
0x105a   :  { %3950 = vrot.lane.b32.xlu1 %v3948_v20, %s13565_s3  ;;  %v5131_v20 = vsub.f32 %v14252_v40, %v5130_v49 }
0x10cc   :  { %v3951_v27 = vpop.permute.xlu1 %3950 }
0x10cd   :  { %v14175_v28 = vadd.f32 %v3951_v27, %v3943_v26  ;;  %v5150_v26 = vand.u32 4294901760, %v14284_v52 }
0x10cf   :  { %13480 = vtanh.f32 %v14175_v28 }
0x10d9   :  { %v13481_v8 = vpop.eup %13480 }
0x10da   :  { %3956 = vrot.lane.b32.xlu0 %v13481_v8, %s13565_s3 }
0x114c   :  { %v3957_v29 = vpop.permute.xlu0 %3956 }
0x114d   :  { %v3959_v30 = vmul.f32 %v13479_v15, %v3957_v29  ;;  %v5140_v15 = vand.u32 4294901760, %v14269_v24  ;;  %v5160_v29 = vand.u32 4294901760, %v14290_v19 }
0x114f   :  { %3961 = vrot.lane.b32.xlu1 %v3959_v30, %s13566_s15  ;;  %v5141_v8 = vsub.f32 %v14269_v24, %v5140_v15  ;;  %v5132_v30 = vand.u32 4294901760, %v5131_v20 }
0x11c1   :  { %v3962_v35 = vpop.permute.xlu1 %3961 }
0x11c2   :  { %3965 = vst.msk [vmem:[#allocation3 + $0x28] sm:$0xff] %vm847_vm2, %v3962_v35  ;;  %v3968_v36 = vsel %vm847_vm2, %v3962_v35, 0  ;;  %v5151_v35 = vsub.f32 %v14284_v52, %v5150_v26 }
0x11c3   :  { %v14182_v37 = vand.u32 4294901760, %v3968_v36 }
0x11c5   :  { %v4040_v1 = vsub.f32 %v3968_v36, %v14182_v37 }
0x11c7   :  { %v4041_v42 = vand.u32 4294901760, %v4040_v1 }
0x11c9   :  { %v4042_v46 = vsub.f32 %v4040_v1, %v4041_v42  ;;  %v5011_v39 = vld [vmem:[#allocation3 + $0x28] sm:$0xff] }
0x11ca   :  { %v5041_v47 = vsel %vm847_vm2, %v5011_v39, 0 }
0x11cb   :  { %v4043_v51 = vand.u32 4294901760, %v4042_v46  ;;  %v14286_v53 = vand.u32 4294901760, %v5041_v47 }
0x11cd   :  { %11639 = vmatmul.mubr.f32.vlgmr.msra.gmra.mrb[12].mxu0 %v4043_v51  ;;  %v14300_v27 = vsub.f32 %v5041_v47, %v14286_v53 }
0x11ce   :  { %12724 = vmatpush3.bf16.msra.mxu0 %v13810_v50  ;;  %11649 = vmatprep.mubr.msk.f32.mxu0 %vm13563_vm1, %v13564_v54 }
0x11cf   :  { %12725 = vmatprep.subr.bf16.mxu0 %v13562_v7  ;;  %v5170_v36 = vand.u32 4294901760, %v14300_v27 }
0x11d1   :  { %v5171_v46 = vsub.f32 %v14300_v27, %v5170_v36 }
0x11d2   :  { %12727 = vmatpush3.bf16.msra.mxu0 %v13820_v55 }
0x11d3   :  { %12728 = vmatprep.subr.bf16.mxu0 %v13562_v7  ;;  %v5172_v57 = vand.u32 4294901760, %v5171_v46 }
0x11d5   :  { %11650 = vmatmul.mubr.f32.vlgmr.msra.gmra.mrb[12].mxu0 %v14182_v37 }
0x11d6   :  { %12730 = vmatpush3.bf16.msra.mxu0 %v13830_v56  ;;  %11660 = vmatprep.mubr.msk.f32.mxu0 %vm13563_vm1, %v13564_v54 }
0x11d7   :  { %12731 = vmatprep.subr.bf16.mxu0 %v13562_v7 }
0x11da   :  { %12733 = vmatpush3.bf16.msra.mxu0 %v13844_v18 }
0x11db   :  { %12734 = vmatprep.subr.bf16.mxu0 %v13562_v7 }
0x11dd   :  { %11661 = vmatmul.mubr.f32.vlgmr.msra.gmra.mrb[12].mxu0 %v4040_v1  ;;  %v5161_v1 = vsub.f32 %v14290_v19, %v5160_v29 }
0x11de   :  { %12736 = vmatpush3.bf16.msra.mxu0 %v13779_v43  ;;  %11671 = vmatprep.mubr.msk.f32.mxu0 %vm13563_vm1, %v13564_v54 }
0x11df   :  { %12737 = vmatprep.subr.bf16.mxu0 %v13562_v7  ;;  %v5162_v51 = vand.u32 4294901760, %v5161_v1 }
0x11e2   :  { %12739 = vmatpush3.bf16.msra.mxu0 %v13794_v25 }
0x11e3   :  { %12740 = vmatprep.subr.bf16.mxu0 %v13562_v7 }
0x11e5   :  { %11672 = vmatmul.mubr.f32.vlgmr.msra.gmra.mrb[12].mxu0 %v4041_v42  ;;  %v5152_v42 = vand.u32 4294901760, %v5151_v35 }
0x11e6   :  { %12742 = vmatpush3.bf16.msra.mxu0 %v13870_v23  ;;  %11682 = vmatprep.mubr.msk.f32.mxu0 %vm13563_vm1, %v13564_v54 }
0x11e7   :  { %12743 = vmatprep.subr.bf16.mxu0 %v13562_v7 }
0x11ea   :  { %12745 = vmatpush3.bf16.msra.mxu0 %v13883_v14 }
0x11eb   :  { %12746 = vmatprep.subr.bf16.mxu0 %v13562_v7 }
0x11ed   :  { %11683 = vmatmul.mubr.f32.vlgmr.msra.gmra.mrb[12].mxu0 %v14182_v37 }
0x11ee   :  { %12748 = vmatpush3.bf16.msra.mxu0 %v13779_v43  ;;  %11693 = vmatprep.mubr.msk.f32.mxu0 %vm13563_vm1, %v13564_v54 }
0x11ef   :  { %12749 = vmatprep.subr.bf16.mxu0 %v13562_v7 }
0x11f2   :  { %12751 = vmatpush3.bf16.msra.mxu0 %v13794_v25 }
0x11f3   :  { %12789 = vmatprep.subr.bf16.mxu0 %v14259_v41 }
0x11f5   :  { %11694 = vmatmul.mubr.f32.vlgmr.msra.gmra.mrb[12].mxu0 %v14182_v37  ;;  %v5142_v37 = vand.u32 4294901760, %v5141_v8 }
0x11f6   :  { %12791 = vmatpush3.bf16.msra.mxu0 %v14259_v41  ;;  %11770 = vmatprep.mubr.f32.mxu0 %v5122_v9 }
0x11f7   :  { %12793 = vmatprep.subr.bf16.mxu0 %v14280_v48 }
0x11fa   :  { %12795 = vmatpush3.bf16.msra.mxu0 %v14280_v48 }
0x11fd   :  { %11771 = vmatmul.mubr.f32.vlgmr.msra.gmra.mrb[14].mxu0 %v5132_v30 }
0x11fe   :  { %11773 = vmatprep.mubr.f32.mxu0 %v5142_v37 }
0x1201   :  { %11774 = vmatmul.mubr.f32.gmra.mrb[16].mxu0 %v5152_v42 }
0x1202   :  { %11776 = vmatprep.mubr.f32.mxu0 %v5162_v51 }
0x1205   :  { %11777 = vmatmul.mubr.f32.gmra.mrb[18].mxu0 %v5172_v57 }
0x12c8   :  { %v4451_v58 = vpop.f32.mrb[12].mxu0 }
0x12c9   :  { %v4455_v60 = vadd.f32 %v13936_v22, %v4451_v58  ;;  %v11695_v61 = vpop.f32.mrb[13].mxu0 }
0x12cb   :  { %13482 = vtanh.f32 %v4455_v60  ;;  %v10484_v3 = vmul.f32 -1.442695, %v4455_v60 }
0x12cd   :  { %13484 = vpow2.f32 %v10484_v3 }
0x12d5   :  { %v13483_v62 = vpop.eup %13482 }
0x12d6   :  { %4465 = vrot.lane.b32.xlu0 %v13483_v62, %s13565_s3 }
0x12d7   :  { %v13485_v4 = vpop.eup %13484 }
0x12d8   :  { %v4459_v10 = vadd.f32 1.0, %v13485_v4 }
0x12da   :  { %13486 = vrcp.f32 %v4459_v10 }
0x12e4   :  { %v13487_v11 = vpop.eup %13486 }
0x12e5   :  { %v4463_v17 = vmul.f32 %v13487_v11, %v14175_v28 }
0x1348   :  { %v4466_v38 = vpop.permute.xlu0 %4465 }
0x1349   :  { %v4468_v39 = vmul.f32 %v13487_v11, %v4466_v38 }
0x134b   :  { %4470 = vrot.lane.b32.xlu1 %v4468_v39, %s13565_s3 }
0x13bd   :  { %v4471_v47 = vpop.permute.xlu1 %4470 }
0x13be   :  { %v14321_v9 = vadd.f32 %v4471_v47, %v4463_v17  ;;  %v5843_v17 = vld [vmem:[%s14952_s5] sm:$0xff]  ;;  %v5844_v47 = vld [vmem:[%s14952_s5 + $0x8] sm:$0xff] }
0x13c0   :  { %13488 = vtanh.f32 %v14321_v9 }
0x13ca   :  { %v13489_v22 = vpop.eup %13488 }
0x13cb   :  { %4476 = vrot.lane.b32.xlu0 %v13489_v22, %s13565_s3  ;;  %v5849_v22 = vand.u32 4294901760, %v5843_v17 }
0x143d   :  { %v4477_v20 = vpop.permute.xlu0 %4476 }
0x143e   :  { %v4479_v8 = vmul.f32 %v13487_v11, %v4477_v20  ;;  %v5852_v20 = vand.u32 4294901760, %v5844_v47 }
0x1440   :  { %4481 = vrot.lane.b32.xlu1 %v4479_v8, %s13566_s15  ;;  %v14389_v8 = vsub.f32 %v14220_v0, %v5053_v21  ;;  %v14407_v0 = vpack.c.bf16 %v5852_v20, %v5849_v22 }
0x14b2   :  { %v4482_v30 = vpop.permute.xlu1 %4481 }
0x14b3   :  { %4485 = vst.msk [vmem:[#allocation3 + $0x30] sm:$0xff] %vm847_vm2, %v4482_v30  ;;  %v4488_v35 = vsel %vm847_vm2, %v4482_v30, 0  ;;  %v5845_v30 = vld [vmem:[%s14952_s5 + $0x10] sm:$0xff] }
0x14b4   :  { %v4559_v37 = vand.u32 4294901760, %v4488_v35 }
0x14b6   :  { %v4560_v1 = vsub.f32 %v4488_v35, %v4559_v37  ;;  %v5846_v35 = vld [vmem:[%s14952_s5 + $0x18] sm:$0xff] }
0x14b7   :  { %v5858_v21 = vand.u32 4294901760, %v5846_v35 }
0x14b8   :  { %v4561_v28 = vand.u32 4294901760, %v4560_v1 }
0x14ba   :  { %v4562_v42 = vsub.f32 %v4560_v1, %v4561_v28  ;;  %v5012_v46 = vld [vmem:[#allocation3 + $0x30] sm:$0xff] }
0x14bb   :  { %v5044_v51 = vsel %vm847_vm2, %v5012_v46, 0  ;;  %v14413_v46 = vsub.f32 %v5844_v47, %v5852_v20 }
0x14bc   :  { %v4563_v57 = vand.u32 4294901760, %v4562_v42  ;;  %v14329_v58 = vand.u32 4294901760, %v5044_v51  ;;  %v5208_v42 = vand.u32 4294901760, %v14389_v8 }
0x14be   :  { %11705 = vmatmul.mubr.f32.vlgmr.msra.gmra.mrb[16].mxu1 %v4563_v57  ;;  %v14332_v60 = vsub.f32 %v5044_v51, %v14329_v58 }
0x14bf   :  { %12760 = vmatpush3.bf16.msra.mxu1 %v13810_v50  ;;  %11715 = vmatprep.mubr.msk.f32.mxu1 %vm13563_vm1, %v13564_v54 }
0x14c0   :  { %12761 = vmatprep.subr.bf16.mxu1 %v13562_v7  ;;  %v5180_v61 = vand.u32 4294901760, %v14332_v60 }
0x14c2   :  { %v5181_v62 = vsub.f32 %v14332_v60, %v5180_v61 }
0x14c3   :  { %12763 = vmatpush3.bf16.msra.mxu1 %v13820_v55 }
0x14c4   :  { %12764 = vmatprep.subr.bf16.mxu1 %v13562_v7  ;;  %v5182_v3 = vand.u32 4294901760, %v5181_v62  ;;  %v5209_v62 = vsub.f32 %v14389_v8, %v5208_v42 }
0x14c6   :  { %11716 = vmatmul.mubr.f32.vlgmr.msra.gmra.mrb[16].mxu1 %v4559_v37  ;;  %11779 = vmatprep.mubr.f32.mxu0 %v5182_v3  ;;  %v5937_v3 = vand.u32 4294901760, %v14413_v46 }
0x14c7   :  { %12766 = vmatpush3.bf16.msra.mxu1 %v13830_v56  ;;  %11726 = vmatprep.mubr.msk.f32.mxu1 %vm13563_vm1, %v13564_v54 }
0x14c8   :  { %12767 = vmatprep.subr.bf16.mxu1 %v13562_v7 }
0x14cb   :  { %12769 = vmatpush3.bf16.msra.mxu1 %v13844_v18 }
0x14cc   :  { %12770 = vmatprep.subr.bf16.mxu1 %v13562_v7 }
0x14ce   :  { %11727 = vmatmul.mubr.f32.vlgmr.msra.gmra.mrb[16].mxu1 %v4560_v1  ;;  %v14409_v1 = vsub.f32 %v5843_v17, %v5849_v22 }
0x14cf   :  { %12772 = vmatpush3.bf16.msra.mxu1 %v13779_v43  ;;  %11737 = vmatprep.mubr.msk.f32.mxu1 %vm13563_vm1, %v13564_v54 }
0x14d0   :  { %12773 = vmatprep.subr.bf16.mxu1 %v13562_v7 }
0x14d3   :  { %12775 = vmatpush3.bf16.msra.mxu1 %v13794_v25 }
0x14d4   :  { %12776 = vmatprep.subr.bf16.mxu1 %v13562_v7 }
0x14d6   :  { %11738 = vmatmul.mubr.f32.vlgmr.msra.gmra.mrb[16].mxu1 %v4561_v28 }
0x14d7   :  { %12778 = vmatpush3.bf16.msra.mxu1 %v13870_v23  ;;  %11748 = vmatprep.mubr.msk.f32.mxu1 %vm13563_vm1, %v13564_v54 }
0x14d8   :  { %12779 = vmatprep.subr.bf16.mxu1 %v13562_v7 }
0x14db   :  { %12781 = vmatpush3.bf16.msra.mxu1 %v13883_v14 }
0x14dc   :  { %12782 = vmatprep.subr.bf16.mxu1 %v13562_v7 }
0x14de   :  { %11749 = vmatmul.mubr.f32.vlgmr.msra.gmra.mrb[16].mxu1 %v4559_v37 }
0x14df   :  { %12784 = vmatpush3.bf16.msra.mxu1 %v13779_v43  ;;  %11759 = vmatprep.mubr.msk.f32.mxu1 %vm13563_vm1, %v13564_v54 }
0x14e0   :  { %12785 = vmatprep.subr.bf16.mxu1 %v13562_v7 }
0x14e3   :  { %12787 = vmatpush3.bf16.msra.mxu1 %v13794_v25 }
0x14e4   :  { %12836 = vmatprep.subr.bf16.mxu1 %v13562_v7 }
0x14e6   :  { %11760 = vmatmul.mubr.f32.vlgmr.msra.gmra.mrb[16].mxu1 %v4559_v37  ;;  %v14400_v37 = vsub.f32 %v14236_v32, %v5056_v5 }
0x14e7   :  { %11890 = vmatprep.mubr.msk.f32.mxu1 %vm13563_vm1, %v13564_v54  ;;  %12838 = vmatpush3.bf16.msra.mxu1 %v14407_v0 }
0x14e8   :  { %v5215_v32 = vand.u32 4294901760, %v14400_v37  ;;  %12839 = vmatprep.subr.bf16.mxu1 %v13562_v7 }
0x15b9   :  { %v4971_v50 = vpop.f32.mrb[16].mxu1 }
0x15ba   :  { %v4975_v55 = vadd.f32 %v13934_v13, %v4971_v50  ;;  %v11761_v56 = vpop.f32.mrb[17].mxu1  ;;  %v5216_v50 = vsub.f32 %v14400_v37, %v5215_v32 }
0x15bc   :  { %13490 = vtanh.f32 %v4975_v55  ;;  %v10485_v43 = vmul.f32 -1.442695, %v4975_v55 }
0x15be   :  { %13492 = vpow2.f32 %v10485_v43  ;;  %v5950_v43 = vsub.f32 %v5846_v35, %v5858_v21 }
0x15c6   :  { %v13491_v18 = vpop.eup %13490 }
0x15c7   :  { %4985 = vrot.lane.b32.xlu0 %v13491_v18, %s13565_s3 }
0x15c8   :  { %v13493_v23 = vpop.eup %13492 }
0x15c9   :  { %v4979_v14 = vadd.f32 1.0, %v13493_v23 }
0x15cb   :  { %13494 = vrcp.f32 %v4979_v14  ;;  %v5210_v14 = vand.u32 4294901760, %v5209_v62 }
0x15d5   :  { %v13495_v25 = vpop.eup %13494 }
0x15d6   :  { %v4983_v11 = vmul.f32 %v13495_v25, %v14321_v9  ;;  %v14384_v9 = vsub.f32 %v14215_v63, %v5050_v12  ;;  %v14405_v63 = vsub.f32 %v14241_v33, %v5059_v44  ;;  %v5855_v12 = vand.u32 4294901760, %v5845_v30 }
0x15d7   :  { %v5930_v33 = vand.u32 4294901760, %v14409_v1 }
0x15d8   :  { %v5201_v28 = vand.u32 4294901760, %v14384_v9  ;;  %v14417_v5 = vpack.c.bf16 %v5858_v21, %v5855_v12  ;;  %v5222_v44 = vand.u32 4294901760, %v14405_v63  ;;  %v14421_v51 = vsub.f32 %v5845_v30, %v5855_v12 }
0x15d9   :  { %v5931_v55 = vsub.f32 %v14409_v1, %v5930_v33 }
0x15da   :  { %v5202_v57 = vsub.f32 %v14384_v9, %v5201_v28  ;;  %v5223_v56 = vsub.f32 %v14405_v63, %v5222_v44  ;;  %v5944_v18 = vand.u32 4294901760, %v14421_v51  ;;  %12841 = vmatpush3.bf16.msra.mxu1 %v14417_v5 }
0x15db   :  { %12842 = vmatprep.subr.bf16.mxu1 %v13562_v7 }
0x15dc   :  { %v5203_v23 = vand.u32 4294901760, %v5202_v57 }
0x15dd   :  { %11891 = vmatmul.mubr.f32.vlgmr.msra.gmra.mrb[18].mxu1 %v13564_v54 }
0x15de   :  { %v12796_v17 = vpack.c.bf16 %v5210_v14, %v5203_v23  ;;  %11901 = vmatprep.mubr.msk.f32.mxu1 %vm13563_vm1, %v13564_v54 }
0x15e0   :  { %12797 = vmatprep.subr.bf16.mxu0 %v12796_v17 }
0x15e1   :  { %12799 = vmatpush3.bf16.msra.mxu0 %v12796_v17 }
0x1639   :  { %v4986_v4 = vpop.permute.xlu0 %4985 }
0x163a   :  { %v4988_v10 = vmul.f32 %v13495_v25, %v4986_v4  ;;  %v5938_v4 = vsub.f32 %v14413_v46, %v5937_v3 }
0x163c   :  { %4990 = vrot.lane.b32.xlu1 %v4988_v10, %s13565_s3  ;;  %v5217_v10 = vand.u32 4294901760, %v5216_v50  ;;  %v5939_v47 = vand.u32 4294901760, %v5938_v4  ;;  %v14465_v50 = vpack.c.bf16 %v5950_v43, %v14421_v51 }
0x16ae   :  { %v4991_v38 = vpop.permute.xlu1 %4990 }
0x16af   :  { %v4993_v39 = vadd.f32 %v4991_v38, %v4983_v11  ;;  %v5932_v11 = vand.u32 4294901760, %v5931_v55  ;;  %v5224_v38 = vand.u32 4294901760, %v5223_v56  ;;  %v12804_v55 = vpack.c.bf16 %v14389_v8, %v14384_v9 }
0x16b1   :  { %13496 = vtanh.f32 %v4993_v39  ;;  %v5945_v39 = vsub.f32 %v14421_v51, %v5944_v18  ;;  %v12800_v22 = vpack.c.bf16 %v5224_v38, %v5217_v10  ;;  %v14444_v12 = vpack.c.bf16 %v5939_v47, %v5932_v11 }
0x16b3   :  { %v5946_v20 = vand.u32 4294901760, %v5945_v39  ;;  %12844 = vmatpush3.bf16.msra.mxu1 %v14444_v12  ;;  %12801 = vmatprep.subr.bf16.mxu0 %v12800_v22 }
0x16b4   :  { %12845 = vmatprep.subr.bf16.mxu1 %v13562_v7  ;;  %12803 = vmatpush3.bf16.msra.mxu0 %v12800_v22 }
0x16b5   :  { %12805 = vmatprep.subr.bf16.mxu0 %v12804_v55 }
0x16bb   :  { %v13497_v13 = vpop.eup %13496 }
0x16bc   :  { %4996 = vrot.lane.b32.xlu0 %v13497_v13, %s13565_s3  ;;  %v5951_v13 = vand.u32 4294901760, %v5950_v43 }
0x16be   :  { %v5952_v30 = vsub.f32 %v5950_v43, %v5951_v13  ;;  %v14487_v51 = vpack.c.bf16 %v5951_v13, %v5944_v18 }
0x16c0   :  { %v5953_v57 = vand.u32 4294901760, %v5952_v30 }
0x16c2   :  { %v14451_v62 = vpack.c.bf16 %v5953_v57, %v5946_v20 }
0x16c4   :  { %12847 = vmatpush3.bf16.msra.mxu1 %v14451_v62 }
0x16c5   :  { %12848 = vmatprep.subr.bf16.mxu1 %v13562_v7 }
0x16c7   :  { %11902 = vmatmul.mubr.f32.vlgmr.msra.gmra.mrb[18].mxu1 %v13564_v54 }
0x16c8   :  { %11912 = vmatprep.mubr.msk.f32.mxu1 %vm13563_vm1, %v13564_v54 }
0x172e   :  { %v4997_v35 = vpop.permute.xlu0 %4996 }
0x172f   :  { %v4999_v21 = vmul.f32 %v13495_v25, %v4997_v35  ;;  %v14457_v25 = vpack.c.bf16 %v14413_v46, %v14409_v1  ;;  %v12808_v1 = vpack.c.bf16 %v14405_v63, %v14400_v37  ;;  %v14480_v46 = vpack.c.bf16 %v5937_v3, %v5930_v33 }
0x1730   :  { %v12820_v33 = vpack.c.bf16 %v5208_v42, %v5201_v28  ;;  %v12824_v3 = vpack.c.bf16 %v5222_v44, %v5215_v32 }
0x1731   :  { %5001 = vrot.lane.b32.xlu1 %v4999_v21, %s13566_s15  ;;  %12850 = vmatpush3.bf16.msra.mxu1 %v14457_v25 }
0x1732   :  { %12851 = vmatprep.subr.bf16.mxu1 %v13562_v7 }
0x1735   :  { %12853 = vmatpush3.bf16.msra.mxu1 %v14465_v50 }
0x1736   :  { %12854 = vmatprep.subr.bf16.mxu1 %v13562_v7 }
0x1738   :  { %11913 = vmatmul.mubr.f32.vlgmr.msra.gmra.mrb[18].mxu1 %v13564_v54 }
0x1739   :  { %12856 = vmatpush3.bf16.msra.mxu1 %v14407_v0  ;;  %11923 = vmatprep.mubr.msk.f32.mxu1 %vm13563_vm1, %v13564_v54 }
0x173a   :  { %12857 = vmatprep.subr.bf16.mxu1 %v13562_v7 }
0x173d   :  { %12859 = vmatpush3.bf16.msra.mxu1 %v14417_v5 }
0x173e   :  { %12860 = vmatprep.subr.bf16.mxu1 %v13562_v7 }
0x1740   :  { %11924 = vmatmul.mubr.f32.vlgmr.msra.gmra.mrb[18].mxu1 %v13564_v54 }
0x1741   :  { %12862 = vmatpush3.bf16.msra.mxu1 %v14480_v46  ;;  %11934 = vmatprep.mubr.msk.f32.mxu1 %vm13563_vm1, %v13564_v54 }
0x1742   :  { %12863 = vmatprep.subr.bf16.mxu1 %v13562_v7 }
0x1745   :  { %12865 = vmatpush3.bf16.msra.mxu1 %v14487_v51 }
0x1746   :  { %12866 = vmatprep.subr.bf16.mxu1 %v13562_v7 }
0x1748   :  { %11935 = vmatmul.mubr.f32.vlgmr.msra.gmra.mrb[18].mxu1 %v13564_v54 }
0x1749   :  { %12868 = vmatpush3.bf16.msra.mxu1 %v14407_v0  ;;  %11945 = vmatprep.mubr.msk.f32.mxu1 %vm13563_vm1, %v13564_v54 }
0x174a   :  { %12869 = vmatprep.subr.bf16.mxu1 %v13562_v7 }
0x174d   :  { %12871 = vmatpush3.bf16.msra.mxu1 %v14417_v5 }
0x174e   :  { %12872 = vmatprep.subr.bf16.mxu1 %v13562_v7 }
0x1750   :  { %11946 = vmatmul.mubr.f32.vlgmr.msra.gmra.mrb[18].mxu1 %v13564_v54 }
0x1751   :  { %12874 = vmatpush3.bf16.msra.mxu1 %v14407_v0  ;;  %11956 = vmatprep.mubr.msk.f32.mxu1 %vm13563_vm1, %v13564_v54 }
0x1752   :  { %12875 = vmatprep.subr.bf16.mxu1 %v13562_v7 }
0x1755   :  { %12877 = vmatpush3.bf16.msra.mxu1 %v14417_v5 }
0x1756   :  { %12878 = vmatprep.subr.bf16.mxu1 %v13562_v7 }
0x17a3   :  { %v5002_v56 = vpop.permute.xlu1 %5001 }
0x17a4   :  { %5005 = vst.msk [vmem:[#allocation3 + $0x38] sm:$0xff] %vm847_vm2, %v5002_v56 }
0x17ab   :  { %v5013_v18 = vld [vmem:[#allocation3 + $0x38] sm:$0xff] }
0x17ac   :  { %v5047_v43 = vsel %vm847_vm2, %v5013_v18, 0 }
0x17ad   :  { %v14515_v23 = vand.u32 4294901760, %v5047_v43 }
0x17af   :  { %v5189_v9 = vsub.f32 %v5047_v43, %v14515_v23 }
0x17b1   :  { %v5190_v8 = vand.u32 4294901760, %v5189_v9 }
0x17b3   :  { %v5191_v28 = vsub.f32 %v5189_v9, %v5190_v8 }
0x17b5   :  { %v5192_v42 = vand.u32 4294901760, %v5191_v28 }
0x17b7   :  { %11780 = vmatmul.mubr.f32.gmra.mrb[20].mxu0 %v5192_v42 }
0x17b8   :  { %11790 = vmatprep.mubr.f32.mxu0 %v14205_v59 }
0x17bb   :  { %11791 = vmatmul.mubr.f32.vlgmr.msra.gmra.mrb[14].mxu0 %v14227_v6 }
0x17bc   :  { %11793 = vmatprep.mubr.f32.mxu0 %v14243_v34  ;;  %12807 = vmatpush3.bf16.msra.mxu0 %v12804_v55 }
0x17bd   :  { %12809 = vmatprep.subr.bf16.mxu0 %v12808_v1 }
0x17bf   :  { %11794 = vmatmul.mubr.f32.gmra.mrb[16].mxu0 %v14263_v16 }
0x17c0   :  { %11796 = vmatprep.mubr.f32.mxu0 %v14271_v45  ;;  %12811 = vmatpush3.bf16.msra.mxu0 %v12808_v1 }
0x17c1   :  { %12813 = vmatprep.subr.bf16.mxu0 %v14259_v41 }
0x17c3   :  { %11797 = vmatmul.mubr.f32.gmra.mrb[18].mxu0 %v14286_v53 }
0x17c4   :  { %11799 = vmatprep.mubr.f32.mxu0 %v14329_v58 }
0x17c7   :  { %11800 = vmatmul.mubr.f32.gmra.mrb[20].mxu0 %v14515_v23 }
0x17c8   :  { %11810 = vmatprep.mubr.f32.mxu0 %v14223_v2 }
0x17cb   :  { %11811 = vmatmul.mubr.f32.vlgmr.msra.gmra.mrb[14].mxu0 %v14252_v40 }
0x17cc   :  { %11813 = vmatprep.mubr.f32.mxu0 %v14269_v24  ;;  %12815 = vmatpush3.bf16.msra.mxu0 %v14259_v41 }
0x17cd   :  { %12817 = vmatprep.subr.bf16.mxu0 %v14280_v48 }
0x17cf   :  { %11814 = vmatmul.mubr.f32.gmra.mrb[16].mxu0 %v14284_v52 }
0x17d0   :  { %11816 = vmatprep.mubr.f32.mxu0 %v14290_v19  ;;  %12819 = vmatpush3.bf16.msra.mxu0 %v14280_v48 }
0x17d1   :  { %12821 = vmatprep.subr.bf16.mxu0 %v12820_v33 }
0x17d3   :  { %11817 = vmatmul.mubr.f32.gmra.mrb[18].mxu0 %v14300_v27 }
0x17d4   :  { %11819 = vmatprep.mubr.f32.mxu0 %v14332_v60 }
0x17d7   :  { %11820 = vmatmul.mubr.f32.gmra.mrb[20].mxu0 %v5189_v9 }
0x17d8   :  { %11830 = vmatprep.mubr.f32.mxu0 %v5120_v31 }
0x17db   :  { %11831 = vmatmul.mubr.f32.vlgmr.msra.gmra.mrb[14].mxu0 %v5130_v49 }
0x17dc   :  { %11833 = vmatprep.mubr.f32.mxu0 %v5140_v15  ;;  %12823 = vmatpush3.bf16.msra.mxu0 %v12820_v33 }
0x17dd   :  { %12825 = vmatprep.subr.bf16.mxu0 %v12824_v3 }
0x17df   :  { %11834 = vmatmul.mubr.f32.gmra.mrb[16].mxu0 %v5150_v26 }
0x17e0   :  { %11836 = vmatprep.mubr.f32.mxu0 %v5160_v29  ;;  %12827 = vmatpush3.bf16.msra.mxu0 %v12824_v3 }
0x17e1   :  { %12829 = vmatprep.subr.bf16.mxu0 %v14259_v41 }
0x17e3   :  { %11837 = vmatmul.mubr.f32.gmra.mrb[18].mxu0 %v5170_v36 }
0x17e4   :  { %11839 = vmatprep.mubr.f32.mxu0 %v5180_v61 }
0x17e7   :  { %11840 = vmatmul.mubr.f32.gmra.mrb[20].mxu0 %v5190_v8 }
0x17e8   :  { %11850 = vmatprep.mubr.f32.mxu0 %v14205_v59 }
0x17eb   :  { %11851 = vmatmul.mubr.f32.vlgmr.msra.gmra.mrb[14].mxu0 %v14227_v6 }
0x17ec   :  { %11853 = vmatprep.mubr.f32.mxu0 %v14243_v34  ;;  %12831 = vmatpush3.bf16.msra.mxu0 %v14259_v41 }
0x17ed   :  { %12833 = vmatprep.subr.bf16.mxu0 %v14280_v48 }
0x17ef   :  { %11854 = vmatmul.mubr.f32.gmra.mrb[16].mxu0 %v14263_v16 }
0x17f0   :  { %11856 = vmatprep.mubr.f32.mxu0 %v14271_v45  ;;  %12835 = vmatpush3.bf16.msra.mxu0 %v14280_v48 }
0x17f1   :  { %12908 = vmatprep.subr.bf16.mxu0 %v13562_v7 }
0x17f3   :  { %11857 = vmatmul.mubr.f32.gmra.mrb[18].mxu0 %v14286_v53 }
0x17f4   :  { %11859 = vmatprep.mubr.f32.mxu0 %v14329_v58 }
0x17f7   :  { %11860 = vmatmul.mubr.f32.gmra.mrb[20].mxu0 %v14515_v23 }
0x17f8   :  { %11870 = vmatprep.mubr.f32.mxu0 %v14205_v59 }
0x17fb   :  { %11871 = vmatmul.mubr.f32.vlgmr.msra.gmra.mrb[14].mxu0 %v14227_v6  ;;  %v10486_v6 = vld [vmem:[%s14953_s6] ss:$0 sm:$0xff] }
0x17fc   :  { %11873 = vmatprep.mubr.f32.mxu0 %v14243_v34  ;;  %12910 = vmatpush3.bf16.msra.mxu0 %v14407_v0 }
0x17fd   :  { %12911 = vmatprep.subr.bf16.mxu0 %v13562_v7 }
0x17ff   :  { %11874 = vmatmul.mubr.f32.gmra.mrb[16].mxu0 %v14263_v16 }
0x1800   :  { %11876 = vmatprep.mubr.f32.mxu0 %v14271_v45  ;;  %12913 = vmatpush3.bf16.msra.mxu0 %v14417_v5 }
0x1801   :  { %12914 = vmatprep.subr.bf16.mxu0 %v13562_v7 }
0x1803   :  { %11877 = vmatmul.mubr.f32.gmra.mrb[18].mxu0 %v14286_v53 }
0x1804   :  { %11879 = vmatprep.mubr.f32.mxu0 %v14329_v58 }
0x1807   :  { %11880 = vmatmul.mubr.f32.gmra.mrb[20].mxu0 %v14515_v23 }
0x1808   :  { %12022 = vmatprep.mubr.msk.f32.mxu0 %vm13563_vm1, %v13564_v54 }
0x1823   :  { %v6329_v59 = vpop.f32.mrb[18].mxu1 }
0x1824   :  { %v11947_v2 = vpop.f32.mrb[19].mxu1 }
0x18ce   :  { %v11872_v31 = vpop.f32.mrb[14].mxu0 }
0x18cf   :  { %v14581_v34 = vadd.f32 %v11872_v31, %v10486_v6  ;;  %v5789_v40 = vpop.f32.mrb[15].mxu0 }
0x18d0   :  { %v13179_v41 = vadd.f32 %v10486_v6, %v5789_v40 }
0x18d2   :  { %v6333_v16 = vadd.f32 %v13179_v41, %v6329_v59  ;;  %v11875_v24 = vpop.f32.mrb[16].mxu0 }
0x18d3   :  { %v14583_v45 = vadd.f32 %v11875_v24, %v10486_v6  ;;  %v5801_v48 = vpop.f32.mrb[17].mxu0 }
0x18d4   :  { %13498 = vtanh.f32 %v6333_v16  ;;  %v14585_v49 = vadd.f32 %v10486_v6, %v5801_v48  ;;  %v10487_v60 = vmul.f32 -1.442695, %v6333_v16 }
0x18d6   :  { %v11878_v52 = vpop.f32.mrb[18].mxu0  ;;  %13500 = vpow2.f32 %v10487_v60 }
0x18d7   :  { %v14587_v53 = vadd.f32 %v11878_v52, %v10486_v6  ;;  %v5813_v15 = vpop.f32.mrb[19].mxu0 }
0x18d8   :  { %v14589_v19 = vadd.f32 %v10486_v6, %v5813_v15 }
0x18da   :  { %v11881_v26 = vpop.f32.mrb[20].mxu0 }
0x18db   :  { %v14591_v27 = vadd.f32 %v11881_v26, %v10486_v6  ;;  %v5825_v29 = vpop.f32.mrb[21].mxu0 }
0x18dc   :  { %v14593_v36 = vadd.f32 %v10486_v6, %v5825_v29 }
0x18de   :  { %v13499_v58 = vpop.eup %13498 }
0x18df   :  { %6343 = vrot.lane.b32.xlu0 %v13499_v58, %s13565_s3 }
0x18e0   :  { %v13501_v61 = vpop.eup %13500 }
0x18e1   :  { %v6337_v37 = vadd.f32 1.0, %v13501_v61 }
0x18e3   :  { %13502 = vrcp.f32 %v6337_v37 }
0x18ed   :  { %v13503_v63 = vpop.eup %13502 }
0x18ee   :  { %v6341_v14 = vmul.f32 0.0, %v13503_v63 }
0x1951   :  { %v6344_v32 = vpop.permute.xlu0 %6343 }
0x1952   :  { %v6346_v44 = vmul.f32 %v13503_v63, %v6344_v32 }
0x1954   :  { %6348 = vrot.lane.b32.xlu1 %v6346_v44, %s13565_s3 }
0x19c6   :  { %v6349_v4 = vpop.permute.xlu1 %6348 }
0x19c7   :  { %v14597_v10 = vadd.f32 %v6349_v4, %v6341_v14 }
0x19c9   :  { %13504 = vtanh.f32 %v14597_v10 }
0x19d3   :  { %v13505_v11 = vpop.eup %13504 }
0x19d4   :  { %6354 = vrot.lane.b32.xlu0 %v13505_v11, %s13565_s3 }
0x1a46   :  { %v6355_v38 = vpop.permute.xlu0 %6354 }
0x1a47   :  { %v6357_v39 = vmul.f32 %v13503_v63, %v6355_v38 }
0x1a49   :  { %6360 = vrot.lane.b32.xlu1 %v6357_v39, %s13566_s15 }
0x1abb   :  { %v6361_v13 = vpop.permute.xlu1 %6360 }
0x1abc   :  { %v6362_v17 = vsel %vm847_vm2, %v6361_v13, 0 }
0x1abd   :  { %v6433_v47 = vand.u32 4294901760, %v6362_v17 }
0x1abf   :  { %v6434_v22 = vsub.f32 %v6362_v17, %v6433_v47 }
0x1ac1   :  { %v6435_v20 = vand.u32 4294901760, %v6434_v22 }
0x1ac3   :  { %v6436_v30 = vsub.f32 %v6434_v22, %v6435_v20 }
0x1ac5   :  { %v6437_v35 = vand.u32 4294901760, %v6436_v30 }
0x1ac7   :  { %11957 = vmatmul.mubr.f32.vlgmr.msra.gmra.mrb[20].mxu1 %v6437_v35 }
0x1ac8   :  { %12880 = vmatpush3.bf16.msra.mxu1 %v14444_v12  ;;  %11967 = vmatprep.mubr.msk.f32.mxu1 %vm13563_vm1, %v13564_v54 }
0x1ac9   :  { %12881 = vmatprep.subr.bf16.mxu1 %v13562_v7 }
0x1acc   :  { %12883 = vmatpush3.bf16.msra.mxu1 %v14451_v62 }
0x1acd   :  { %12884 = vmatprep.subr.bf16.mxu1 %v13562_v7 }
0x1acf   :  { %11968 = vmatmul.mubr.f32.vlgmr.msra.gmra.mrb[20].mxu1 %v6433_v47 }
0x1ad0   :  { %12886 = vmatpush3.bf16.msra.mxu1 %v14457_v25  ;;  %11978 = vmatprep.mubr.msk.f32.mxu1 %vm13563_vm1, %v13564_v54 }
0x1ad1   :  { %12887 = vmatprep.subr.bf16.mxu1 %v13562_v7 }
0x1ad4   :  { %12889 = vmatpush3.bf16.msra.mxu1 %v14465_v50 }
0x1ad5   :  { %12890 = vmatprep.subr.bf16.mxu1 %v13562_v7 }
0x1ad7   :  { %11979 = vmatmul.mubr.f32.vlgmr.msra.gmra.mrb[20].mxu1 %v6434_v22 }
0x1ad8   :  { %12892 = vmatpush3.bf16.msra.mxu1 %v14407_v0  ;;  %11989 = vmatprep.mubr.msk.f32.mxu1 %vm13563_vm1, %v13564_v54 }
0x1ad9   :  { %12893 = vmatprep.subr.bf16.mxu1 %v13562_v7 }
0x1adc   :  { %12895 = vmatpush3.bf16.msra.mxu1 %v14417_v5 }
0x1add   :  { %12896 = vmatprep.subr.bf16.mxu1 %v13562_v7 }
0x1adf   :  { %11990 = vmatmul.mubr.f32.vlgmr.msra.gmra.mrb[20].mxu1 %v6435_v20 }
0x1ae0   :  { %12898 = vmatpush3.bf16.msra.mxu1 %v14480_v46  ;;  %12000 = vmatprep.mubr.msk.f32.mxu1 %vm13563_vm1, %v13564_v54 }
0x1ae1   :  { %12899 = vmatprep.subr.bf16.mxu1 %v13562_v7 }
0x1ae4   :  { %12901 = vmatpush3.bf16.msra.mxu1 %v14487_v51 }
0x1ae5   :  { %12902 = vmatprep.subr.bf16.mxu1 %v13562_v7 }
0x1ae7   :  { %12001 = vmatmul.mubr.f32.vlgmr.msra.gmra.mrb[20].mxu1 %v6433_v47 }
0x1ae8   :  { %12904 = vmatpush3.bf16.msra.mxu1 %v14407_v0  ;;  %12011 = vmatprep.mubr.msk.f32.mxu1 %vm13563_vm1, %v13564_v54 }
0x1ae9   :  { %12905 = vmatprep.subr.bf16.mxu1 %v13562_v7 }
0x1aec   :  { %12907 = vmatpush3.bf16.msra.mxu1 %v14417_v5 }
0x1aed   :  { %12944 = vmatprep.subr.bf16.mxu1 %v13562_v7 }
0x1aef   :  { %12012 = vmatmul.mubr.f32.vlgmr.msra.gmra.mrb[20].mxu1 %v6433_v47 }
0x1af0   :  { %12946 = vmatpush3.bf16.msra.mxu1 %v14407_v0  ;;  %12088 = vmatprep.mubr.msk.f32.mxu1 %vm13563_vm1, %v13564_v54 }
0x1af1   :  { %12947 = vmatprep.subr.bf16.mxu1 %v13562_v7 }
0x1af4   :  { %12949 = vmatpush3.bf16.msra.mxu1 %v14417_v5 }
0x1af5   :  { %12950 = vmatprep.subr.bf16.mxu1 %v13562_v7 }
0x1bc2   :  { %v6845_v21 = vpop.f32.mrb[20].mxu1 }
0x1bc3   :  { %v6849_v57 = vadd.f32 %v14581_v34, %v6845_v21  ;;  %v12013_v55 = vpop.f32.mrb[21].mxu1 }
0x1bc5   :  { %13506 = vtanh.f32 %v6849_v57  ;;  %v10488_v33 = vmul.f32 -1.442695, %v6849_v57 }
0x1bc7   :  { %13508 = vpow2.f32 %v10488_v33 }
0x1bcf   :  { %v13507_v1 = vpop.eup %13506 }
0x1bd0   :  { %6859 = vrot.lane.b32.xlu0 %v13507_v1, %s13565_s3 }
0x1bd1   :  { %v13509_v3 = vpop.eup %13508 }
0x1bd2   :  { %v6853_v56 = vadd.f32 1.0, %v13509_v3 }
0x1bd4   :  { %13510 = vrcp.f32 %v6853_v56 }
0x1bde   :  { %v13511_v18 = vpop.eup %13510 }
0x1bdf   :  { %v6857_v9 = vmul.f32 %v13511_v18, %v14597_v10 }
0x1c42   :  { %v6860_v43 = vpop.permute.xlu0 %6859 }
0x1c43   :  { %v6862_v23 = vmul.f32 %v13511_v18, %v6860_v43 }
0x1c45   :  { %6864 = vrot.lane.b32.xlu1 %v6862_v23, %s13565_s3 }
0x1cb7   :  { %v6865_v8 = vpop.permute.xlu1 %6864 }
0x1cb8   :  { %v14643_v28 = vadd.f32 %v6865_v8, %v6857_v9 }
0x1cba   :  { %13512 = vtanh.f32 %v14643_v28 }
0x1cc4   :  { %v13513_v42 = vpop.eup %13512 }
0x1cc5   :  { %6870 = vrot.lane.b32.xlu0 %v13513_v42, %s13565_s3 }
0x1d37   :  { %v6871_v59 = vpop.permute.xlu0 %6870 }
0x1d38   :  { %v6873_v2 = vmul.f32 %v13511_v18, %v6871_v59 }
0x1d3a   :  { %6876 = vrot.lane.b32.xlu1 %v6873_v2, %s13566_s15 }
0x1dac   :  { %v6877_v6 = vpop.permute.xlu1 %6876 }
0x1dad   :  { %v6878_v31 = vsel %vm847_vm2, %v6877_v6, 0 }
0x1dae   :  { %v6949_v34 = vand.u32 4294901760, %v6878_v31 }
0x1db0   :  { %v6950_v40 = vsub.f32 %v6878_v31, %v6949_v34 }
0x1db2   :  { %v6951_v41 = vand.u32 4294901760, %v6950_v40 }
0x1db4   :  { %v6952_v16 = vsub.f32 %v6950_v40, %v6951_v41 }
0x1db6   :  { %v6953_v24 = vand.u32 4294901760, %v6952_v16 }
0x1db8   :  { %12023 = vmatmul.mubr.f32.vlgmr.msra.gmra.mrb[22].mxu0 %v6953_v24 }
0x1db9   :  { %12916 = vmatpush3.bf16.msra.mxu0 %v14444_v12  ;;  %12033 = vmatprep.mubr.msk.f32.mxu0 %vm13563_vm1, %v13564_v54 }
0x1dba   :  { %12917 = vmatprep.subr.bf16.mxu0 %v13562_v7 }
0x1dbd   :  { %12919 = vmatpush3.bf16.msra.mxu0 %v14451_v62 }
0x1dbe   :  { %12920 = vmatprep.subr.bf16.mxu0 %v13562_v7 }
0x1dc0   :  { %12034 = vmatmul.mubr.f32.vlgmr.msra.gmra.mrb[22].mxu0 %v6949_v34 }
0x1dc1   :  { %12922 = vmatpush3.bf16.msra.mxu0 %v14457_v25  ;;  %12044 = vmatprep.mubr.msk.f32.mxu0 %vm13563_vm1, %v13564_v54 }
0x1dc2   :  { %12923 = vmatprep.subr.bf16.mxu0 %v13562_v7 }
0x1dc5   :  { %12925 = vmatpush3.bf16.msra.mxu0 %v14465_v50 }
0x1dc6   :  { %12926 = vmatprep.subr.bf16.mxu0 %v13562_v7 }
0x1dc8   :  { %12045 = vmatmul.mubr.f32.vlgmr.msra.gmra.mrb[22].mxu0 %v6950_v40 }
0x1dc9   :  { %12928 = vmatpush3.bf16.msra.mxu0 %v14407_v0  ;;  %12055 = vmatprep.mubr.msk.f32.mxu0 %vm13563_vm1, %v13564_v54 }
0x1dca   :  { %12929 = vmatprep.subr.bf16.mxu0 %v13562_v7 }
0x1dcd   :  { %12931 = vmatpush3.bf16.msra.mxu0 %v14417_v5 }
0x1dce   :  { %12932 = vmatprep.subr.bf16.mxu0 %v13562_v7 }
0x1dd0   :  { %12056 = vmatmul.mubr.f32.vlgmr.msra.gmra.mrb[22].mxu0 %v6951_v41 }
0x1dd1   :  { %12934 = vmatpush3.bf16.msra.mxu0 %v14480_v46  ;;  %12066 = vmatprep.mubr.msk.f32.mxu0 %vm13563_vm1, %v13564_v54 }
0x1dd2   :  { %12935 = vmatprep.subr.bf16.mxu0 %v13562_v7 }
0x1dd5   :  { %12937 = vmatpush3.bf16.msra.mxu0 %v14487_v51 }
0x1dd6   :  { %12938 = vmatprep.subr.bf16.mxu0 %v13562_v7 }
0x1dd8   :  { %12067 = vmatmul.mubr.f32.vlgmr.msra.gmra.mrb[22].mxu0 %v6949_v34 }
0x1dd9   :  { %12940 = vmatpush3.bf16.msra.mxu0 %v14407_v0  ;;  %12077 = vmatprep.mubr.msk.f32.mxu0 %vm13563_vm1, %v13564_v54 }
0x1dda   :  { %12941 = vmatprep.subr.bf16.mxu0 %v13562_v7 }
0x1ddd   :  { %12943 = vmatpush3.bf16.msra.mxu0 %v14417_v5 }
0x1dde   :  { %12980 = vmatprep.subr.bf16.mxu0 %v13562_v7 }
0x1de0   :  { %12078 = vmatmul.mubr.f32.vlgmr.msra.gmra.mrb[22].mxu0 %v6949_v34 }
0x1de1   :  { %12982 = vmatpush3.bf16.msra.mxu0 %v14407_v0  ;;  %12154 = vmatprep.mubr.msk.f32.mxu0 %vm13563_vm1, %v13564_v54 }
0x1de2   :  { %12983 = vmatprep.subr.bf16.mxu0 %v13562_v7 }
0x1de5   :  { %12985 = vmatpush3.bf16.msra.mxu0 %v14417_v5 }
0x1de6   :  { %12986 = vmatprep.subr.bf16.mxu0 %v13562_v7 }
0x1eb3   :  { %v7361_v48 = vpop.f32.mrb[22].mxu0 }
0x1eb4   :  { %v7365_v52 = vadd.f32 %v14585_v49, %v7361_v48  ;;  %v12079_v15 = vpop.f32.mrb[23].mxu0 }
0x1eb6   :  { %13514 = vtanh.f32 %v7365_v52  ;;  %v10489_v29 = vmul.f32 -1.442695, %v7365_v52 }
0x1eb8   :  { %13516 = vpow2.f32 %v10489_v29 }
0x1ec0   :  { %v13515_v26 = vpop.eup %13514 }
0x1ec1   :  { %7375 = vrot.lane.b32.xlu0 %v13515_v26, %s13565_s3 }
0x1ec2   :  { %v13517_v58 = vpop.eup %13516 }
0x1ec3   :  { %v7369_v60 = vadd.f32 1.0, %v13517_v58 }
0x1ec5   :  { %13518 = vrcp.f32 %v7369_v60 }
0x1ecf   :  { %v13519_v61 = vpop.eup %13518 }
0x1ed0   :  { %v7373_v32 = vmul.f32 %v13519_v61, %v14643_v28 }
0x1f33   :  { %v7376_v37 = vpop.permute.xlu0 %7375 }
0x1f34   :  { %v7378_v63 = vmul.f32 %v13519_v61, %v7376_v37 }
0x1f36   :  { %7380 = vrot.lane.b32.xlu1 %v7378_v63, %s13565_s3 }
0x1fa8   :  { %v7381_v44 = vpop.permute.xlu1 %7380 }
0x1fa9   :  { %v14689_v14 = vadd.f32 %v7381_v44, %v7373_v32 }
0x1fab   :  { %13520 = vtanh.f32 %v14689_v14 }
0x1fb5   :  { %v13521_v49 = vpop.eup %13520 }
0x1fb6   :  { %7386 = vrot.lane.b32.xlu0 %v13521_v49, %s13565_s3 }
0x2028   :  { %v7387_v4 = vpop.permute.xlu0 %7386 }
0x2029   :  { %v7389_v10 = vmul.f32 %v13519_v61, %v7387_v4 }
0x202b   :  { %7392 = vrot.lane.b32.xlu1 %v7389_v10, %s13566_s15 }
0x209d   :  { %v7393_v11 = vpop.permute.xlu1 %7392 }
0x209e   :  { %v7394_v38 = vsel %vm847_vm2, %v7393_v11, 0 }
0x209f   :  { %v7465_v39 = vand.u32 4294901760, %v7394_v38 }
0x20a1   :  { %v7466_v13 = vsub.f32 %v7394_v38, %v7465_v39 }
0x20a3   :  { %v7467_v17 = vand.u32 4294901760, %v7466_v13 }
0x20a5   :  { %v7468_v47 = vsub.f32 %v7466_v13, %v7467_v17 }
0x20a7   :  { %v7469_v22 = vand.u32 4294901760, %v7468_v47 }
0x20a9   :  { %12089 = vmatmul.mubr.f32.vlgmr.msra.gmra.mrb[22].mxu1 %v7469_v22 }
0x20aa   :  { %12952 = vmatpush3.bf16.msra.mxu1 %v14444_v12  ;;  %12099 = vmatprep.mubr.msk.f32.mxu1 %vm13563_vm1, %v13564_v54 }
0x20ab   :  { %12953 = vmatprep.subr.bf16.mxu1 %v13562_v7 }
0x20ae   :  { %12955 = vmatpush3.bf16.msra.mxu1 %v14451_v62 }
0x20af   :  { %12956 = vmatprep.subr.bf16.mxu1 %v13562_v7 }
0x20b1   :  { %12100 = vmatmul.mubr.f32.vlgmr.msra.gmra.mrb[22].mxu1 %v7465_v39 }
0x20b2   :  { %12958 = vmatpush3.bf16.msra.mxu1 %v14457_v25  ;;  %12110 = vmatprep.mubr.msk.f32.mxu1 %vm13563_vm1, %v13564_v54 }
0x20b3   :  { %12959 = vmatprep.subr.bf16.mxu1 %v13562_v7 }
0x20b6   :  { %12961 = vmatpush3.bf16.msra.mxu1 %v14465_v50 }
0x20b7   :  { %12962 = vmatprep.subr.bf16.mxu1 %v13562_v7 }
0x20b9   :  { %12111 = vmatmul.mubr.f32.vlgmr.msra.gmra.mrb[22].mxu1 %v7466_v13 }
0x20ba   :  { %12964 = vmatpush3.bf16.msra.mxu1 %v14407_v0  ;;  %12121 = vmatprep.mubr.msk.f32.mxu1 %vm13563_vm1, %v13564_v54 }
0x20bb   :  { %12965 = vmatprep.subr.bf16.mxu1 %v13562_v7 }
0x20be   :  { %12967 = vmatpush3.bf16.msra.mxu1 %v14417_v5 }
0x20bf   :  { %12968 = vmatprep.subr.bf16.mxu1 %v13562_v7 }
0x20c1   :  { %12122 = vmatmul.mubr.f32.vlgmr.msra.gmra.mrb[22].mxu1 %v7467_v17 }
0x20c2   :  { %12970 = vmatpush3.bf16.msra.mxu1 %v14480_v46  ;;  %12132 = vmatprep.mubr.msk.f32.mxu1 %vm13563_vm1, %v13564_v54 }
0x20c3   :  { %12971 = vmatprep.subr.bf16.mxu1 %v13562_v7 }
0x20c6   :  { %12973 = vmatpush3.bf16.msra.mxu1 %v14487_v51 }
0x20c7   :  { %12974 = vmatprep.subr.bf16.mxu1 %v13562_v7 }
0x20c9   :  { %12133 = vmatmul.mubr.f32.vlgmr.msra.gmra.mrb[22].mxu1 %v7465_v39 }
0x20ca   :  { %12976 = vmatpush3.bf16.msra.mxu1 %v14407_v0  ;;  %12143 = vmatprep.mubr.msk.f32.mxu1 %vm13563_vm1, %v13564_v54 }
0x20cb   :  { %12977 = vmatprep.subr.bf16.mxu1 %v13562_v7 }
0x20ce   :  { %12979 = vmatpush3.bf16.msra.mxu1 %v14417_v5 }
0x20cf   :  { %13016 = vmatprep.subr.bf16.mxu1 %v13562_v7 }
0x20d1   :  { %12144 = vmatmul.mubr.f32.vlgmr.msra.gmra.mrb[22].mxu1 %v7465_v39 }
0x20d2   :  { %13018 = vmatpush3.bf16.msra.mxu1 %v14407_v0  ;;  %12220 = vmatprep.mubr.msk.f32.mxu1 %vm13563_vm1, %v13564_v54 }
0x20d3   :  { %13019 = vmatprep.subr.bf16.mxu1 %v13562_v7 }
0x20d6   :  { %13021 = vmatpush3.bf16.msra.mxu1 %v14417_v5 }
0x20d7   :  { %13022 = vmatprep.subr.bf16.mxu1 %v13562_v7 }
0x21a4   :  { %v7877_v20 = vpop.f32.mrb[22].mxu1 }
0x21a5   :  { %v7881_v30 = vadd.f32 %v14583_v45, %v7877_v20  ;;  %v12145_v35 = vpop.f32.mrb[23].mxu1 }
0x21a7   :  { %13522 = vtanh.f32 %v7881_v30  ;;  %v10490_v57 = vmul.f32 -1.442695, %v7881_v30 }
0x21a9   :  { %13524 = vpow2.f32 %v10490_v57 }
0x21b1   :  { %v13523_v21 = vpop.eup %13522 }
0x21b2   :  { %7891 = vrot.lane.b32.xlu0 %v13523_v21, %s13565_s3 }
0x21b3   :  { %v13525_v55 = vpop.eup %13524 }
0x21b4   :  { %v7885_v1 = vadd.f32 1.0, %v13525_v55 }
0x21b6   :  { %13526 = vrcp.f32 %v7885_v1 }
0x21c0   :  { %v13527_v33 = vpop.eup %13526 }
0x21c1   :  { %v7889_v18 = vmul.f32 %v13527_v33, %v14689_v14 }
0x2224   :  { %v7892_v3 = vpop.permute.xlu0 %7891 }
0x2225   :  { %v7894_v56 = vmul.f32 %v13527_v33, %v7892_v3 }
0x2227   :  { %7896 = vrot.lane.b32.xlu1 %v7894_v56, %s13565_s3 }
0x2299   :  { %v7897_v43 = vpop.permute.xlu1 %7896 }
0x229a   :  { %v14735_v23 = vadd.f32 %v7897_v43, %v7889_v18 }
0x229c   :  { %13528 = vtanh.f32 %v14735_v23 }
0x22a6   :  { %v13529_v45 = vpop.eup %13528 }
0x22a7   :  { %7902 = vrot.lane.b32.xlu0 %v13529_v45, %s13565_s3 }
0x2319   :  { %v7903_v9 = vpop.permute.xlu0 %7902 }
0x231a   :  { %v7905_v8 = vmul.f32 %v13527_v33, %v7903_v9 }
0x231c   :  { %7908 = vrot.lane.b32.xlu1 %v7905_v8, %s13566_s15 }
0x238e   :  { %v7909_v28 = vpop.permute.xlu1 %7908 }
0x238f   :  { %v7910_v42 = vsel %vm847_vm2, %v7909_v28, 0 }
0x2390   :  { %v7981_v59 = vand.u32 4294901760, %v7910_v42 }
0x2392   :  { %v7982_v2 = vsub.f32 %v7910_v42, %v7981_v59 }
0x2394   :  { %v7983_v6 = vand.u32 4294901760, %v7982_v2 }
0x2396   :  { %v7984_v31 = vsub.f32 %v7982_v2, %v7983_v6 }
0x2398   :  { %v7985_v34 = vand.u32 4294901760, %v7984_v31 }
0x239a   :  { %12155 = vmatmul.mubr.f32.vlgmr.msra.gmra.mrb[24].mxu0 %v7985_v34 }
0x239b   :  { %12988 = vmatpush3.bf16.msra.mxu0 %v14444_v12  ;;  %12165 = vmatprep.mubr.msk.f32.mxu0 %vm13563_vm1, %v13564_v54 }
0x239c   :  { %12989 = vmatprep.subr.bf16.mxu0 %v13562_v7 }
0x239f   :  { %12991 = vmatpush3.bf16.msra.mxu0 %v14451_v62 }
0x23a0   :  { %12992 = vmatprep.subr.bf16.mxu0 %v13562_v7 }
0x23a2   :  { %12166 = vmatmul.mubr.f32.vlgmr.msra.gmra.mrb[24].mxu0 %v7981_v59 }
0x23a3   :  { %12994 = vmatpush3.bf16.msra.mxu0 %v14457_v25  ;;  %12176 = vmatprep.mubr.msk.f32.mxu0 %vm13563_vm1, %v13564_v54 }
0x23a4   :  { %12995 = vmatprep.subr.bf16.mxu0 %v13562_v7 }
0x23a7   :  { %12997 = vmatpush3.bf16.msra.mxu0 %v14465_v50 }
0x23a8   :  { %12998 = vmatprep.subr.bf16.mxu0 %v13562_v7 }
0x23aa   :  { %12177 = vmatmul.mubr.f32.vlgmr.msra.gmra.mrb[24].mxu0 %v7982_v2 }
0x23ab   :  { %13000 = vmatpush3.bf16.msra.mxu0 %v14407_v0  ;;  %12187 = vmatprep.mubr.msk.f32.mxu0 %vm13563_vm1, %v13564_v54 }
0x23ac   :  { %13001 = vmatprep.subr.bf16.mxu0 %v13562_v7 }
0x23af   :  { %13003 = vmatpush3.bf16.msra.mxu0 %v14417_v5 }
0x23b0   :  { %13004 = vmatprep.subr.bf16.mxu0 %v13562_v7 }
0x23b2   :  { %12188 = vmatmul.mubr.f32.vlgmr.msra.gmra.mrb[24].mxu0 %v7983_v6 }
0x23b3   :  { %13006 = vmatpush3.bf16.msra.mxu0 %v14480_v46  ;;  %12198 = vmatprep.mubr.msk.f32.mxu0 %vm13563_vm1, %v13564_v54 }
0x23b4   :  { %13007 = vmatprep.subr.bf16.mxu0 %v13562_v7 }
0x23b7   :  { %13009 = vmatpush3.bf16.msra.mxu0 %v14487_v51 }
0x23b8   :  { %13010 = vmatprep.subr.bf16.mxu0 %v13562_v7 }
0x23ba   :  { %12199 = vmatmul.mubr.f32.vlgmr.msra.gmra.mrb[24].mxu0 %v7981_v59 }
0x23bb   :  { %13012 = vmatpush3.bf16.msra.mxu0 %v14407_v0  ;;  %12209 = vmatprep.mubr.msk.f32.mxu0 %vm13563_vm1, %v13564_v54 }
0x23bc   :  { %13013 = vmatprep.subr.bf16.mxu0 %v13562_v7 }
0x23bf   :  { %13015 = vmatpush3.bf16.msra.mxu0 %v14417_v5 }
0x23c0   :  { %13052 = vmatprep.subr.bf16.mxu0 %v13562_v7 }
0x23c2   :  { %12210 = vmatmul.mubr.f32.vlgmr.msra.gmra.mrb[24].mxu0 %v7981_v59 }
0x23c3   :  { %13054 = vmatpush3.bf16.msra.mxu0 %v14407_v0  ;;  %12286 = vmatprep.mubr.msk.f32.mxu0 %vm13563_vm1, %v13564_v54 }
0x23c4   :  { %13055 = vmatprep.subr.bf16.mxu0 %v13562_v7 }
0x23c7   :  { %13057 = vmatpush3.bf16.msra.mxu0 %v14417_v5 }
0x23c8   :  { %13058 = vmatprep.subr.bf16.mxu0 %v13562_v7 }
0x2495   :  { %v8393_v40 = vpop.f32.mrb[24].mxu0 }
0x2496   :  { %v8397_v41 = vadd.f32 %v14589_v19, %v8393_v40  ;;  %v12211_v16 = vpop.f32.mrb[25].mxu0 }
0x2498   :  { %13530 = vtanh.f32 %v8397_v41  ;;  %v10491_v48 = vmul.f32 -1.442695, %v8397_v41 }
0x249a   :  { %13532 = vpow2.f32 %v10491_v48 }
0x24a2   :  { %v13531_v24 = vpop.eup %13530 }
0x24a3   :  { %8407 = vrot.lane.b32.xlu0 %v13531_v24, %s13565_s3 }
0x24a4   :  { %v13533_v52 = vpop.eup %13532 }
0x24a5   :  { %v8401_v15 = vadd.f32 1.0, %v13533_v52 }
0x24a7   :  { %13534 = vrcp.f32 %v8401_v15 }
0x24b1   :  { %v13535_v26 = vpop.eup %13534 }
0x24b2   :  { %v8405_v60 = vmul.f32 %v13535_v26, %v14735_v23 }
0x2515   :  { %v8408_v29 = vpop.permute.xlu0 %8407 }
0x2516   :  { %v8410_v58 = vmul.f32 %v13535_v26, %v8408_v29 }
0x2518   :  { %8412 = vrot.lane.b32.xlu1 %v8410_v58, %s13565_s3 }
0x258a   :  { %v8413_v61 = vpop.permute.xlu1 %8412 }
0x258b   :  { %v14781_v37 = vadd.f32 %v8413_v61, %v8405_v60 }
0x258d   :  { %13536 = vtanh.f32 %v14781_v37 }
0x2597   :  { %v13537_v19 = vpop.eup %13536 }
0x2598   :  { %8418 = vrot.lane.b32.xlu0 %v13537_v19, %s13565_s3 }
0x260a   :  { %v8419_v63 = vpop.permute.xlu0 %8418 }
0x260b   :  { %v8421_v32 = vmul.f32 %v13535_v26, %v8419_v63 }
0x260d   :  { %8424 = vrot.lane.b32.xlu1 %v8421_v32, %s13566_s15 }
0x267f   :  { %v8425_v44 = vpop.permute.xlu1 %8424 }
0x2680   :  { %v8426_v14 = vsel %vm847_vm2, %v8425_v44, 0 }
0x2681   :  { %v8497_v49 = vand.u32 4294901760, %v8426_v14 }
0x2683   :  { %v8498_v4 = vsub.f32 %v8426_v14, %v8497_v49 }
0x2685   :  { %v8499_v10 = vand.u32 4294901760, %v8498_v4 }
0x2687   :  { %v8500_v11 = vsub.f32 %v8498_v4, %v8499_v10 }
0x2689   :  { %v8501_v38 = vand.u32 4294901760, %v8500_v11  ;;  %v9970_v11 = vld [vmem:[%s14954_s7] sm:$0xff] }
0x268b   :  { %12221 = vmatmul.mubr.f32.vlgmr.msra.gmra.mrb[24].mxu1 %v8501_v38  ;;  %v9971_v38 = vld [vmem:[%s14954_s7 + $0x8] sm:$0xff] }
0x268c   :  { %13024 = vmatpush3.bf16.msra.mxu1 %v14444_v12  ;;  %12231 = vmatprep.mubr.msk.f32.mxu1 %vm13563_vm1, %v13564_v54 }
0x268d   :  { %13025 = vmatprep.subr.bf16.mxu1 %v13562_v7 }
0x2690   :  { %13027 = vmatpush3.bf16.msra.mxu1 %v14451_v62 }
0x2691   :  { %13028 = vmatprep.subr.bf16.mxu1 %v13562_v7 }
0x2693   :  { %12232 = vmatmul.mubr.f32.vlgmr.msra.gmra.mrb[24].mxu1 %v8497_v49 }
0x2694   :  { %13030 = vmatpush3.bf16.msra.mxu1 %v14457_v25  ;;  %12242 = vmatprep.mubr.msk.f32.mxu1 %vm13563_vm1, %v13564_v54 }
0x2695   :  { %13031 = vmatprep.subr.bf16.mxu1 %v13562_v7 }
0x2698   :  { %13033 = vmatpush3.bf16.msra.mxu1 %v14465_v50 }
0x2699   :  { %13034 = vmatprep.subr.bf16.mxu1 %v13562_v7 }
0x269b   :  { %12243 = vmatmul.mubr.f32.vlgmr.msra.gmra.mrb[24].mxu1 %v8498_v4 }
0x269c   :  { %13036 = vmatpush3.bf16.msra.mxu1 %v14407_v0  ;;  %12253 = vmatprep.mubr.msk.f32.mxu1 %vm13563_vm1, %v13564_v54 }
0x269d   :  { %13037 = vmatprep.subr.bf16.mxu1 %v13562_v7 }
0x26a0   :  { %13039 = vmatpush3.bf16.msra.mxu1 %v14417_v5 }
0x26a1   :  { %13040 = vmatprep.subr.bf16.mxu1 %v13562_v7 }
0x26a3   :  { %12254 = vmatmul.mubr.f32.vlgmr.msra.gmra.mrb[24].mxu1 %v8499_v10 }
0x26a4   :  { %13042 = vmatpush3.bf16.msra.mxu1 %v14480_v46  ;;  %12264 = vmatprep.mubr.msk.f32.mxu1 %vm13563_vm1, %v13564_v54 }
0x26a5   :  { %13043 = vmatprep.subr.bf16.mxu1 %v13562_v7 }
0x26a8   :  { %13045 = vmatpush3.bf16.msra.mxu1 %v14487_v51 }
0x26a9   :  { %13046 = vmatprep.subr.bf16.mxu1 %v13562_v7 }
0x26ab   :  { %12265 = vmatmul.mubr.f32.vlgmr.msra.gmra.mrb[24].mxu1 %v8497_v49 }
0x26ac   :  { %13048 = vmatpush3.bf16.msra.mxu1 %v14407_v0  ;;  %12275 = vmatprep.mubr.msk.f32.mxu1 %vm13563_vm1, %v13564_v54 }
0x26ad   :  { %13049 = vmatprep.subr.bf16.mxu1 %v13562_v7 }
0x26b0   :  { %13051 = vmatpush3.bf16.msra.mxu1 %v14417_v5 }
0x26b1   :  { %13088 = vmatprep.subr.bf16.mxu1 %v13562_v7 }
0x26b3   :  { %12276 = vmatmul.mubr.f32.vlgmr.msra.gmra.mrb[24].mxu1 %v8497_v49 }
0x26b4   :  { %13090 = vmatpush3.bf16.msra.mxu1 %v14407_v0  ;;  %12352 = vmatprep.mubr.msk.f32.mxu1 %vm13563_vm1, %v13564_v54 }
0x26b5   :  { %13091 = vmatprep.subr.bf16.mxu1 %v13562_v7 }
0x26b8   :  { %13093 = vmatpush3.bf16.msra.mxu1 %v14417_v5 }
0x26b9   :  { %13094 = vmatprep.subr.bf16.mxu1 %v13562_v7 }
0x2786   :  { %v8909_v39 = vpop.f32.mrb[24].mxu1 }
0x2787   :  { %v8913_v13 = vadd.f32 %v14587_v53, %v8909_v39  ;;  %v12277_v17 = vpop.f32.mrb[25].mxu1  ;;  %v9987_v39 = vand.u32 4294901760, %v9970_v11 }
0x2789   :  { %13538 = vtanh.f32 %v8913_v13  ;;  %v10492_v22 = vmul.f32 -1.442695, %v8913_v13  ;;  %v9990_v13 = vand.u32 4294901760, %v9971_v38 }
0x278b   :  { %13540 = vpow2.f32 %v10492_v22  ;;  %v14907_v17 = vpack.c.bf16 %v9990_v13, %v9987_v39  ;;  %v10074_v22 = vsub.f32 %v9971_v38, %v9990_v13 }
0x2793   :  { %v13539_v47 = vpop.eup %13538 }
0x2794   :  { %8923 = vrot.lane.b32.xlu0 %v13539_v47, %s13565_s3  ;;  %v10067_v47 = vsub.f32 %v9970_v11, %v9987_v39 }
0x2795   :  { %v13541_v20 = vpop.eup %13540 }
0x2796   :  { %v8917_v30 = vadd.f32 1.0, %v13541_v20  ;;  %v9972_v20 = vld [vmem:[%s14954_s7 + $0x10] sm:$0xff] }
0x2798   :  { %13542 = vrcp.f32 %v8917_v30  ;;  %v9973_v30 = vld [vmem:[%s14954_s7 + $0x18] sm:$0xff] }
0x27a2   :  { %v13543_v35 = vpop.eup %13542 }
0x27a3   :  { %v8921_v55 = vmul.f32 %v13543_v35, %v14781_v37 }
0x2806   :  { %v8924_v21 = vpop.permute.xlu0 %8923 }
0x2807   :  { %v8926_v57 = vmul.f32 %v13543_v35, %v8924_v21  ;;  %v9996_v21 = vand.u32 4294901760, %v9973_v30 }
0x2809   :  { %8928 = vrot.lane.b32.xlu1 %v8926_v57, %s13565_s3  ;;  %v10068_v57 = vand.u32 4294901760, %v10067_v47 }
0x287b   :  { %v8929_v1 = vpop.permute.xlu1 %8928 }
0x287c   :  { %v8931_v33 = vadd.f32 %v8929_v1, %v8921_v55  ;;  %v10075_v55 = vand.u32 4294901760, %v10074_v22 }
0x287e   :  { %13544 = vtanh.f32 %v8931_v33 }
0x2888   :  { %v13545_v53 = vpop.eup %13544 }
0x2889   :  { %8934 = vrot.lane.b32.xlu0 %v13545_v53, %s13565_s3  ;;  %v10088_v53 = vsub.f32 %v9973_v30, %v9996_v21 }
0x28fb   :  { %v8935_v3 = vpop.permute.xlu0 %8934 }
0x28fc   :  { %v8937_v56 = vmul.f32 %v13543_v35, %v8935_v3  ;;  %v9993_v35 = vand.u32 4294901760, %v9972_v20  ;;  %v10069_v3 = vsub.f32 %v10067_v47, %v10068_v57 }
0x28fe   :  { %8940 = vrot.lane.b32.xlu1 %v8937_v56, %s13566_s15  ;;  %v13128_v1 = vpack.c.bf16 %v9996_v21, %v9993_v35  ;;  %v10076_v56 = vsub.f32 %v10074_v22, %v10075_v55 }
0x2970   :  { %v8941_v18 = vpop.permute.xlu1 %8940 }
0x2971   :  { %v8942_v43 = vsel %vm847_vm2, %v8941_v18, 0  ;;  %v10070_v18 = vand.u32 4294901760, %v10069_v3 }
0x2972   :  { %v9013_v23 = vand.u32 4294901760, %v8942_v43 }
0x2974   :  { %v9014_v45 = vsub.f32 %v8942_v43, %v9013_v23 }
0x2976   :  { %v9015_v9 = vand.u32 4294901760, %v9014_v45 }
0x2978   :  { %v9016_v8 = vsub.f32 %v9014_v45, %v9015_v9 }
0x297a   :  { %v9017_v28 = vand.u32 4294901760, %v9016_v8 }
0x297c   :  { %12287 = vmatmul.mubr.f32.vlgmr.msra.gmra.mrb[26].mxu0 %v9017_v28 }
0x297d   :  { %13060 = vmatpush3.bf16.msra.mxu0 %v14444_v12  ;;  %12297 = vmatprep.mubr.msk.f32.mxu0 %vm13563_vm1, %v13564_v54 }
0x297e   :  { %13061 = vmatprep.subr.bf16.mxu0 %v13562_v7 }
0x2981   :  { %13063 = vmatpush3.bf16.msra.mxu0 %v14451_v62 }
0x2982   :  { %13064 = vmatprep.subr.bf16.mxu0 %v13562_v7 }
0x2984   :  { %12298 = vmatmul.mubr.f32.vlgmr.msra.gmra.mrb[26].mxu0 %v9013_v23 }
0x2985   :  { %13066 = vmatpush3.bf16.msra.mxu0 %v14457_v25  ;;  %12308 = vmatprep.mubr.msk.f32.mxu0 %vm13563_vm1, %v13564_v54 }
0x2986   :  { %13067 = vmatprep.subr.bf16.mxu0 %v13562_v7 }
0x2989   :  { %13069 = vmatpush3.bf16.msra.mxu0 %v14465_v50 }
0x298a   :  { %13070 = vmatprep.subr.bf16.mxu0 %v13562_v7 }
0x298c   :  { %12309 = vmatmul.mubr.f32.vlgmr.msra.gmra.mrb[26].mxu0 %v9014_v45 }
0x298d   :  { %13072 = vmatpush3.bf16.msra.mxu0 %v14407_v0  ;;  %12319 = vmatprep.mubr.msk.f32.mxu0 %vm13563_vm1, %v13564_v54 }
0x298e   :  { %13073 = vmatprep.subr.bf16.mxu0 %v13562_v7 }
0x2991   :  { %13075 = vmatpush3.bf16.msra.mxu0 %v14417_v5 }
0x2992   :  { %13076 = vmatprep.subr.bf16.mxu0 %v13562_v7 }
0x2994   :  { %12320 = vmatmul.mubr.f32.vlgmr.msra.gmra.mrb[26].mxu0 %v9015_v9  ;;  %v10077_v9 = vand.u32 4294901760, %v10076_v56 }
0x2995   :  { %13078 = vmatpush3.bf16.msra.mxu0 %v14480_v46  ;;  %12330 = vmatprep.mubr.msk.f32.mxu0 %vm13563_vm1, %v13564_v54 }
0x2996   :  { %13079 = vmatprep.subr.bf16.mxu0 %v13562_v7 }
0x2999   :  { %13081 = vmatpush3.bf16.msra.mxu0 %v14487_v51 }
0x299a   :  { %13082 = vmatprep.subr.bf16.mxu0 %v13562_v7 }
0x299c   :  { %12331 = vmatmul.mubr.f32.vlgmr.msra.gmra.mrb[26].mxu0 %v9013_v23 }
0x299d   :  { %13084 = vmatpush3.bf16.msra.mxu0 %v14407_v0  ;;  %12341 = vmatprep.mubr.msk.f32.mxu0 %vm13563_vm1, %v13564_v54 }
0x299e   :  { %13085 = vmatprep.subr.bf16.mxu0 %v13562_v7 }
0x29a1   :  { %13087 = vmatpush3.bf16.msra.mxu0 %v14417_v5 }
0x29a2   :  { %13124 = vmatprep.subr.bf16.mxu0 %v13562_v7 }
0x29a4   :  { %12342 = vmatmul.mubr.f32.vlgmr.msra.gmra.mrb[26].mxu0 %v9013_v23  ;;  %v10089_v23 = vand.u32 4294901760, %v10088_v53 }
0x29a5   :  { %12418 = vmatprep.mubr.msk.f32.mxu0 %vm13563_vm1, %v13564_v54  ;;  %13126 = vmatpush3.bf16.msra.mxu0 %v14907_v17 }
0x29a6   :  { %13127 = vmatprep.subr.bf16.mxu0 %v13562_v7 }
0x29a9   :  { %13129 = vmatpush3.bf16.msra.mxu0 %v13128_v1 }
0x29aa   :  { %13130 = vmatprep.subr.bf16.mxu0 %v13562_v7 }
0x2a77   :  { %v9425_v42 = vpop.f32.mrb[26].mxu0 }
0x2a78   :  { %v9429_v59 = vadd.f32 %v14593_v36, %v9425_v42  ;;  %v12343_v2 = vpop.f32.mrb[27].mxu0  ;;  %v10090_v42 = vsub.f32 %v10088_v53, %v10089_v23 }
0x2a7a   :  { %13546 = vtanh.f32 %v9429_v59  ;;  %v10493_v31 = vmul.f32 -1.442695, %v9429_v59  ;;  %v13131_v59 = vpack.c.bf16 %v10077_v9, %v10070_v18 }
0x2a7c   :  { %13548 = vpow2.f32 %v10493_v31 }
0x2a84   :  { %v13547_v6 = vpop.eup %13546 }
0x2a85   :  { %9439 = vrot.lane.b32.xlu0 %v13547_v6, %s13565_s3  ;;  %v10091_v6 = vand.u32 4294901760, %v10090_v42 }
0x2a86   :  { %v13549_v34 = vpop.eup %13548 }
0x2a87   :  { %v9433_v40 = vadd.f32 1.0, %v13549_v34  ;;  %v13137_v34 = vpack.c.bf16 %v10074_v22, %v10067_v47 }
0x2a89   :  { %13550 = vrcp.f32 %v9433_v40 }
0x2a93   :  { %v13551_v41 = vpop.eup %13550 }
0x2a94   :  { %v9437_v48 = vmul.f32 %v13551_v41, %v8931_v33  ;;  %v10081_v33 = vsub.f32 %v9972_v20, %v9993_v35 }
0x2a96   :  { %v10082_v43 = vand.u32 4294901760, %v10081_v33  ;;  %v13140_v40 = vpack.c.bf16 %v10088_v53, %v10081_v33 }
0x2a98   :  { %v10083_v28 = vsub.f32 %v10081_v33, %v10082_v43 }
0x2a9a   :  { %v10084_v2 = vand.u32 4294901760, %v10083_v28 }
0x2a9c   :  { %v13134_v31 = vpack.c.bf16 %v10091_v6, %v10084_v2 }
0x2af7   :  { %v9440_v16 = vpop.permute.xlu0 %9439 }
0x2af8   :  { %v9442_v24 = vmul.f32 %v13551_v41, %v9440_v16  ;;  %v13152_v16 = vpack.c.bf16 %v10089_v23, %v10082_v43 }
0x2afa   :  { %9444 = vrot.lane.b32.xlu1 %v9442_v24, %s13565_s3 }
0x2b6c   :  { %v9445_v52 = vpop.permute.xlu1 %9444 }
0x2b6d   :  { %v9447_v15 = vadd.f32 %v9445_v52, %v9437_v48 }
0x2b6f   :  { %13552 = vtanh.f32 %v9447_v15 }
0x2b79   :  { %v13553_v36 = vpop.eup %13552 }
0x2b7a   :  { %9450 = vrot.lane.b32.xlu0 %v13553_v36, %s13565_s3 }
0x2bec   :  { %v9451_v26 = vpop.permute.xlu0 %9450 }
0x2bed   :  { %v9453_v29 = vmul.f32 %v13551_v41, %v9451_v26  ;;  %v13149_v41 = vpack.c.bf16 %v10075_v55, %v10068_v57 }
0x2bef   :  { %9456 = vrot.lane.b32.xlu1 %v9453_v29, %s13566_s15 }
0x2c61   :  { %v9457_v58 = vpop.permute.xlu1 %9456 }
0x2c62   :  { %v9458_v60 = vsel %vm847_vm2, %v9457_v58, 0  ;;  %v10495_v58 = vld [vmem:[%s14955_s8] ss:$0 sm:$0xff] }
0x2c63   :  { %v9529_v61 = vand.u32 4294901760, %v9458_v60 }
0x2c65   :  { %v9530_v37 = vsub.f32 %v9458_v60, %v9529_v61 }
0x2c67   :  { %v9531_v19 = vand.u32 4294901760, %v9530_v37 }
0x2c69   :  { %v9532_v63 = vsub.f32 %v9530_v37, %v9531_v19 }
0x2c6b   :  { %v9533_v32 = vand.u32 4294901760, %v9532_v63 }
0x2c6d   :  { %12353 = vmatmul.mubr.f32.vlgmr.msra.gmra.mrb[26].mxu1 %v9533_v32 }
0x2c6e   :  { %13096 = vmatpush3.bf16.msra.mxu1 %v14444_v12  ;;  %12363 = vmatprep.mubr.msk.f32.mxu1 %vm13563_vm1, %v13564_v54 }
0x2c6f   :  { %13097 = vmatprep.subr.bf16.mxu1 %v13562_v7 }
0x2c72   :  { %13099 = vmatpush3.bf16.msra.mxu1 %v14451_v62 }
0x2c73   :  { %13100 = vmatprep.subr.bf16.mxu1 %v13562_v7 }
0x2c75   :  { %12364 = vmatmul.mubr.f32.vlgmr.msra.gmra.mrb[26].mxu1 %v9529_v61 }
0x2c76   :  { %13102 = vmatpush3.bf16.msra.mxu1 %v14457_v25  ;;  %12374 = vmatprep.mubr.msk.f32.mxu1 %vm13563_vm1, %v13564_v54 }
0x2c77   :  { %13103 = vmatprep.subr.bf16.mxu1 %v13562_v7 }
0x2c7a   :  { %13105 = vmatpush3.bf16.msra.mxu1 %v14465_v50 }
0x2c7b   :  { %13106 = vmatprep.subr.bf16.mxu1 %v13562_v7 }
0x2c7d   :  { %12375 = vmatmul.mubr.f32.vlgmr.msra.gmra.mrb[26].mxu1 %v9530_v37 }
0x2c7e   :  { %13108 = vmatpush3.bf16.msra.mxu1 %v14407_v0  ;;  %12385 = vmatprep.mubr.msk.f32.mxu1 %vm13563_vm1, %v13564_v54 }
0x2c7f   :  { %13109 = vmatprep.subr.bf16.mxu1 %v13562_v7 }
0x2c82   :  { %13111 = vmatpush3.bf16.msra.mxu1 %v14417_v5 }
0x2c83   :  { %13112 = vmatprep.subr.bf16.mxu1 %v13562_v7 }
0x2c85   :  { %12386 = vmatmul.mubr.f32.vlgmr.msra.gmra.mrb[26].mxu1 %v9531_v19 }
0x2c86   :  { %13114 = vmatpush3.bf16.msra.mxu1 %v14480_v46  ;;  %12396 = vmatprep.mubr.msk.f32.mxu1 %vm13563_vm1, %v13564_v54 }
0x2c87   :  { %13115 = vmatprep.subr.bf16.mxu1 %v13562_v7 }
0x2c8a   :  { %13117 = vmatpush3.bf16.msra.mxu1 %v14487_v51 }
0x2c8b   :  { %13118 = vmatprep.subr.bf16.mxu1 %v13562_v7 }
0x2c8d   :  { %12397 = vmatmul.mubr.f32.vlgmr.msra.gmra.mrb[26].mxu1 %v9529_v61 }
0x2c8e   :  { %13120 = vmatpush3.bf16.msra.mxu1 %v14407_v0  ;;  %12407 = vmatprep.mubr.msk.f32.mxu1 %vm13563_vm1, %v13564_v54 }
0x2c8f   :  { %13121 = vmatprep.subr.bf16.mxu1 %v13562_v7 }
0x2c92   :  { %13123 = vmatpush3.bf16.msra.mxu1 %v14417_v5 }
0x2c95   :  { %12408 = vmatmul.mubr.f32.vlgmr.msra.gmra.mrb[26].mxu1 %v9529_v61 }
0x2d68   :  { %v9941_v12 = vpop.f32.mrb[26].mxu1 }
0x2d69   :  { %v9945_v62 = vadd.f32 %v14591_v27, %v9941_v12  ;;  %v12409_v25 = vpop.f32.mrb[27].mxu1 }
0x2d6b   :  { %13554 = vtanh.f32 %v9945_v62  ;;  %v10494_v46 = vmul.f32 -1.442695, %v9945_v62 }
0x2d6d   :  { %13556 = vpow2.f32 %v10494_v46 }
0x2d75   :  { %v13555_v50 = vpop.eup %13554 }
0x2d76   :  { %9955 = vrot.lane.b32.xlu0 %v13555_v50, %s13565_s3 }
0x2d77   :  { %v13557_v51 = vpop.eup %13556 }
0x2d78   :  { %v9949_v0 = vadd.f32 1.0, %v13557_v51 }
0x2d7a   :  { %13558 = vrcp.f32 %v9949_v0 }
0x2d84   :  { %v13559_v44 = vpop.eup %13558 }
0x2d85   :  { %v9953_v5 = vmul.f32 %v13559_v44, %v9447_v15 }
0x2de8   :  { %v9956_v14 = vpop.permute.xlu0 %9955 }
0x2de9   :  { %v9958_v49 = vmul.f32 %v13559_v44, %v9956_v14 }
0x2deb   :  { %9960 = vrot.lane.b32.xlu1 %v9958_v49, %s13565_s3 }
0x2e5d   :  { %v9961_v4 = vpop.permute.xlu1 %9960 }
0x2e5e   :  { %v9963_v10 = vadd.f32 %v9961_v4, %v9953_v5 }
0x2e60   :  { %13560 = vtanh.f32 %v9963_v10 }
0x2e6a   :  { %v13561_v27 = vpop.eup %13560 }
0x2e6b   :  { %9966 = vrot.lane.b32.xlu0 %v13561_v27, %s13565_s3 }
0x2edd   :  { %v9967_v45 = vpop.permute.xlu0 %9966 }
0x2ede   :  { %v9969_v8 = vmul.f32 %v13559_v44, %v9967_v45 }
0x2ee0   :  { %9982 = vrot.lane.b32.xlu1 %v9969_v8, %s13566_s15 }
0x2f52   :  { %v9983_v24 = vpop.permute.xlu1 %9982 }
0x2f53   :  { %v9984_v48 = vsel %vm847_vm2, %v9983_v24, 0 }
0x2f54   :  { %v10055_v52 = vand.u32 4294901760, %v9984_v48 }
0x2f56   :  { %v10056_v15 = vsub.f32 %v9984_v48, %v10055_v52 }
0x2f58   :  { %v10057_v36 = vand.u32 4294901760, %v10056_v15 }
0x2f5a   :  { %v10058_v26 = vsub.f32 %v10056_v15, %v10057_v36 }
0x2f5c   :  { %v10059_v29 = vand.u32 4294901760, %v10058_v26 }
0x2f5e   :  { %12419 = vmatmul.mubr.f32.vlgmr.msra.gmra.mrb[28].mxu0 %v10059_v29 }
0x2f5f   :  { %13132 = vmatpush3.bf16.msra.mxu0 %v13131_v59  ;;  %12429 = vmatprep.mubr.msk.f32.mxu0 %vm13563_vm1, %v13564_v54 }
0x2f60   :  { %13133 = vmatprep.subr.bf16.mxu0 %v13562_v7 }
0x2f63   :  { %13135 = vmatpush3.bf16.msra.mxu0 %v13134_v31 }
0x2f64   :  { %13136 = vmatprep.subr.bf16.mxu0 %v13562_v7 }
0x2f66   :  { %12430 = vmatmul.mubr.f32.vlgmr.msra.gmra.mrb[28].mxu0 %v10055_v52 }
0x2f67   :  { %13138 = vmatpush3.bf16.msra.mxu0 %v13137_v34  ;;  %12440 = vmatprep.mubr.msk.f32.mxu0 %vm13563_vm1, %v13564_v54 }
0x2f68   :  { %13139 = vmatprep.subr.bf16.mxu0 %v13562_v7 }
0x2f6b   :  { %13141 = vmatpush3.bf16.msra.mxu0 %v13140_v40 }
0x2f6c   :  { %13142 = vmatprep.subr.bf16.mxu0 %v13562_v7 }
0x2f6e   :  { %12441 = vmatmul.mubr.f32.vlgmr.msra.gmra.mrb[28].mxu0 %v10056_v15 }
0x2f6f   :  { %13144 = vmatpush3.bf16.msra.mxu0 %v14907_v17  ;;  %12451 = vmatprep.mubr.msk.f32.mxu0 %vm13563_vm1, %v13564_v54 }
0x2f70   :  { %13145 = vmatprep.subr.bf16.mxu0 %v13562_v7 }
0x2f73   :  { %13147 = vmatpush3.bf16.msra.mxu0 %v13128_v1 }
0x2f74   :  { %13148 = vmatprep.subr.bf16.mxu0 %v13562_v7 }
0x2f76   :  { %12452 = vmatmul.mubr.f32.vlgmr.msra.gmra.mrb[28].mxu0 %v10057_v36 }
0x2f77   :  { %13150 = vmatpush3.bf16.msra.mxu0 %v13149_v41  ;;  %12462 = vmatprep.mubr.msk.f32.mxu0 %vm13563_vm1, %v13564_v54 }
0x2f78   :  { %13151 = vmatprep.subr.bf16.mxu0 %v13562_v7 }
0x2f7b   :  { %13153 = vmatpush3.bf16.msra.mxu0 %v13152_v16 }
0x2f7c   :  { %13154 = vmatprep.subr.bf16.mxu0 %v13562_v7 }
0x2f7e   :  { %12463 = vmatmul.mubr.f32.vlgmr.msra.gmra.mrb[28].mxu0 %v10055_v52 }
0x2f7f   :  { %13156 = vmatpush3.bf16.msra.mxu0 %v14907_v17  ;;  %12473 = vmatprep.mubr.msk.f32.mxu0 %vm13563_vm1, %v13564_v54 }
0x2f80   :  { %13157 = vmatprep.subr.bf16.mxu0 %v13562_v7 }
0x2f83   :  { %13159 = vmatpush3.bf16.msra.mxu0 %v13128_v1 }
0x2f86   :  { %12474 = vmatmul.mubr.f32.vlgmr.msra.gmra.mrb[28].mxu0 %v10055_v52 }
0x3059   :  { %v10467_v60 = vpop.f32.mrb[28].mxu0 }
0x305a   :  { %v13186_v61 = vadd.f32 %v10495_v58, %v10467_v60  ;;  %v12475_v37 = vpop.f32.mrb[29].mxu0 }
0x305c   :  { %10472 = vst.msk [vmem:[%s14956_s9] sm:$0xff] %vm10471_vm3, %v13186_v61 }

</bundles_post_ra>
